<compile_context>
chip_gen: v6e
topology: v6e:2x2x1
jax: 0.10.0
libtpu: 0.0.40
codegen_flags: <defaults>
</compile_context>

<pallas_src>
import functools

import jax
import jax.numpy as jnp
import numpy as np
from jax.experimental import pallas as pl
from jax.experimental.pallas import tpu as pltpu

EPS = 1e-5


def _conv3x3_bn_kernel(in_pad_ref, w_ref, g_ref, b_ref, *rest,
                       N, H, W, C_in, eps, fuse_residual, pad_output):
    """Fused conv3x3 (stride 1, pad 1) + BatchNorm(train) [+ residual] + ReLU.

    in_pad_ref : (N, H+2, W+2, C_in)       f32  spatially padded NHWC input (resident)
    w_ref      : (9, C_in, TC)             f32  weight tile, first index = kh*3+kw
    g_ref/b_ref: (1, TC)                   f32  BN gamma / beta tile
    res_ref    : (N, H, W, TC)             f32  residual tile (only if fuse_residual)
    out_ref    : (N, H(+2), W(+2), TC)     f32  output tile (padded iff pad_output)
    """
    if fuse_residual:
        res_ref, out_ref = rest
    else:
        (out_ref,) = rest
    TC = out_ref.shape[-1]
    M = N * H * W

    # ---- conv3x3 as 9 shifted MXU matmuls, f32 accumulation ----------------
    acc = jnp.zeros((M, TC), jnp.float32)
    for kh in range(3):
        for kw in range(3):
            xs = in_pad_ref[:, kh:kh + H, kw:kw + W, :].reshape(M, C_in)
            acc = acc + jnp.dot(xs, w_ref[kh * 3 + kw],
                                preferred_element_type=jnp.float32)

    # ---- BatchNorm: one-pass training stats over (N, H, W) per channel -----
    inv_cnt = 1.0 / float(M)
    mean = jnp.sum(acc, axis=0, keepdims=True) * inv_cnt              # (1, TC)
    ex2 = jnp.sum(acc * acc, axis=0, keepdims=True) * inv_cnt
    var = ex2 - mean * mean                                           # biased
    scale = jax.lax.rsqrt(var + eps) * g_ref[...]                     # EUP rsqrt
    y = (acc - mean) * scale + b_ref[...]

    if fuse_residual:
        y = y + res_ref[...].reshape(M, TC)
    y = jnp.maximum(y, 0.0)                                           # ReLU

    if pad_output:
        # Emit the result with a zero 1-pixel spatial border so the next conv
        # can read it directly.  Zero only the border, not the whole block.
        zrow = jnp.zeros((N, 1, W + 2, TC), jnp.float32)
        zcol = jnp.zeros((N, H + 2, 1, TC), jnp.float32)
        out_ref[:, 0:1, :, :] = zrow
        out_ref[:, H + 1:H + 2, :, :] = zrow
        out_ref[:, :, 0:1, :] = zcol
        out_ref[:, :, W + 1:W + 2, :] = zcol
        out_ref[:, 1:H + 1, 1:W + 1, :] = y.reshape(N, H, W, TC)
    else:
        out_ref[...] = y.reshape(N, H, W, TC)


def basic_block_forward(x, params, eps=EPS):
    """x: (N, C, H, W) f32 NCHW (PyTorch layout); params: conv/BN parameters."""
    N, C, H, W = x.shape
    # Channel tile: keep the lane dim either full-C or a 128 multiple.
    TC = C if C <= 128 else 128
    assert C % TC == 0
    n_ct = C // TC

    # Lane-dense NHWC layout for the kernels.
    x_nhwc = jnp.transpose(x, (0, 2, 3, 1))
    x_pad = jnp.pad(x_nhwc, ((0, 0), (1, 1), (1, 1), (0, 0)))

    def prep_w(w):  # (Cout, Cin, 3, 3) -> (9, Cin, Cout)
        return jnp.transpose(w, (2, 3, 1, 0)).reshape(9, C, C)

    w1 = prep_w(params["w1"])
    w2 = prep_w(params["w2"])
    g1 = params["gamma1"].reshape(1, C)
    b1 = params["beta1"].reshape(1, C)
    g2 = params["gamma2"].reshape(1, C)
    b2 = params["beta2"].reshape(1, C)

    grid = (n_ct,)
    full_pad_spec = pl.BlockSpec((N, H + 2, W + 2, C), lambda c: (0, 0, 0, 0))
    w_spec = pl.BlockSpec((9, C, TC), lambda c: (0, 0, c))
    vec_spec = pl.BlockSpec((1, TC), lambda c: (0, c))
    out_pad_spec = pl.BlockSpec((N, H + 2, W + 2, TC), lambda c: (0, 0, 0, c))
    out_spec = pl.BlockSpec((N, H, W, TC), lambda c: (0, 0, 0, c))
    cparams = pltpu.CompilerParams(dimension_semantics=("parallel",))

    # ---- stage 1: conv1 + BN1 + ReLU (output written spatially padded) -----
    kernel1 = functools.partial(_conv3x3_bn_kernel, N=N, H=H, W=W, C_in=C,
                                eps=eps, fuse_residual=False, pad_output=True)
    mid_pad = pl.pallas_call(
        kernel1,
        grid=grid,
        in_specs=[full_pad_spec, w_spec, vec_spec, vec_spec],
        out_specs=out_pad_spec,
        out_shape=jax.ShapeDtypeStruct((N, H + 2, W + 2, C), jnp.float32),
        compiler_params=cparams,
    )(x_pad, w1, g1, b1)

    # ---- stage 2: conv2 + BN2 + residual + ReLU -----------------------------
    kernel2 = functools.partial(_conv3x3_bn_kernel, N=N, H=H, W=W, C_in=C,
                                eps=eps, fuse_residual=True, pad_output=False)
    out_nhwc = pl.pallas_call(
        kernel2,
        grid=grid,
        in_specs=[full_pad_spec, w_spec, vec_spec, vec_spec, out_spec],
        out_specs=out_spec,
        out_shape=jax.ShapeDtypeStruct((N, H, W, C), jnp.float32),
        compiler_params=cparams,
    )(mid_pad, w2, g2, b2, x_nhwc)

    return jnp.transpose(out_nhwc, (0, 3, 1, 2))


def basic_block_ref(x, params, eps=EPS):
    """Pure-JAX reference (same semantics, NCHW) for validation."""
    def conv3x3(h, w):
        return jax.lax.conv_general_dilated(
            h, w, window_strides=(1, 1), padding=((1, 1), (1, 1)),
            dimension_numbers=("NCHW", "OIHW", "NCHW"))

    def bn_train(h, g, b):
        m = jnp.mean(h, axis=(0, 2, 3), keepdims=True)
        v = jnp.mean((h - m) ** 2, axis=(0, 2, 3), keepdims=True)
        return (h - m) / jnp.sqrt(v + eps) * g[None, :, None, None] + b[None, :, None, None]

    out = jax.nn.relu(bn_train(conv3x3(x, params["w1"]), params["gamma1"], params["beta1"]))
    out = bn_train(conv3x3(out, params["w2"]), params["gamma2"], params["beta2"])
    return jax.nn.relu(out + x)


if __name__ == "__main__":
    # Small shapes implied by the module: inplanes == planes (stride=1, no downsample).
    N, C, H, W = 2, 4, 16, 16
    key = jax.random.PRNGKey(0)
    k = jax.random.split(key, 7)

    x = jax.random.normal(k[0], (N, C, H, W), jnp.float32)
    fan_in = C * 3 * 3
    params = dict(
        # conv3x3 weights: (out_planes, in_planes, 3, 3), no bias
        w1=jax.random.normal(k[1], (C, C, 3, 3), jnp.float32) / np.sqrt(fan_in),
        w2=jax.random.normal(k[2], (C, C, 3, 3), jnp.float32) / np.sqrt(fan_in),
        # BatchNorm2d affine params (default init is 1/0; perturbed to be nontrivial)
        gamma1=1.0 + 0.1 * jax.random.normal(k[3], (C,), jnp.float32),
        beta1=0.1 * jax.random.normal(k[4], (C,), jnp.float32),
        gamma2=1.0 + 0.1 * jax.random.normal(k[5], (C,), jnp.float32),
        beta2=0.1 * jax.random.normal(k[6], (C,), jnp.float32),
    )

    out = jax.block_until_ready(basic_block_forward(x, params))
    ref = jax.block_until_ready(basic_block_ref(x, params))

    assert out.shape == (N, C, H, W)
    np.testing.assert_allclose(np.asarray(out), np.asarray(ref), rtol=1e-4, atol=1e-4)
    print("KERNEL_OK")
</pallas_src>

<mosaic_0001>
module attributes {stable_mosaic.version = 11 : i64} {
  func.func @_conv3x3_bn_kernel(%arg0: i32, %arg1: memref<2x18x18x4xf32, #tpu.memory_space<vmem>>, %arg2: memref<9x4x4xf32, #tpu.memory_space<vmem>>, %arg3: memref<1x4xf32, #tpu.memory_space<vmem>>, %arg4: memref<1x4xf32, #tpu.memory_space<vmem>>, %arg5: memref<2x18x18x4xf32, #tpu.memory_space<vmem>>) attributes {dimension_semantics = [#tpu.dimension_semantics<parallel>], iteration_bounds = array<i64: 1>, scalar_prefetch = 0 : i64, scratch_operands = 0 : i64, tpu.core_type = #tpu.core_type<tc>, window_params = [{pipeline_mode = #tpu.pipeline_mode<synchronous>, transform_indices = @transform_0, window_bounds = array<i64: 2, 18, 18, 4>}, {transform_indices = @transform_1, window_bounds = array<i64: 9, 4, 4>}, {transform_indices = @transform_2, window_bounds = array<i64: 1, 4>}, {transform_indices = @transform_3, window_bounds = array<i64: 1, 4>}, {transform_indices = @transform_4, window_bounds = array<i64: 2, 18, 18, 4>}]} {
    %cst = arith.constant 0.000000e+00 : f32
    %0 = vector.broadcast %cst : f32 to vector<512x4xf32>
    %c0 = arith.constant 0 : index
    %c0_0 = arith.constant 0 : index
    %c0_1 = arith.constant 0 : index
    %c0_2 = arith.constant 0 : index
    %1 = vector.load %arg1[%c0, %c0_0, %c0_1, %c0_2] : memref<2x18x18x4xf32, #tpu.memory_space<vmem>>, vector<2x16x16x4xf32>
    %2 = vector.shape_cast %1 : vector<2x16x16x4xf32> to vector<512x4xf32>
    %c0_3 = arith.constant 0 : index
    %c0_4 = arith.constant 0 : index
    %c0_5 = arith.constant 0 : index
    %3 = vector.load %arg2[%c0_3, %c0_4, %c0_5] : memref<9x4x4xf32, #tpu.memory_space<vmem>>, vector<1x4x4xf32>
    %4 = vector.shape_cast %3 : vector<1x4x4xf32> to vector<4x4xf32>
    %cst_6 = arith.constant dense<0.000000e+00> : vector<512x4xf32>
    %5 = tpu.matmul %2, %4, %cst_6 {dimension_numbers = #tpu.dot_dimension_numbers<[1], [0], [0], [1], [0, 0, 1, 1], [], []>} : vector<512x4xf32>, vector<4x4xf32>, vector<512x4xf32> -> vector<512x4xf32>
    %6 = arith.addf %0, %5 : vector<512x4xf32>
    %c0_7 = arith.constant 0 : index
    %c0_8 = arith.constant 0 : index
    %c1 = arith.constant 1 : index
    %c0_9 = arith.constant 0 : index
    %7 = vector.load %arg1[%c0_7, %c0_8, %c1, %c0_9] : memref<2x18x18x4xf32, #tpu.memory_space<vmem>>, vector<2x16x16x4xf32>
    %8 = vector.shape_cast %7 : vector<2x16x16x4xf32> to vector<512x4xf32>
    %c1_10 = arith.constant 1 : index
    %c0_11 = arith.constant 0 : index
    %c0_12 = arith.constant 0 : index
    %9 = vector.load %arg2[%c1_10, %c0_11, %c0_12] : memref<9x4x4xf32, #tpu.memory_space<vmem>>, vector<1x4x4xf32>
    %10 = vector.shape_cast %9 : vector<1x4x4xf32> to vector<4x4xf32>
    %cst_13 = arith.constant dense<0.000000e+00> : vector<512x4xf32>
    %11 = tpu.matmul %8, %10, %cst_13 {dimension_numbers = #tpu.dot_dimension_numbers<[1], [0], [0], [1], [0, 0, 1, 1], [], []>} : vector<512x4xf32>, vector<4x4xf32>, vector<512x4xf32> -> vector<512x4xf32>
    %12 = arith.addf %6, %11 : vector<512x4xf32>
    %c0_14 = arith.constant 0 : index
    %c0_15 = arith.constant 0 : index
    %c2 = arith.constant 2 : index
    %c0_16 = arith.constant 0 : index
    %13 = vector.load %arg1[%c0_14, %c0_15, %c2, %c0_16] : memref<2x18x18x4xf32, #tpu.memory_space<vmem>>, vector<2x16x16x4xf32>
    %14 = vector.shape_cast %13 : vector<2x16x16x4xf32> to vector<512x4xf32>
    %c2_17 = arith.constant 2 : index
    %c0_18 = arith.constant 0 : index
    %c0_19 = arith.constant 0 : index
    %15 = vector.load %arg2[%c2_17, %c0_18, %c0_19] : memref<9x4x4xf32, #tpu.memory_space<vmem>>, vector<1x4x4xf32>
    %16 = vector.shape_cast %15 : vector<1x4x4xf32> to vector<4x4xf32>
    %cst_20 = arith.constant dense<0.000000e+00> : vector<512x4xf32>
    %17 = tpu.matmul %14, %16, %cst_20 {dimension_numbers = #tpu.dot_dimension_numbers<[1], [0], [0], [1], [0, 0, 1, 1], [], []>} : vector<512x4xf32>, vector<4x4xf32>, vector<512x4xf32> -> vector<512x4xf32>
    %18 = arith.addf %12, %17 : vector<512x4xf32>
    %c0_21 = arith.constant 0 : index
    %c1_22 = arith.constant 1 : index
    %c0_23 = arith.constant 0 : index
    %c0_24 = arith.constant 0 : index
    %19 = vector.load %arg1[%c0_21, %c1_22, %c0_23, %c0_24] : memref<2x18x18x4xf32, #tpu.memory_space<vmem>>, vector<2x16x16x4xf32>
    %20 = vector.shape_cast %19 : vector<2x16x16x4xf32> to vector<512x4xf32>
    %c3 = arith.constant 3 : index
    %c0_25 = arith.constant 0 : index
    %c0_26 = arith.constant 0 : index
    %21 = vector.load %arg2[%c3, %c0_25, %c0_26] : memref<9x4x4xf32, #tpu.memory_space<vmem>>, vector<1x4x4xf32>
    %22 = vector.shape_cast %21 : vector<1x4x4xf32> to vector<4x4xf32>
    %cst_27 = arith.constant dense<0.000000e+00> : vector<512x4xf32>
    %23 = tpu.matmul %20, %22, %cst_27 {dimension_numbers = #tpu.dot_dimension_numbers<[1], [0], [0], [1], [0, 0, 1, 1], [], []>} : vector<512x4xf32>, vector<4x4xf32>, vector<512x4xf32> -> vector<512x4xf32>
    %24 = arith.addf %18, %23 : vector<512x4xf32>
    %c0_28 = arith.constant 0 : index
    %c1_29 = arith.constant 1 : index
    %c1_30 = arith.constant 1 : index
    %c0_31 = arith.constant 0 : index
    %25 = vector.load %arg1[%c0_28, %c1_29, %c1_30, %c0_31] : memref<2x18x18x4xf32, #tpu.memory_space<vmem>>, vector<2x16x16x4xf32>
    %26 = vector.shape_cast %25 : vector<2x16x16x4xf32> to vector<512x4xf32>
    %c4 = arith.constant 4 : index
    %c0_32 = arith.constant 0 : index
    %c0_33 = arith.constant 0 : index
    %27 = vector.load %arg2[%c4, %c0_32, %c0_33] : memref<9x4x4xf32, #tpu.memory_space<vmem>>, vector<1x4x4xf32>
    %28 = vector.shape_cast %27 : vector<1x4x4xf32> to vector<4x4xf32>
    %cst_34 = arith.constant dense<0.000000e+00> : vector<512x4xf32>
    %29 = tpu.matmul %26, %28, %cst_34 {dimension_numbers = #tpu.dot_dimension_numbers<[1], [0], [0], [1], [0, 0, 1, 1], [], []>} : vector<512x4xf32>, vector<4x4xf32>, vector<512x4xf32> -> vector<512x4xf32>
    %30 = arith.addf %24, %29 : vector<512x4xf32>
    %c0_35 = arith.constant 0 : index
    %c1_36 = arith.constant 1 : index
    %c2_37 = arith.constant 2 : index
    %c0_38 = arith.constant 0 : index
    %31 = vector.load %arg1[%c0_35, %c1_36, %c2_37, %c0_38] : memref<2x18x18x4xf32, #tpu.memory_space<vmem>>, vector<2x16x16x4xf32>
    %32 = vector.shape_cast %31 : vector<2x16x16x4xf32> to vector<512x4xf32>
    %c5 = arith.constant 5 : index
    %c0_39 = arith.constant 0 : index
    %c0_40 = arith.constant 0 : index
    %33 = vector.load %arg2[%c5, %c0_39, %c0_40] : memref<9x4x4xf32, #tpu.memory_space<vmem>>, vector<1x4x4xf32>
    %34 = vector.shape_cast %33 : vector<1x4x4xf32> to vector<4x4xf32>
    %cst_41 = arith.constant dense<0.000000e+00> : vector<512x4xf32>
    %35 = tpu.matmul %32, %34, %cst_41 {dimension_numbers = #tpu.dot_dimension_numbers<[1], [0], [0], [1], [0, 0, 1, 1], [], []>} : vector<512x4xf32>, vector<4x4xf32>, vector<512x4xf32> -> vector<512x4xf32>
    %36 = arith.addf %30, %35 : vector<512x4xf32>
    %c0_42 = arith.constant 0 : index
    %c2_43 = arith.constant 2 : index
    %c0_44 = arith.constant 0 : index
    %c0_45 = arith.constant 0 : index
    %37 = vector.load %arg1[%c0_42, %c2_43, %c0_44, %c0_45] : memref<2x18x18x4xf32, #tpu.memory_space<vmem>>, vector<2x16x16x4xf32>
    %38 = vector.shape_cast %37 : vector<2x16x16x4xf32> to vector<512x4xf32>
    %c6 = arith.constant 6 : index
    %c0_46 = arith.constant 0 : index
    %c0_47 = arith.constant 0 : index
    %39 = vector.load %arg2[%c6, %c0_46, %c0_47] : memref<9x4x4xf32, #tpu.memory_space<vmem>>, vector<1x4x4xf32>
    %40 = vector.shape_cast %39 : vector<1x4x4xf32> to vector<4x4xf32>
    %cst_48 = arith.constant dense<0.000000e+00> : vector<512x4xf32>
    %41 = tpu.matmul %38, %40, %cst_48 {dimension_numbers = #tpu.dot_dimension_numbers<[1], [0], [0], [1], [0, 0, 1, 1], [], []>} : vector<512x4xf32>, vector<4x4xf32>, vector<512x4xf32> -> vector<512x4xf32>
    %42 = arith.addf %36, %41 : vector<512x4xf32>
    %c0_49 = arith.constant 0 : index
    %c2_50 = arith.constant 2 : index
    %c1_51 = arith.constant 1 : index
    %c0_52 = arith.constant 0 : index
    %43 = vector.load %arg1[%c0_49, %c2_50, %c1_51, %c0_52] : memref<2x18x18x4xf32, #tpu.memory_space<vmem>>, vector<2x16x16x4xf32>
    %44 = vector.shape_cast %43 : vector<2x16x16x4xf32> to vector<512x4xf32>
    %c7 = arith.constant 7 : index
    %c0_53 = arith.constant 0 : index
    %c0_54 = arith.constant 0 : index
    %45 = vector.load %arg2[%c7, %c0_53, %c0_54] : memref<9x4x4xf32, #tpu.memory_space<vmem>>, vector<1x4x4xf32>
    %46 = vector.shape_cast %45 : vector<1x4x4xf32> to vector<4x4xf32>
    %cst_55 = arith.constant dense<0.000000e+00> : vector<512x4xf32>
    %47 = tpu.matmul %44, %46, %cst_55 {dimension_numbers = #tpu.dot_dimension_numbers<[1], [0], [0], [1], [0, 0, 1, 1], [], []>} : vector<512x4xf32>, vector<4x4xf32>, vector<512x4xf32> -> vector<512x4xf32>
    %48 = arith.addf %42, %47 : vector<512x4xf32>
    %c0_56 = arith.constant 0 : index
    %c2_57 = arith.constant 2 : index
    %c2_58 = arith.constant 2 : index
    %c0_59 = arith.constant 0 : index
    %49 = vector.load %arg1[%c0_56, %c2_57, %c2_58, %c0_59] : memref<2x18x18x4xf32, #tpu.memory_space<vmem>>, vector<2x16x16x4xf32>
    %50 = vector.shape_cast %49 : vector<2x16x16x4xf32> to vector<512x4xf32>
    %c8 = arith.constant 8 : index
    %c0_60 = arith.constant 0 : index
    %c0_61 = arith.constant 0 : index
    %51 = vector.load %arg2[%c8, %c0_60, %c0_61] : memref<9x4x4xf32, #tpu.memory_space<vmem>>, vector<1x4x4xf32>
    %52 = vector.shape_cast %51 : vector<1x4x4xf32> to vector<4x4xf32>
    %cst_62 = arith.constant dense<0.000000e+00> : vector<512x4xf32>
    %53 = tpu.matmul %50, %52, %cst_62 {dimension_numbers = #tpu.dot_dimension_numbers<[1], [0], [0], [1], [0, 0, 1, 1], [], []>} : vector<512x4xf32>, vector<4x4xf32>, vector<512x4xf32> -> vector<512x4xf32>
    %54 = arith.addf %48, %53 : vector<512x4xf32>
    %cst_63 = arith.constant dense<0.000000e+00> : vector<4xf32>
    %55 = vector.multi_reduction <add>, %54, %cst_63 [0] : vector<512x4xf32> to vector<4xf32>
    %56 = vector.shape_cast %55 : vector<4xf32> to vector<1x4xf32>
    %cst_64 = arith.constant 0.001953125 : f32
    %57 = vector.broadcast %cst_64 : f32 to vector<1x4xf32>
    %58 = arith.mulf %56, %57 : vector<1x4xf32>
    %59 = arith.mulf %54, %54 : vector<512x4xf32>
    %cst_65 = arith.constant dense<0.000000e+00> : vector<4xf32>
    %60 = vector.multi_reduction <add>, %59, %cst_65 [0] : vector<512x4xf32> to vector<4xf32>
    %61 = vector.shape_cast %60 : vector<4xf32> to vector<1x4xf32>
    %cst_66 = arith.constant 0.001953125 : f32
    %62 = vector.broadcast %cst_66 : f32 to vector<1x4xf32>
    %63 = arith.mulf %61, %62 : vector<1x4xf32>
    %64 = arith.mulf %58, %58 : vector<1x4xf32>
    %65 = arith.subf %63, %64 : vector<1x4xf32>
    %cst_67 = arith.constant 9.99999974E-6 : f32
    %66 = vector.broadcast %cst_67 : f32 to vector<1x4xf32>
    %67 = arith.addf %65, %66 : vector<1x4xf32>
    %68 = math.rsqrt %67 : vector<1x4xf32>
    %c0_68 = arith.constant 0 : index
    %c0_69 = arith.constant 0 : index
    %69 = vector.load %arg3[%c0_68, %c0_69] : memref<1x4xf32, #tpu.memory_space<vmem>>, vector<1x4xf32>
    %70 = arith.mulf %68, %69 : vector<1x4xf32>
    %71 = vector.broadcast %58 : vector<1x4xf32> to vector<512x4xf32>
    %72 = arith.subf %54, %71 : vector<512x4xf32>
    %73 = vector.broadcast %70 : vector<1x4xf32> to vector<512x4xf32>
    %74 = arith.mulf %72, %73 : vector<512x4xf32>
    %c0_70 = arith.constant 0 : index
    %c0_71 = arith.constant 0 : index
    %75 = vector.load %arg4[%c0_70, %c0_71] : memref<1x4xf32, #tpu.memory_space<vmem>>, vector<1x4xf32>
    %76 = vector.broadcast %75 : vector<1x4xf32> to vector<512x4xf32>
    %77 = arith.addf %74, %76 : vector<512x4xf32>
    %cst_72 = arith.constant 0.000000e+00 : f32
    %78 = vector.broadcast %cst_72 : f32 to vector<512x4xf32>
    %79 = arith.maximumf %77, %78 : vector<512x4xf32>
    %cst_73 = arith.constant 0.000000e+00 : f32
    %80 = vector.broadcast %cst_73 : f32 to vector<2x1x18x4xf32>
    %cst_74 = arith.constant 0.000000e+00 : f32
    %81 = vector.broadcast %cst_74 : f32 to vector<2x18x1x4xf32>
    %c0_75 = arith.constant 0 : index
    %c0_76 = arith.constant 0 : index
    %c0_77 = arith.constant 0 : index
    %c0_78 = arith.constant 0 : index
    %82 = vector.load %arg5[%c0_75, %c0_76, %c0_77, %c0_78] : memref<2x18x18x4xf32, #tpu.memory_space<vmem>>, vector<2x1x18x4xf32>
    tpu.vector_store %arg5[%c0_75, %c0_76, %c0_77, %c0_78], %80 {strides = array<i32>} : memref<2x18x18x4xf32, #tpu.memory_space<vmem>>, vector<2x1x18x4xf32>,
    %c0_79 = arith.constant 0 : index
    %c17 = arith.constant 17 : index
    %c0_80 = arith.constant 0 : index
    %c0_81 = arith.constant 0 : index
    %83 = vector.load %arg5[%c0_79, %c17, %c0_80, %c0_81] : memref<2x18x18x4xf32, #tpu.memory_space<vmem>>, vector<2x1x18x4xf32>
    tpu.vector_store %arg5[%c0_79, %c17, %c0_80, %c0_81], %80 {strides = array<i32>} : memref<2x18x18x4xf32, #tpu.memory_space<vmem>>, vector<2x1x18x4xf32>,
    %c0_82 = arith.constant 0 : index
    %c0_83 = arith.constant 0 : index
    %c0_84 = arith.constant 0 : index
    %c0_85 = arith.constant 0 : index
    %84 = vector.load %arg5[%c0_82, %c0_83, %c0_84, %c0_85] : memref<2x18x18x4xf32, #tpu.memory_space<vmem>>, vector<2x18x1x4xf32>
    tpu.vector_store %arg5[%c0_82, %c0_83, %c0_84, %c0_85], %81 {strides = array<i32>} : memref<2x18x18x4xf32, #tpu.memory_space<vmem>>, vector<2x18x1x4xf32>,
    %c0_86 = arith.constant 0 : index
    %c0_87 = arith.constant 0 : index
    %c17_88 = arith.constant 17 : index
    %c0_89 = arith.constant 0 : index
    %85 = vector.load %arg5[%c0_86, %c0_87, %c17_88, %c0_89] : memref<2x18x18x4xf32, #tpu.memory_space<vmem>>, vector<2x18x1x4xf32>
    tpu.vector_store %arg5[%c0_86, %c0_87, %c17_88, %c0_89], %81 {strides = array<i32>} : memref<2x18x18x4xf32, #tpu.memory_space<vmem>>, vector<2x18x1x4xf32>,
    %86 = vector.shape_cast %79 : vector<512x4xf32> to vector<2x16x16x4xf32>
    %c0_90 = arith.constant 0 : index
    %c1_91 = arith.constant 1 : index
    %c1_92 = arith.constant 1 : index
    %c0_93 = arith.constant 0 : index
    %87 = vector.load %arg5[%c0_90, %c1_91, %c1_92, %c0_93] : memref<2x18x18x4xf32, #tpu.memory_space<vmem>>, vector<2x16x16x4xf32>
    tpu.vector_store %arg5[%c0_90, %c1_91, %c1_92, %c0_93], %86 {strides = array<i32>} : memref<2x18x18x4xf32, #tpu.memory_space<vmem>>, vector<2x16x16x4xf32>,
    return
  }
  func.func @transform_0(%arg0: i32) -> (i32, i32, i32, i32) {
    %c0_i32 = arith.constant 0 : i32
    %c0_i32_0 = arith.constant 0 : i32
    %c0_i32_1 = arith.constant 0 : i32
    %c0_i32_2 = arith.constant 0 : i32
    %c0_i32_3 = arith.constant 0 : i32
    return %c0_i32, %c0_i32_0, %c0_i32_1, %c0_i32_2 : i32, i32, i32, i32
  }
  func.func @transform_1(%arg0: i32) -> (i32, i32, i32) {
    %c0_i32 = arith.constant 0 : i32
    %c0_i32_0 = arith.constant 0 : i32
    %c0_i32_1 = arith.constant 0 : i32
    return %c0_i32, %c0_i32_0, %arg0 : i32, i32, i32
  }
  func.func @transform_2(%arg0: i32) -> (i32, i32) {
    %c0_i32 = arith.constant 0 : i32
    %c0_i32_0 = arith.constant 0 : i32
    return %c0_i32, %arg0 : i32, i32
  }
  func.func @transform_3(%arg0: i32) -> (i32, i32) {
    %c0_i32 = arith.constant 0 : i32
    %c0_i32_0 = arith.constant 0 : i32
    return %c0_i32, %arg0 : i32, i32
  }
  func.func @transform_4(%arg0: i32) -> (i32, i32, i32, i32) {
    %c0_i32 = arith.constant 0 : i32
    %c0_i32_0 = arith.constant 0 : i32
    %c0_i32_1 = arith.constant 0 : i32
    %c0_i32_2 = arith.constant 0 : i32
    return %c0_i32, %c0_i32_0, %c0_i32_1, %arg0 : i32, i32, i32, i32
  }
}

</mosaic_0001>

<bundles_post_ra>
// kernel: tpu_custom_call.1
= control target key start
LH: loop header
LB: loop body
LE: loop exit
PB: predicated region body
PF: predicated region fallthrough
CT: control target
= control target key end

     0   :  { %vm341_vm0 = vcmask 1043456   ;;  %vm148_vm1 = vcmask 31744   ;;  %vm6889_vm2 = vcmask 25600   ;;  %vm6901_vm3 = vcmask 24576   ;;  %s14809_s1 = inlined_call_operand.vmem [shape: f32[9,4,4], index: 1, kind: input, shape index: {}]   ;;  %s14810_s0 = inlined_call_operand.vmem [shape: f32[2,18,18,4], index: 0, kind: input, shape index: {}]   ;;  %s14811_s4 = inlined_call_operand.vmem [shape: f32[2,18,18,4], index: 4, kind: output, shape index: {}]   ;;  %s14812_s2 = inlined_call_operand.vmem [shape: f32[1,4], index: 2, kind: input, shape index: {}]   ;;  %s14813_s3 = inlined_call_operand.vmem [shape: f32[1,4], index: 3, kind: input, shape index: {}]  }
   0x1   :  { %v7043_v0 = vld [vmem:[%s14809_s1 + $0x4] sm:$0xf]  ;;  %v114_v1 = vld [vmem:[%s14810_s0 + $0x1b1] sm:$0xff]  ;;  %v115_v3 = vld [vmem:[%s14810_s0 + $0x1b9] sm:$0xff] }
   0x2   :  { %v82_v2 = vld [vmem:[%s14810_s0 + $0x1] sm:$0xff]  ;;  %9558 = vmatprep.subr.msk.mxu1 %vm341_vm0, %v7043_v0  ;;  %8676 = vmatprep.subr.msk.mxu0 %vm341_vm0, %v7043_v0  ;;  %v83_v5 = vld [vmem:[%s14810_s0 + $0x9] sm:$0xff]  ;;  %v9624_v8 = vld [vmem:[%s14810_s0 + $0x19] sm:$0xff] }
   0x3   :  { %v81_v4 = vld [vmem:[%s14809_s1] sm:$0xf]  ;;  %9559 = vmatpush3.msk.msra.mxu1 %vm341_vm0, %v7043_v0  ;;  %8726 = vmatprep.mubr.msk.f32.mxu1 %vm148_vm1, %v114_v1  ;;  %v7174_v6 = vld [vmem:[%s14809_s1 + $0x8] sm:$0xf]  ;;  %v117_v9 = vld [vmem:[%s14810_s0 + $0x1d1] sm:$0xff] }
   0x4   :  { %8677 = vmatpush3.msk.msra.mxu0 %vm341_vm0, %v7043_v0  ;;  %8678 = vmatprep.mubr.msk.f32.mxu0 %vm148_vm1, %v82_v2  ;;  %v116_v7 = vld [vmem:[%s14810_s0 + $0x1c9] sm:$0xff]  ;;  %v9636_v10 = vld [vmem:[%s14810_s0 + $0x21] sm:$0xff]  ;;  %v9647_v12 = vld [vmem:[%s14810_s0 + $0x31] sm:$0xff] }
   0x5   :  { %8727 = vmatmul.mubr.msk.f32.vlgmr.msra.gmra.mxu1 %vm148_vm1, %v115_v3  ;;  %8774 = vmatprep.subr.msk.mxu1 %vm341_vm0, %v81_v4  ;;  %v118_v11 = vld [vmem:[%s14810_s0 + $0x1e1] sm:$0xff]  ;;  %v119_v13 = vld [vmem:[%s14810_s0 + $0x1e9] sm:$0xff]  ;;  %v9661_v14 = vld [vmem:[%s14810_s0 + $0x39] sm:$0xff] }
   0x6   :  { %8679 = vmatmul.mubr.msk.f32.vlgmr.msra.gmra.mxu0 %vm148_vm1, %v83_v5  ;;  %8775 = vmatpush3.msk.msra.mxu1 %vm341_vm0, %v81_v4  ;;  %v120_v15 = vld [vmem:[%s14810_s0 + $0x1f9] sm:$0xff]  ;;  %v9669_v16 = vld [vmem:[%s14810_s0 + $0x49] sm:$0xff]  ;;  %v121_v17 = vld [vmem:[%s14810_s0 + $0x201] sm:$0xff] }
   0x7   :  { %8872 = vmatprep.subr.msk.mxu0 %vm341_vm0, %v7174_v6  ;;  %8729 = vmatprep.mubr.msk.f32.mxu1 %vm148_vm1, %v116_v7  ;;  %v9683_v18 = vld [vmem:[%s14810_s0 + $0x51] sm:$0xff]  ;;  %v9691_v20 = vld [vmem:[%s14810_s0 + $0x61] sm:$0xff]  ;;  %v123_v21 = vld [vmem:[%s14810_s0 + $0x219] sm:$0xff] }
   0x8   :  { %8873 = vmatpush3.msk.msra.mxu0 %vm341_vm0, %v7174_v6  ;;  %8681 = vmatprep.mubr.msk.f32.mxu0 %vm148_vm1, %v9624_v8  ;;  %v122_v19 = vld [vmem:[%s14810_s0 + $0x211] sm:$0xff]  ;;  %v9705_v22 = vld [vmem:[%s14810_s0 + $0x69] sm:$0xff]  ;;  %v9713_v24 = vld [vmem:[%s14810_s0 + $0x79] sm:$0xff] }
   0x9   :  { %8730 = vmatmul.mubr.msk.f32.gmra.mxu1 %vm148_vm1, %v117_v9  ;;  %v124_v23 = vld [vmem:[%s14810_s0 + $0x229] sm:$0xff]  ;;  %v125_v25 = vld [vmem:[%s14810_s0 + $0x231] sm:$0xff]  ;;  %v9727_v26 = vld [vmem:[%s14810_s0 + $0x81] sm:$0xff] }
   0xa   :  { %8682 = vmatmul.mubr.msk.f32.gmra.mxu0 %vm148_vm1, %v9636_v10  ;;  %8732 = vmatprep.mubr.msk.f32.mxu1 %vm148_vm1, %v118_v11  ;;  %v126_v27 = vld [vmem:[%s14810_s0 + $0x241] sm:$0xff]  ;;  %v9735_v28 = vld [vmem:[%s14810_s0 + $0x91] sm:$0xff]  ;;  %v9740_v29 = vld [vmem:[%s14809_s1 + $0xc] sm:$0xf] }
   0xb   :  { %8684 = vmatprep.mubr.msk.f32.mxu0 %vm148_vm1, %v9647_v12  ;;  %8970 = vmatprep.subr.msk.mxu1 %vm341_vm0, %v9740_v29  ;;  %v9748_v30 = vld [vmem:[%s14809_s1 + $0x10] sm:$0xf]  ;;  %v9761_v32 = vld [vmem:[%s14810_s0 + $0x99] sm:$0xff]  ;;  %v129_v35 = vld [vmem:[%s14810_s0 + $0x261] sm:$0xff] }
   0xc   :  { %v127_v31 = vld [vmem:[%s14810_s0 + $0x249] sm:$0xff]  ;;  %v128_v33 = vld [vmem:[%s14810_s0 + $0x259] sm:$0xff]  ;;  %9068 = vmatprep.subr.msk.mxu0 %vm341_vm0, %v9748_v30  ;;  %v9785_v36 = vld [vmem:[%s14810_s0 + $0xb1] sm:$0xff] }
   0xd   :  { %8733 = vmatmul.mubr.msk.f32.gmra.mxu1 %vm148_vm1, %v119_v13  ;;  %v9771_v34 = vld [vmem:[%s14810_s0 + $0xa9] sm:$0xff]  ;;  %v130_v37 = vld [vmem:[%s14810_s0 + $0x271] sm:$0xff]  ;;  %v9793_v38 = vld [vmem:[%s14810_s0 + $0xc1] sm:$0xff] }
   0xe   :  { %8685 = vmatmul.mubr.msk.f32.gmra.mxu0 %vm148_vm1, %v9661_v14  ;;  %8735 = vmatprep.mubr.msk.f32.mxu1 %vm148_vm1, %v120_v15  ;;  %v131_v39 = vld [vmem:[%s14810_s0 + $0x279] sm:$0xff]  ;;  %v9807_v40 = vld [vmem:[%s14810_s0 + $0xc9] sm:$0xff]  ;;  %v133_v43 = vld [vmem:[%s14810_s0 + $0x291] sm:$0xff] }
   0xf   :  { %8687 = vmatprep.mubr.msk.f32.mxu0 %vm148_vm1, %v9669_v16  ;;  %v132_v41 = vld [vmem:[%s14810_s0 + $0x289] sm:$0xff]  ;;  %v9815_v42 = vld [vmem:[%s14810_s0 + $0xd9] sm:$0xff]  ;;  %v9829_v44 = vld [vmem:[%s14810_s0 + $0xe1] sm:$0xff] }
  0x10   :  { %v134_v45 = vld [vmem:[%s14810_s0 + $0x2a1] sm:$0xff]  ;;  %v9837_v46 = vld [vmem:[%s14810_s0 + $0xf1] sm:$0xff]  ;;  %v135_v47 = vld [vmem:[%s14810_s0 + $0x2a9] sm:$0xff] }
  0x11   :  { %8736 = vmatmul.mubr.msk.f32.gmra.mxu1 %vm148_vm1, %v121_v17  ;;  %v9851_v48 = vld [vmem:[%s14810_s0 + $0xf9] sm:$0xff]  ;;  %v9859_v50 = vld [vmem:[%s14810_s0 + $0x109] sm:$0xff]  ;;  %v137_v51 = vld [vmem:[%s14810_s0 + $0x2c1] sm:$0xff] }
  0x12   :  { %8688 = vmatmul.mubr.msk.f32.gmra.mxu0 %vm148_vm1, %v9683_v18  ;;  %8738 = vmatprep.mubr.msk.f32.mxu1 %vm148_vm1, %v122_v19  ;;  %v136_v49 = vld [vmem:[%s14810_s0 + $0x2b9] sm:$0xff]  ;;  %v9873_v52 = vld [vmem:[%s14810_s0 + $0x111] sm:$0xff]  ;;  %v9881_v54 = vld [vmem:[%s14810_s0 + $0x121] sm:$0xff] }
  0x13   :  { %8690 = vmatprep.mubr.msk.f32.mxu0 %vm148_vm1, %v9691_v20  ;;  %v138_v53 = vld [vmem:[%s14810_s0 + $0x2d1] sm:$0xff]  ;;  %v139_v55 = vld [vmem:[%s14810_s0 + $0x2d9] sm:$0xff]  ;;  %v9895_v56 = vld [vmem:[%s14810_s0 + $0x129] sm:$0xff] }
  0x14   :  { %v140_v57 = vld [vmem:[%s14810_s0 + $0x2e9] sm:$0xff]  ;;  %v9903_v58 = vld [vmem:[%s14810_s0 + $0x139] sm:$0xff]  ;;  %v141_v59 = vld [vmem:[%s14810_s0 + $0x2f1] sm:$0xff] }
  0x15   :  { %8739 = vmatmul.mubr.msk.f32.gmra.mxu1 %vm148_vm1, %v123_v21  ;;  %v9917_v60 = vld [vmem:[%s14810_s0 + $0x141] sm:$0xff]  ;;  %v9925_v62 = vld [vmem:[%s14810_s0 + $0x151] sm:$0xff]  ;;  %v143_v63 = vld [vmem:[%s14810_s0 + $0x309] sm:$0xff] }
  0x16   :  { %8691 = vmatmul.mubr.msk.f32.gmra.mxu0 %vm148_vm1, %v9705_v22  ;;  %8741 = vmatprep.mubr.msk.f32.mxu1 %vm148_vm1, %v124_v23  ;;  %v142_v61 = vld [vmem:[%s14810_s0 + $0x301] sm:$0xff]  ;;  %v9939_v0 = vld [vmem:[%s14810_s0 + $0x159] sm:$0xff]  ;;  %v9947_v2 = vld [vmem:[%s14810_s0 + $0x169] sm:$0xff] }
  0x17   :  { %8693 = vmatprep.mubr.msk.f32.mxu0 %vm148_vm1, %v9713_v24  ;;  %14917 = vst [vmem:[#allocation2_spill] sm:$0xff] %v9939_v0  ;;  %v144_v1 = vld [vmem:[%s14810_s0 + $0x319] sm:$0xff]  ;;  %14918 = vst [vmem:[#allocation3_spill] sm:$0xff] %v9947_v2  ;;  %v145_v3 = vld [vmem:[%s14810_s0 + $0x321] sm:$0xff] }
  0x18   :  { %v9961_v4 = vld [vmem:[%s14810_s0 + $0x171] sm:$0xff]  ;;  %v17_v5 = vld [vmem:[%s14810_s0] sm:$0xff]  ;;  %v18_v7 = vld [vmem:[%s14810_s0 + $0x8] sm:$0xff] }
  0x19   :  { %8742 = vmatmul.mubr.msk.f32.gmra.mxu1 %vm148_vm1, %v125_v25  ;;  %14919 = vst [vmem:[#allocation4_spill] sm:$0xff] %v9961_v4  ;;  %v1310_v6 = vld [vmem:[%s14810_s0 + $0x2] sm:$0xff]  ;;  %v1311_v9 = vld [vmem:[%s14810_s0 + $0xa] sm:$0xff]  ;;  %v9983_v11 = vld [vmem:[%s14810_s0 + $0x18] sm:$0xff] }
  0x1a   :  { %8694 = vmatmul.mubr.msk.f32.gmra.mxu0 %vm148_vm1, %v9727_v26  ;;  %8744 = vmatprep.mubr.msk.f32.mxu1 %vm148_vm1, %v126_v27  ;;  %v1312_v13 = vld [vmem:[%s14810_s0 + $0x1a] sm:$0xff]  ;;  %v9992_v15 = vld [vmem:[%s14809_s1 + $0x14] sm:$0xf]  ;;  %v1313_v19 = vld [vmem:[%s14810_s0 + $0x22] sm:$0xff] }
  0x1b   :  { %8696 = vmatprep.mubr.msk.f32.mxu0 %vm148_vm1, %v9735_v28  ;;  %v10000_v17 = vld [vmem:[%s14810_s0 + $0x20] sm:$0xff]  ;;  %v10012_v21 = vld [vmem:[%s14810_s0 + $0x30] sm:$0xff]  ;;  %v10017_v23 = vld [vmem:[%s14809_s1 + $0x18] sm:$0xf] }
  0x1c   :  { %v1314_v25 = vld [vmem:[%s14810_s0 + $0x32] sm:$0xff] }
  0x1d   :  { %8745 = vmatmul.mubr.msk.f32.gmra.mxu1 %vm148_vm1, %v127_v31  ;;  %v10035_v27 = vld [vmem:[%s14810_s0 + $0x38] sm:$0xff]  ;;  %v1316_v31 = vld [vmem:[%s14810_s0 + $0x4a] sm:$0xff] }
  0x1e   :  { %8697 = vmatmul.mubr.msk.f32.gmra.mxu0 %vm148_vm1, %v9761_v32  ;;  %8747 = vmatprep.mubr.msk.f32.mxu1 %vm148_vm1, %v128_v33  ;;  %v10057_v33 = vld [vmem:[%s14810_s0 + $0x50] sm:$0xff] }
  0x1f   :  { %8699 = vmatprep.mubr.msk.f32.mxu0 %vm148_vm1, %v9771_v34 }
  0x21   :  { %8748 = vmatmul.mubr.msk.f32.gmra.mxu1 %vm148_vm1, %v129_v35  ;;  %v1317_v35 = vld [vmem:[%s14810_s0 + $0x52] sm:$0xff] }
  0x22   :  { %8700 = vmatmul.mubr.msk.f32.gmra.mxu0 %vm148_vm1, %v9785_v36  ;;  %8750 = vmatprep.mubr.msk.f32.mxu1 %vm148_vm1, %v130_v37  ;;  %v10066_v37 = vld [vmem:[%s14810_s0 + $0x60] sm:$0xff] }
  0x23   :  { %8702 = vmatprep.mubr.msk.f32.mxu0 %vm148_vm1, %v9793_v38 }
  0x25   :  { %8751 = vmatmul.mubr.msk.f32.gmra.mxu1 %vm148_vm1, %v131_v39  ;;  %v1318_v39 = vld [vmem:[%s14810_s0 + $0x62] sm:$0xff] }
  0x26   :  { %8703 = vmatmul.mubr.msk.f32.gmra.mxu0 %vm148_vm1, %v9807_v40  ;;  %8753 = vmatprep.mubr.msk.f32.mxu1 %vm148_vm1, %v132_v41  ;;  %v10079_v41 = vld [vmem:[%s14810_s0 + $0x68] sm:$0xff] }
  0x27   :  { %8705 = vmatprep.mubr.msk.f32.mxu0 %vm148_vm1, %v9815_v42 }
  0x29   :  { %8754 = vmatmul.mubr.msk.f32.gmra.mxu1 %vm148_vm1, %v133_v43  ;;  %v1319_v43 = vld [vmem:[%s14810_s0 + $0x6a] sm:$0xff] }
  0x2a   :  { %8706 = vmatmul.mubr.msk.f32.gmra.mxu0 %vm148_vm1, %v9829_v44  ;;  %8756 = vmatprep.mubr.msk.f32.mxu1 %vm148_vm1, %v134_v45  ;;  %v10088_v45 = vld [vmem:[%s14810_s0 + $0x78] sm:$0xff] }
  0x2b   :  { %8708 = vmatprep.mubr.msk.f32.mxu0 %vm148_vm1, %v9837_v46 }
  0x2d   :  { %8757 = vmatmul.mubr.msk.f32.gmra.mxu1 %vm148_vm1, %v135_v47  ;;  %v1320_v47 = vld [vmem:[%s14810_s0 + $0x7a] sm:$0xff] }
  0x2e   :  { %8709 = vmatmul.mubr.msk.f32.gmra.mxu0 %vm148_vm1, %v9851_v48  ;;  %8759 = vmatprep.mubr.msk.f32.mxu1 %vm148_vm1, %v136_v49  ;;  %v10101_v49 = vld [vmem:[%s14810_s0 + $0x80] sm:$0xff] }
  0x2f   :  { %8711 = vmatprep.mubr.msk.f32.mxu0 %vm148_vm1, %v9859_v50 }
  0x31   :  { %8760 = vmatmul.mubr.msk.f32.gmra.mxu1 %vm148_vm1, %v137_v51  ;;  %v1321_v51 = vld [vmem:[%s14810_s0 + $0x82] sm:$0xff] }
  0x32   :  { %8712 = vmatmul.mubr.msk.f32.gmra.mxu0 %vm148_vm1, %v9873_v52  ;;  %8762 = vmatprep.mubr.msk.f32.mxu1 %vm148_vm1, %v138_v53  ;;  %v10110_v53 = vld [vmem:[%s14810_s0 + $0x90] sm:$0xff] }
  0x33   :  { %8714 = vmatprep.mubr.msk.f32.mxu0 %vm148_vm1, %v9881_v54 }
  0x35   :  { %8763 = vmatmul.mubr.msk.f32.gmra.mxu1 %vm148_vm1, %v139_v55  ;;  %v1322_v55 = vld [vmem:[%s14810_s0 + $0x92] sm:$0xff] }
  0x36   :  { %8715 = vmatmul.mubr.msk.f32.gmra.mxu0 %vm148_vm1, %v9895_v56  ;;  %8765 = vmatprep.mubr.msk.f32.mxu1 %vm148_vm1, %v140_v57  ;;  %v10123_v57 = vld [vmem:[%s14810_s0 + $0x98] sm:$0xff] }
  0x37   :  { %8717 = vmatprep.mubr.msk.f32.mxu0 %vm148_vm1, %v9903_v58 }
  0x39   :  { %8766 = vmatmul.mubr.msk.f32.gmra.mxu1 %vm148_vm1, %v141_v59  ;;  %v1323_v59 = vld [vmem:[%s14810_s0 + $0x9a] sm:$0xff] }
  0x3a   :  { %8718 = vmatmul.mubr.msk.f32.gmra.mxu0 %vm148_vm1, %v9917_v60  ;;  %8768 = vmatprep.mubr.msk.f32.mxu1 %vm148_vm1, %v142_v61  ;;  %v10132_v61 = vld [vmem:[%s14810_s0 + $0xa8] sm:$0xff] }
  0x3b   :  { %8720 = vmatprep.mubr.msk.f32.mxu0 %vm148_vm1, %v9925_v62 }
  0x3d   :  { %8769 = vmatmul.mubr.msk.f32.gmra.mxu1 %vm148_vm1, %v143_v63  ;;  %v1324_v63 = vld [vmem:[%s14810_s0 + $0xaa] sm:$0xff] }
  0x3e   :  { %8721 = vmatmul.mubr.msk.f32.gmra.mxu0 %vm148_vm1, %v9939_v0  ;;  %8771 = vmatprep.mubr.msk.f32.mxu1 %vm148_vm1, %v144_v1  ;;  %v10145_v1 = vld [vmem:[%s14810_s0 + $0xb0] sm:$0xff]  ;;  %v10347_v0 = vld [vmem:[%s14810_s0 + $0x1c8] sm:$0xff] }
  0x3f   :  { %8723 = vmatprep.mubr.msk.f32.mxu0 %vm148_vm1, %v9947_v2  ;;  %v49_v2 = vld [vmem:[%s14810_s0 + $0x1b0] sm:$0xff]  ;;  %14921 = vst [vmem:[#allocation6_spill] sm:$0xff] %v10347_v0 }
  0x41   :  { %8772 = vmatmul.mubr.msk.f32.gmra.mxu1 %vm148_vm1, %v145_v3  ;;  %v1325_v3 = vld [vmem:[%s14810_s0 + $0xb2] sm:$0xff] }
  0x42   :  { %8724 = vmatmul.mubr.msk.f32.gmra.mxu0 %vm148_vm1, %v9961_v4  ;;  %8776 = vmatprep.mubr.msk.f32.mxu1 %vm148_vm1, %v17_v5  ;;  %v10154_v5 = vld [vmem:[%s14810_s0 + $0xc0] sm:$0xff]  ;;  %v1341_v4 = vld [vmem:[%s14810_s0 + $0x172] sm:$0xff] }
  0x43   :  { %8874 = vmatprep.mubr.msk.f32.mxu0 %vm148_vm1, %v1310_v6  ;;  %v1326_v6 = vld [vmem:[%s14810_s0 + $0xc2] sm:$0xff] }
  0x45   :  { %8777 = vmatmul.mubr.msk.f32.vlgmr.msra.gmra.mxu1 %vm148_vm1, %v18_v7  ;;  %v10167_v7 = vld [vmem:[%s14810_s0 + $0xc8] sm:$0xff] }
  0x46   :  { %8875 = vmatmul.mubr.msk.f32.vlgmr.msra.gmra.mxu0 %vm148_vm1, %v1311_v9  ;;  %8971 = vmatpush3.msk.msra.mxu1 %vm341_vm0, %v9740_v29  ;;  %v1315_v29 = vld [vmem:[%s14810_s0 + $0x3a] sm:$0xff]  ;;  %v1327_v9 = vld [vmem:[%s14810_s0 + $0xca] sm:$0xff] }
  0x47   :  { %8779 = vmatprep.mubr.msk.f32.mxu1 %vm148_vm1, %v9983_v11  ;;  %9069 = vmatpush3.msk.msra.mxu0 %vm341_vm0, %v9748_v30  ;;  %v10044_v30 = vld [vmem:[%s14810_s0 + $0x48] sm:$0xff] }
  0x48   :  { %8877 = vmatprep.mubr.msk.f32.mxu0 %vm148_vm1, %v1312_v13  ;;  %9166 = vmatprep.subr.msk.mxu1 %vm341_vm0, %v9992_v15  ;;  %v10176_v13 = vld [vmem:[%s14810_s0 + $0xd8] sm:$0xff] }
  0x49   :  { %8780 = vmatmul.mubr.msk.f32.gmra.mxu1 %vm148_vm1, %v10000_v17  ;;  %9264 = vmatprep.subr.msk.mxu0 %vm341_vm0, %v10017_v23 }
  0x4a   :  { %8878 = vmatmul.mubr.msk.f32.gmra.mxu0 %vm148_vm1, %v1313_v19  ;;  %8782 = vmatprep.mubr.msk.f32.mxu1 %vm148_vm1, %v10012_v21  ;;  %v1328_v19 = vld [vmem:[%s14810_s0 + $0xda] sm:$0xff] }
  0x4b   :  { %8880 = vmatprep.mubr.msk.f32.mxu0 %vm148_vm1, %v1314_v25  ;;  %v10189_v25 = vld [vmem:[%s14810_s0 + $0xe0] sm:$0xff] }
  0x4d   :  { %8783 = vmatmul.mubr.msk.f32.gmra.mxu1 %vm148_vm1, %v10035_v27 }
  0x4e   :  { %8881 = vmatmul.mubr.msk.f32.gmra.mxu0 %vm148_vm1, %v1315_v29  ;;  %8785 = vmatprep.mubr.msk.f32.mxu1 %vm148_vm1, %v10044_v30  ;;  %v1329_v29 = vld [vmem:[%s14810_s0 + $0xe2] sm:$0xff] }
  0x4f   :  { %8883 = vmatprep.mubr.msk.f32.mxu0 %vm148_vm1, %v1316_v31  ;;  %v10198_v31 = vld [vmem:[%s14810_s0 + $0xf0] sm:$0xff] }
  0x51   :  { %8786 = vmatmul.mubr.msk.f32.gmra.mxu1 %vm148_vm1, %v10057_v33 }
  0x52   :  { %8884 = vmatmul.mubr.msk.f32.gmra.mxu0 %vm148_vm1, %v1317_v35  ;;  %8788 = vmatprep.mubr.msk.f32.mxu1 %vm148_vm1, %v10066_v37  ;;  %v1330_v35 = vld [vmem:[%s14810_s0 + $0xf2] sm:$0xff] }
  0x53   :  { %8886 = vmatprep.mubr.msk.f32.mxu0 %vm148_vm1, %v1318_v39  ;;  %v10211_v39 = vld [vmem:[%s14810_s0 + $0xf8] sm:$0xff] }
  0x55   :  { %8789 = vmatmul.mubr.msk.f32.gmra.mxu1 %vm148_vm1, %v10079_v41 }
  0x56   :  { %8887 = vmatmul.mubr.msk.f32.gmra.mxu0 %vm148_vm1, %v1319_v43  ;;  %8791 = vmatprep.mubr.msk.f32.mxu1 %vm148_vm1, %v10088_v45  ;;  %v1331_v43 = vld [vmem:[%s14810_s0 + $0xfa] sm:$0xff] }
  0x57   :  { %8889 = vmatprep.mubr.msk.f32.mxu0 %vm148_vm1, %v1320_v47  ;;  %v10220_v47 = vld [vmem:[%s14810_s0 + $0x108] sm:$0xff] }
  0x59   :  { %8792 = vmatmul.mubr.msk.f32.gmra.mxu1 %vm148_vm1, %v10101_v49 }
  0x5a   :  { %8890 = vmatmul.mubr.msk.f32.gmra.mxu0 %vm148_vm1, %v1321_v51  ;;  %8794 = vmatprep.mubr.msk.f32.mxu1 %vm148_vm1, %v10110_v53  ;;  %v1332_v51 = vld [vmem:[%s14810_s0 + $0x10a] sm:$0xff] }
  0x5b   :  { %8892 = vmatprep.mubr.msk.f32.mxu0 %vm148_vm1, %v1322_v55  ;;  %v10233_v55 = vld [vmem:[%s14810_s0 + $0x110] sm:$0xff] }
  0x5d   :  { %8795 = vmatmul.mubr.msk.f32.gmra.mxu1 %vm148_vm1, %v10123_v57 }
  0x5e   :  { %8893 = vmatmul.mubr.msk.f32.gmra.mxu0 %vm148_vm1, %v1323_v59  ;;  %8797 = vmatprep.mubr.msk.f32.mxu1 %vm148_vm1, %v10132_v61  ;;  %v1333_v59 = vld [vmem:[%s14810_s0 + $0x112] sm:$0xff] }
  0x5f   :  { %8895 = vmatprep.mubr.msk.f32.mxu0 %vm148_vm1, %v1324_v63  ;;  %v10242_v63 = vld [vmem:[%s14810_s0 + $0x120] sm:$0xff] }
  0x61   :  { %8798 = vmatmul.mubr.msk.f32.gmra.mxu1 %vm148_vm1, %v10145_v1 }
  0x62   :  { %8896 = vmatmul.mubr.msk.f32.gmra.mxu0 %vm148_vm1, %v1325_v3  ;;  %8800 = vmatprep.mubr.msk.f32.mxu1 %vm148_vm1, %v10154_v5  ;;  %v1334_v3 = vld [vmem:[%s14810_s0 + $0x122] sm:$0xff] }
  0x63   :  { %8898 = vmatprep.mubr.msk.f32.mxu0 %vm148_vm1, %v1326_v6  ;;  %v10255_v6 = vld [vmem:[%s14810_s0 + $0x128] sm:$0xff] }
  0x65   :  { %8801 = vmatmul.mubr.msk.f32.gmra.mxu1 %vm148_vm1, %v10167_v7 }
  0x66   :  { %8899 = vmatmul.mubr.msk.f32.gmra.mxu0 %vm148_vm1, %v1327_v9  ;;  %8803 = vmatprep.mubr.msk.f32.mxu1 %vm148_vm1, %v10176_v13  ;;  %v1335_v9 = vld [vmem:[%s14810_s0 + $0x12a] sm:$0xff] }
  0x67   :  { %8901 = vmatprep.mubr.msk.f32.mxu0 %vm148_vm1, %v1328_v19  ;;  %v10264_v19 = vld [vmem:[%s14810_s0 + $0x138] sm:$0xff] }
  0x69   :  { %8804 = vmatmul.mubr.msk.f32.gmra.mxu1 %vm148_vm1, %v10189_v25 }
  0x6a   :  { %8902 = vmatmul.mubr.msk.f32.gmra.mxu0 %vm148_vm1, %v1329_v29  ;;  %8806 = vmatprep.mubr.msk.f32.mxu1 %vm148_vm1, %v10198_v31  ;;  %v1336_v29 = vld [vmem:[%s14810_s0 + $0x13a] sm:$0xff] }
  0x6b   :  { %8904 = vmatprep.mubr.msk.f32.mxu0 %vm148_vm1, %v1330_v35  ;;  %v10277_v35 = vld [vmem:[%s14810_s0 + $0x140] sm:$0xff] }
  0x6d   :  { %8807 = vmatmul.mubr.msk.f32.gmra.mxu1 %vm148_vm1, %v10211_v39 }
  0x6e   :  { %8905 = vmatmul.mubr.msk.f32.gmra.mxu0 %vm148_vm1, %v1331_v43  ;;  %8809 = vmatprep.mubr.msk.f32.mxu1 %vm148_vm1, %v10220_v47  ;;  %v1337_v43 = vld [vmem:[%s14810_s0 + $0x142] sm:$0xff] }
  0x6f   :  { %8907 = vmatprep.mubr.msk.f32.mxu0 %vm148_vm1, %v1332_v51  ;;  %v10286_v51 = vld [vmem:[%s14810_s0 + $0x150] sm:$0xff] }
  0x71   :  { %8810 = vmatmul.mubr.msk.f32.gmra.mxu1 %vm148_vm1, %v10233_v55 }
  0x72   :  { %8908 = vmatmul.mubr.msk.f32.gmra.mxu0 %vm148_vm1, %v1333_v59  ;;  %8812 = vmatprep.mubr.msk.f32.mxu1 %vm148_vm1, %v10242_v63  ;;  %v1338_v59 = vld [vmem:[%s14810_s0 + $0x152] sm:$0xff] }
  0x73   :  { %8910 = vmatprep.mubr.msk.f32.mxu0 %vm148_vm1, %v1334_v3  ;;  %v10299_v3 = vld [vmem:[%s14810_s0 + $0x158] sm:$0xff] }
  0x75   :  { %8813 = vmatmul.mubr.msk.f32.gmra.mxu1 %vm148_vm1, %v10255_v6 }
  0x76   :  { %8911 = vmatmul.mubr.msk.f32.gmra.mxu0 %vm148_vm1, %v1335_v9  ;;  %8815 = vmatprep.mubr.msk.f32.mxu1 %vm148_vm1, %v10264_v19  ;;  %v1339_v9 = vld [vmem:[%s14810_s0 + $0x15a] sm:$0xff] }
  0x77   :  { %8913 = vmatprep.mubr.msk.f32.mxu0 %vm148_vm1, %v1336_v29  ;;  %v10308_v29 = vld [vmem:[%s14810_s0 + $0x168] sm:$0xff] }
  0x78   :  { %14920 = vst [vmem:[#allocation5_spill] sm:$0xff] %v10308_v29 }
  0x79   :  { %8816 = vmatmul.mubr.msk.f32.gmra.mxu1 %vm148_vm1, %v10277_v35 }
  0x7a   :  { %8914 = vmatmul.mubr.msk.f32.gmra.mxu0 %vm148_vm1, %v1337_v43  ;;  %8818 = vmatprep.mubr.msk.f32.mxu1 %vm148_vm1, %v10286_v51  ;;  %v1340_v43 = vld [vmem:[%s14810_s0 + $0x16a] sm:$0xff] }
  0x7b   :  { %8916 = vmatprep.mubr.msk.f32.mxu0 %vm148_vm1, %v1338_v59  ;;  %v10321_v59 = vld [vmem:[%s14810_s0 + $0x170] sm:$0xff] }
  0x7d   :  { %8819 = vmatmul.mubr.msk.f32.gmra.mxu1 %vm148_vm1, %v10299_v3 }
  0x7e   :  { %8917 = vmatmul.mubr.msk.f32.gmra.mxu0 %vm148_vm1, %v1339_v9  ;;  %8821 = vmatprep.mubr.msk.f32.mxu1 %vm148_vm1, %v10308_v29  ;;  %v1342_v9 = vld [vmem:[%s14810_s0 + $0x1b2] sm:$0xff]  ;;  %v1343_v29 = vld [vmem:[%s14810_s0 + $0x1ba] sm:$0xff] }
  0x7f   :  { %8919 = vmatprep.mubr.msk.f32.mxu0 %vm148_vm1, %v1340_v43  ;;  %v50_v43 = vld [vmem:[%s14810_s0 + $0x1b8] sm:$0xff] }
  0x81   :  { %8822 = vmatmul.mubr.msk.f32.gmra.mxu1 %vm148_vm1, %v10321_v59 }
  0x82   :  { %8920 = vmatmul.mubr.msk.f32.gmra.mxu0 %vm148_vm1, %v1341_v4  ;;  %8824 = vmatprep.mubr.msk.f32.mxu1 %vm148_vm1, %v49_v2  ;;  %v1344_v4 = vld [vmem:[%s14810_s0 + $0x1ca] sm:$0xff] }
  0x83   :  { %8922 = vmatprep.mubr.msk.f32.mxu0 %vm148_vm1, %v1342_v9  ;;  %v10359_v2 = vld [vmem:[%s14810_s0 + $0x1d0] sm:$0xff] }
  0x84   :  { %14922 = vst [vmem:[#allocation7_spill] sm:$0xff] %v10359_v2  ;;  %v1345_v9 = vld [vmem:[%s14810_s0 + $0x1d2] sm:$0xff] }
  0x85   :  { %8825 = vmatmul.mubr.msk.f32.gmra.mxu1 %vm148_vm1, %v50_v43  ;;  %v10368_v43 = vld [vmem:[%s14810_s0 + $0x1e0] sm:$0xff] }
  0x86   :  { %8923 = vmatmul.mubr.msk.f32.gmra.mxu0 %vm148_vm1, %v1343_v29  ;;  %8827 = vmatprep.mubr.msk.f32.mxu1 %vm148_vm1, %v10347_v0  ;;  %14923 = vst [vmem:[#allocation8_spill] sm:$0xff] %v10368_v43  ;;  %v1346_v29 = vld [vmem:[%s14810_s0 + $0x1e2] sm:$0xff]  ;;  %v1347_v0 = vld [vmem:[%s14810_s0 + $0x1ea] sm:$0xff] }
  0x87   :  { %8925 = vmatprep.mubr.msk.f32.mxu0 %vm148_vm1, %v1344_v4  ;;  %v10381_v4 = vld [vmem:[%s14810_s0 + $0x1e8] sm:$0xff] }
  0x88   :  { %14924 = vst [vmem:[#allocation9_spill] sm:$0xff] %v10381_v4 }
  0x89   :  { %8828 = vmatmul.mubr.msk.f32.gmra.mxu1 %vm148_vm1, %v10359_v2  ;;  %v10390_v2 = vld [vmem:[%s14810_s0 + $0x1f8] sm:$0xff] }
  0x8a   :  { %8926 = vmatmul.mubr.msk.f32.gmra.mxu0 %vm148_vm1, %v1345_v9  ;;  %8830 = vmatprep.mubr.msk.f32.mxu1 %vm148_vm1, %v10368_v43  ;;  %14925 = vst [vmem:[#allocation10_spill] sm:$0xff] %v10390_v2  ;;  %v1348_v9 = vld [vmem:[%s14810_s0 + $0x1fa] sm:$0xff]  ;;  %v1349_v43 = vld [vmem:[%s14810_s0 + $0x202] sm:$0xff] }
  0x8b   :  { %8928 = vmatprep.mubr.msk.f32.mxu0 %vm148_vm1, %v1346_v29  ;;  %v10403_v29 = vld [vmem:[%s14810_s0 + $0x200] sm:$0xff] }
  0x8c   :  { %14926 = vst [vmem:[#allocation11_spill] sm:$0xff] %v10403_v29 }
  0x8d   :  { %8831 = vmatmul.mubr.msk.f32.gmra.mxu1 %vm148_vm1, %v10381_v4  ;;  %v10412_v4 = vld [vmem:[%s14810_s0 + $0x210] sm:$0xff] }
  0x8e   :  { %8929 = vmatmul.mubr.msk.f32.gmra.mxu0 %vm148_vm1, %v1347_v0  ;;  %8833 = vmatprep.mubr.msk.f32.mxu1 %vm148_vm1, %v10390_v2  ;;  %14927 = vst [vmem:[#allocation12_spill] sm:$0xff] %v10412_v4  ;;  %v1350_v0 = vld [vmem:[%s14810_s0 + $0x212] sm:$0xff]  ;;  %v1351_v2 = vld [vmem:[%s14810_s0 + $0x21a] sm:$0xff] }
  0x8f   :  { %8931 = vmatprep.mubr.msk.f32.mxu0 %vm148_vm1, %v1348_v9  ;;  %v10425_v9 = vld [vmem:[%s14810_s0 + $0x218] sm:$0xff] }
  0x90   :  { %14928 = vst [vmem:[#allocation13_spill] sm:$0xff] %v10425_v9 }
  0x91   :  { %8834 = vmatmul.mubr.msk.f32.gmra.mxu1 %vm148_vm1, %v10403_v29  ;;  %v10434_v29 = vld [vmem:[%s14810_s0 + $0x228] sm:$0xff] }
  0x92   :  { %8932 = vmatmul.mubr.msk.f32.gmra.mxu0 %vm148_vm1, %v1349_v43  ;;  %8836 = vmatprep.mubr.msk.f32.mxu1 %vm148_vm1, %v10412_v4  ;;  %14929 = vst [vmem:[#allocation14_spill] sm:$0xff] %v10434_v29  ;;  %v1352_v43 = vld [vmem:[%s14810_s0 + $0x22a] sm:$0xff]  ;;  %v1353_v4 = vld [vmem:[%s14810_s0 + $0x232] sm:$0xff] }
  0x93   :  { %8934 = vmatprep.mubr.msk.f32.mxu0 %vm148_vm1, %v1350_v0  ;;  %v10447_v0 = vld [vmem:[%s14810_s0 + $0x230] sm:$0xff] }
  0x94   :  { %14930 = vst [vmem:[#allocation15_spill] sm:$0xff] %v10447_v0 }
  0x95   :  { %8837 = vmatmul.mubr.msk.f32.gmra.mxu1 %vm148_vm1, %v10425_v9  ;;  %v10456_v9 = vld [vmem:[%s14810_s0 + $0x240] sm:$0xff] }
  0x96   :  { %8935 = vmatmul.mubr.msk.f32.gmra.mxu0 %vm148_vm1, %v1351_v2  ;;  %8839 = vmatprep.mubr.msk.f32.mxu1 %vm148_vm1, %v10434_v29  ;;  %14931 = vst [vmem:[#allocation16_spill] sm:$0xff] %v10456_v9  ;;  %v1354_v2 = vld [vmem:[%s14810_s0 + $0x242] sm:$0xff]  ;;  %v1355_v29 = vld [vmem:[%s14810_s0 + $0x24a] sm:$0xff] }
  0x97   :  { %8937 = vmatprep.mubr.msk.f32.mxu0 %vm148_vm1, %v1352_v43  ;;  %v10469_v43 = vld [vmem:[%s14810_s0 + $0x248] sm:$0xff] }
  0x98   :  { %14932 = vst [vmem:[#allocation17_spill] sm:$0xff] %v10469_v43 }
  0x99   :  { %8840 = vmatmul.mubr.msk.f32.gmra.mxu1 %vm148_vm1, %v10447_v0  ;;  %v10478_v0 = vld [vmem:[%s14810_s0 + $0x258] sm:$0xff] }
  0x9a   :  { %8938 = vmatmul.mubr.msk.f32.gmra.mxu0 %vm148_vm1, %v1353_v4  ;;  %8842 = vmatprep.mubr.msk.f32.mxu1 %vm148_vm1, %v10456_v9  ;;  %14933 = vst [vmem:[#allocation18_spill] sm:$0xff] %v10478_v0  ;;  %v1356_v4 = vld [vmem:[%s14810_s0 + $0x25a] sm:$0xff]  ;;  %v1357_v9 = vld [vmem:[%s14810_s0 + $0x262] sm:$0xff] }
  0x9b   :  { %8940 = vmatprep.mubr.msk.f32.mxu0 %vm148_vm1, %v1354_v2  ;;  %v10491_v2 = vld [vmem:[%s14810_s0 + $0x260] sm:$0xff] }
  0x9c   :  { %14934 = vst [vmem:[#allocation19_spill] sm:$0xff] %v10491_v2 }
  0x9d   :  { %8843 = vmatmul.mubr.msk.f32.gmra.mxu1 %vm148_vm1, %v10469_v43  ;;  %v10500_v43 = vld [vmem:[%s14810_s0 + $0x270] sm:$0xff] }
  0x9e   :  { %8941 = vmatmul.mubr.msk.f32.gmra.mxu0 %vm148_vm1, %v1355_v29  ;;  %8845 = vmatprep.mubr.msk.f32.mxu1 %vm148_vm1, %v10478_v0  ;;  %14935 = vst [vmem:[#allocation20_spill] sm:$0xff] %v10500_v43  ;;  %v1358_v29 = vld [vmem:[%s14810_s0 + $0x272] sm:$0xff]  ;;  %v1359_v0 = vld [vmem:[%s14810_s0 + $0x27a] sm:$0xff] }
  0x9f   :  { %8943 = vmatprep.mubr.msk.f32.mxu0 %vm148_vm1, %v1356_v4  ;;  %v10513_v4 = vld [vmem:[%s14810_s0 + $0x278] sm:$0xff] }
  0xa0   :  { %14936 = vst [vmem:[#allocation21_spill] sm:$0xff] %v10513_v4 }
  0xa1   :  { %8846 = vmatmul.mubr.msk.f32.gmra.mxu1 %vm148_vm1, %v10491_v2  ;;  %v10522_v2 = vld [vmem:[%s14810_s0 + $0x288] sm:$0xff] }
  0xa2   :  { %8944 = vmatmul.mubr.msk.f32.gmra.mxu0 %vm148_vm1, %v1357_v9  ;;  %8848 = vmatprep.mubr.msk.f32.mxu1 %vm148_vm1, %v10500_v43  ;;  %14937 = vst [vmem:[#allocation22_spill] sm:$0xff] %v10522_v2  ;;  %v1360_v9 = vld [vmem:[%s14810_s0 + $0x28a] sm:$0xff]  ;;  %v1361_v43 = vld [vmem:[%s14810_s0 + $0x292] sm:$0xff] }
  0xa3   :  { %8946 = vmatprep.mubr.msk.f32.mxu0 %vm148_vm1, %v1358_v29  ;;  %v10535_v29 = vld [vmem:[%s14810_s0 + $0x290] sm:$0xff] }
  0xa4   :  { %14938 = vst [vmem:[#allocation23_spill] sm:$0xff] %v10535_v29 }
  0xa5   :  { %8849 = vmatmul.mubr.msk.f32.gmra.mxu1 %vm148_vm1, %v10513_v4  ;;  %v10544_v4 = vld [vmem:[%s14810_s0 + $0x2a0] sm:$0xff] }
  0xa6   :  { %8947 = vmatmul.mubr.msk.f32.gmra.mxu0 %vm148_vm1, %v1359_v0  ;;  %8851 = vmatprep.mubr.msk.f32.mxu1 %vm148_vm1, %v10522_v2  ;;  %14939 = vst [vmem:[#allocation24_spill] sm:$0xff] %v10544_v4  ;;  %v1362_v0 = vld [vmem:[%s14810_s0 + $0x2a2] sm:$0xff]  ;;  %v1363_v2 = vld [vmem:[%s14810_s0 + $0x2aa] sm:$0xff] }
  0xa7   :  { %8949 = vmatprep.mubr.msk.f32.mxu0 %vm148_vm1, %v1360_v9  ;;  %v10557_v9 = vld [vmem:[%s14810_s0 + $0x2a8] sm:$0xff] }
  0xa8   :  { %14940 = vst [vmem:[#allocation25_spill] sm:$0xff] %v10557_v9 }
  0xa9   :  { %8852 = vmatmul.mubr.msk.f32.gmra.mxu1 %vm148_vm1, %v10535_v29  ;;  %v10566_v29 = vld [vmem:[%s14810_s0 + $0x2b8] sm:$0xff] }
  0xaa   :  { %8950 = vmatmul.mubr.msk.f32.gmra.mxu0 %vm148_vm1, %v1361_v43  ;;  %8854 = vmatprep.mubr.msk.f32.mxu1 %vm148_vm1, %v10544_v4  ;;  %14941 = vst [vmem:[#allocation26_spill] sm:$0xff] %v10566_v29  ;;  %v1364_v43 = vld [vmem:[%s14810_s0 + $0x2ba] sm:$0xff]  ;;  %v1365_v4 = vld [vmem:[%s14810_s0 + $0x2c2] sm:$0xff] }
  0xab   :  { %8952 = vmatprep.mubr.msk.f32.mxu0 %vm148_vm1, %v1362_v0  ;;  %v10579_v0 = vld [vmem:[%s14810_s0 + $0x2c0] sm:$0xff] }
  0xac   :  { %14942 = vst [vmem:[#allocation27_spill] sm:$0xff] %v10579_v0 }
  0xad   :  { %8855 = vmatmul.mubr.msk.f32.gmra.mxu1 %vm148_vm1, %v10557_v9  ;;  %v10588_v9 = vld [vmem:[%s14810_s0 + $0x2d0] sm:$0xff] }
  0xae   :  { %8953 = vmatmul.mubr.msk.f32.gmra.mxu0 %vm148_vm1, %v1363_v2  ;;  %8857 = vmatprep.mubr.msk.f32.mxu1 %vm148_vm1, %v10566_v29  ;;  %14943 = vst [vmem:[#allocation28_spill] sm:$0xff] %v10588_v9  ;;  %v1366_v2 = vld [vmem:[%s14810_s0 + $0x2d2] sm:$0xff]  ;;  %v1367_v29 = vld [vmem:[%s14810_s0 + $0x2da] sm:$0xff] }
  0xaf   :  { %8955 = vmatprep.mubr.msk.f32.mxu0 %vm148_vm1, %v1364_v43  ;;  %v10601_v43 = vld [vmem:[%s14810_s0 + $0x2d8] sm:$0xff] }
  0xb0   :  { %14944 = vst [vmem:[#allocation29_spill] sm:$0xff] %v10601_v43 }
  0xb1   :  { %8858 = vmatmul.mubr.msk.f32.gmra.mxu1 %vm148_vm1, %v10579_v0  ;;  %v10610_v0 = vld [vmem:[%s14810_s0 + $0x2e8] sm:$0xff] }
  0xb2   :  { %8956 = vmatmul.mubr.msk.f32.gmra.mxu0 %vm148_vm1, %v1365_v4  ;;  %8860 = vmatprep.mubr.msk.f32.mxu1 %vm148_vm1, %v10588_v9  ;;  %14945 = vst [vmem:[#allocation30_spill] sm:$0xff] %v10610_v0  ;;  %v1368_v4 = vld [vmem:[%s14810_s0 + $0x2ea] sm:$0xff]  ;;  %v1369_v9 = vld [vmem:[%s14810_s0 + $0x2f2] sm:$0xff] }
  0xb3   :  { %8958 = vmatprep.mubr.msk.f32.mxu0 %vm148_vm1, %v1366_v2  ;;  %v10623_v2 = vld [vmem:[%s14810_s0 + $0x2f0] sm:$0xff] }
  0xb4   :  { %14946 = vst [vmem:[#allocation31_spill] sm:$0xff] %v10623_v2 }
  0xb5   :  { %8861 = vmatmul.mubr.msk.f32.gmra.mxu1 %vm148_vm1, %v10601_v43  ;;  %v10632_v43 = vld [vmem:[%s14810_s0 + $0x300] sm:$0xff] }
  0xb6   :  { %8959 = vmatmul.mubr.msk.f32.gmra.mxu0 %vm148_vm1, %v1367_v29  ;;  %8863 = vmatprep.mubr.msk.f32.mxu1 %vm148_vm1, %v10610_v0  ;;  %14947 = vst [vmem:[#allocation32_spill] sm:$0xff] %v10632_v43  ;;  %v1370_v29 = vld [vmem:[%s14810_s0 + $0x302] sm:$0xff]  ;;  %v1371_v0 = vld [vmem:[%s14810_s0 + $0x30a] sm:$0xff] }
  0xb7   :  { %8961 = vmatprep.mubr.msk.f32.mxu0 %vm148_vm1, %v1368_v4  ;;  %v10645_v4 = vld [vmem:[%s14810_s0 + $0x308] sm:$0xff] }
  0xb9   :  { %8864 = vmatmul.mubr.msk.f32.gmra.mxu1 %vm148_vm1, %v10623_v2  ;;  %v10654_v2 = vld [vmem:[%s14810_s0 + $0x318] sm:$0xff] }
  0xba   :  { %8962 = vmatmul.mubr.msk.f32.gmra.mxu0 %vm148_vm1, %v1369_v9  ;;  %8866 = vmatprep.mubr.msk.f32.mxu1 %vm148_vm1, %v10632_v43  ;;  %v1372_v9 = vld [vmem:[%s14810_s0 + $0x31a] sm:$0xff]  ;;  %v1373_v43 = vld [vmem:[%s14810_s0 + $0x322] sm:$0xff] }
  0xbb   :  { %8964 = vmatprep.mubr.msk.f32.mxu0 %vm148_vm1, %v1370_v29  ;;  %v10667_v29 = vld [vmem:[%s14810_s0 + $0x320] sm:$0xff] }
  0xbd   :  { %8867 = vmatmul.mubr.msk.f32.gmra.mxu1 %vm148_vm1, %v10645_v4 }
  0xbe   :  { %8965 = vmatmul.mubr.msk.f32.gmra.mxu0 %vm148_vm1, %v1371_v0  ;;  %8869 = vmatprep.mubr.msk.f32.mxu1 %vm148_vm1, %v10654_v2 }
  0xbf   :  { %8967 = vmatprep.mubr.msk.f32.mxu0 %vm148_vm1, %v1372_v9 }
  0xc1   :  { %8870 = vmatmul.mubr.msk.f32.gmra.mxu1 %vm148_vm1, %v10667_v29 }
  0xc2   :  { %8968 = vmatmul.mubr.msk.f32.gmra.mxu0 %vm148_vm1, %v1373_v43  ;;  %8972 = vmatprep.mubr.msk.f32.mxu1 %vm148_vm1, %v9983_v11  ;;  %v10693_v11 = vld [vmem:[%s14809_s1 + $0x1c] sm:$0xf] }
  0xc3   :  { %9070 = vmatprep.mubr.msk.f32.mxu0 %vm148_vm1, %v9624_v8 }
  0xc5   :  { %v10680_v0 = vpop.f32.mrf.mxu1  ;;  %8973 = vmatmul.mubr.msk.f32.vlgmr.msra.gmra.mxu1 %vm148_vm1, %v10000_v17 }
  0xc6   :  { %v10684_v9 = vpop.f32.mrf.mxu0  ;;  %9071 = vmatmul.mubr.msk.f32.vlgmr.msra.gmra.mxu0 %vm148_vm1, %v9636_v10  ;;  %9167 = vmatpush3.msk.msra.mxu1 %vm341_vm0, %v9992_v15  ;;  %v10710_v10 = vld [vmem:[%s14809_s1 + $0x20] sm:$0xf] }
  0xc7   :  { %v10695_v43 = vpop.f32.mrf.mxu1  ;;  %8975 = vmatprep.mubr.msk.f32.mxu1 %vm148_vm1, %v10012_v21  ;;  %9265 = vmatpush3.msk.msra.mxu0 %vm341_vm0, %v10017_v23 }
  0xc8   :  { %v10701_v8 = vpop.f32.mrf.mxu0  ;;  %9073 = vmatprep.mubr.msk.f32.mxu0 %vm148_vm1, %v9647_v12  ;;  %9362 = vmatprep.subr.msk.mxu1 %vm341_vm0, %v10693_v11 }
  0xc9   :  { %v10712_v15 = vpop.f32.mrf.mxu1  ;;  %8976 = vmatmul.mubr.msk.f32.gmra.mxu1 %vm148_vm1, %v10035_v27  ;;  %9460 = vmatprep.subr.msk.mxu0 %vm341_vm0, %v10710_v10 }
  0xca   :  { %v10718_v17 = vpop.f32.mrf.mxu0  ;;  %9074 = vmatmul.mubr.msk.f32.gmra.mxu0 %vm148_vm1, %v9661_v14  ;;  %8978 = vmatprep.mubr.msk.f32.mxu1 %vm148_vm1, %v10044_v30 }
  0xcb   :  { %v10724_v12 = vpop.f32.mrf.mxu1  ;;  %9076 = vmatprep.mubr.msk.f32.mxu0 %vm148_vm1, %v9669_v16 }
  0xcc   :  { %v10728_v21 = vpop.f32.mrf.mxu0 }
  0xcd   :  { %v10730_v23 = vpop.f32.mrf.mxu1  ;;  %8979 = vmatmul.mubr.msk.f32.gmra.mxu1 %vm148_vm1, %v10057_v33 }
  0xce   :  { %v10734_v27 = vpop.f32.mrf.mxu0  ;;  %9077 = vmatmul.mubr.msk.f32.gmra.mxu0 %vm148_vm1, %v9683_v18  ;;  %8981 = vmatprep.mubr.msk.f32.mxu1 %vm148_vm1, %v10066_v37 }
  0xcf   :  { %v10740_v14 = vpop.f32.mrf.mxu1  ;;  %9079 = vmatprep.mubr.msk.f32.mxu0 %vm148_vm1, %v9691_v20 }
  0xd0   :  { %v10744_v16 = vpop.f32.mrf.mxu0 }
  0xd1   :  { %v10746_v30 = vpop.f32.mrf.mxu1  ;;  %8982 = vmatmul.mubr.msk.f32.gmra.mxu1 %vm148_vm1, %v10079_v41 }
  0xd2   :  { %v10750_v33 = vpop.f32.mrf.mxu0  ;;  %9080 = vmatmul.mubr.msk.f32.gmra.mxu0 %vm148_vm1, %v9705_v22  ;;  %8984 = vmatprep.mubr.msk.f32.mxu1 %vm148_vm1, %v10088_v45 }
  0xd3   :  { %v10756_v18 = vpop.f32.mrf.mxu1  ;;  %9082 = vmatprep.mubr.msk.f32.mxu0 %vm148_vm1, %v9713_v24 }
  0xd4   :  { %v10760_v20 = vpop.f32.mrf.mxu0 }
  0xd5   :  { %v10762_v37 = vpop.f32.mrf.mxu1  ;;  %8985 = vmatmul.mubr.msk.f32.gmra.mxu1 %vm148_vm1, %v10101_v49 }
  0xd6   :  { %v10766_v41 = vpop.f32.mrf.mxu0  ;;  %9083 = vmatmul.mubr.msk.f32.gmra.mxu0 %vm148_vm1, %v9727_v26  ;;  %8987 = vmatprep.mubr.msk.f32.mxu1 %vm148_vm1, %v10110_v53 }
  0xd7   :  { %v10772_v22 = vpop.f32.mrf.mxu1  ;;  %9085 = vmatprep.mubr.msk.f32.mxu0 %vm148_vm1, %v9735_v28 }
  0xd8   :  { %v10776_v24 = vpop.f32.mrf.mxu0 }
  0xd9   :  { %v10778_v45 = vpop.f32.mrf.mxu1  ;;  %8988 = vmatmul.mubr.msk.f32.gmra.mxu1 %vm148_vm1, %v10123_v57 }
  0xda   :  { %v10782_v49 = vpop.f32.mrf.mxu0  ;;  %9086 = vmatmul.mubr.msk.f32.gmra.mxu0 %vm148_vm1, %v9761_v32  ;;  %8990 = vmatprep.mubr.msk.f32.mxu1 %vm148_vm1, %v10132_v61 }
  0xdb   :  { %v10788_v26 = vpop.f32.mrf.mxu1  ;;  %9088 = vmatprep.mubr.msk.f32.mxu0 %vm148_vm1, %v9771_v34 }
  0xdc   :  { %v10792_v28 = vpop.f32.mrf.mxu0 }
  0xdd   :  { %v10794_v53 = vpop.f32.mrf.mxu1  ;;  %8991 = vmatmul.mubr.msk.f32.gmra.mxu1 %vm148_vm1, %v10145_v1 }
  0xde   :  { %v10798_v57 = vpop.f32.mrf.mxu0  ;;  %9089 = vmatmul.mubr.msk.f32.gmra.mxu0 %vm148_vm1, %v9785_v36  ;;  %8993 = vmatprep.mubr.msk.f32.mxu1 %vm148_vm1, %v10154_v5 }
  0xdf   :  { %v10804_v32 = vpop.f32.mrf.mxu1  ;;  %9091 = vmatprep.mubr.msk.f32.mxu0 %vm148_vm1, %v9793_v38 }
  0xe0   :  { %v10808_v34 = vpop.f32.mrf.mxu0 }
  0xe1   :  { %v10810_v61 = vpop.f32.mrf.mxu1  ;;  %8994 = vmatmul.mubr.msk.f32.gmra.mxu1 %vm148_vm1, %v10167_v7 }
  0xe2   :  { %v10814_v1 = vpop.f32.mrf.mxu0  ;;  %9092 = vmatmul.mubr.msk.f32.gmra.mxu0 %vm148_vm1, %v9807_v40  ;;  %8996 = vmatprep.mubr.msk.f32.mxu1 %vm148_vm1, %v10176_v13 }
  0xe3   :  { %v10820_v36 = vpop.f32.mrf.mxu1  ;;  %9094 = vmatprep.mubr.msk.f32.mxu0 %vm148_vm1, %v9815_v42 }
  0xe4   :  { %14948 = vst [vmem:[#allocation33_spill] sm:$0xff] %v10820_v36  ;;  %v10824_v38 = vpop.f32.mrf.mxu0 }
  0xe5   :  { %v10826_v5 = vpop.f32.mrf.mxu1  ;;  %8997 = vmatmul.mubr.msk.f32.gmra.mxu1 %vm148_vm1, %v10189_v25 }
  0xe6   :  { %14949 = vst [vmem:[#allocation34_spill] sm:$0xff] %v10826_v5  ;;  %v10830_v7 = vpop.f32.mrf.mxu0  ;;  %9095 = vmatmul.mubr.msk.f32.gmra.mxu0 %vm148_vm1, %v9829_v44  ;;  %8999 = vmatprep.mubr.msk.f32.mxu1 %vm148_vm1, %v10198_v31 }
  0xe7   :  { %v10836_v40 = vpop.f32.mrf.mxu1  ;;  %9097 = vmatprep.mubr.msk.f32.mxu0 %vm148_vm1, %v9837_v46 }
  0xe8   :  { %14950 = vst [vmem:[#allocation35_spill] sm:$0xff] %v10836_v40  ;;  %v10840_v42 = vpop.f32.mrf.mxu0 }
  0xe9   :  { %v10842_v13 = vpop.f32.mrf.mxu1  ;;  %9000 = vmatmul.mubr.msk.f32.gmra.mxu1 %vm148_vm1, %v10211_v39 }
  0xea   :  { %14951 = vst [vmem:[#allocation36_spill] sm:$0xff] %v10842_v13  ;;  %v10846_v25 = vpop.f32.mrf.mxu0  ;;  %9098 = vmatmul.mubr.msk.f32.gmra.mxu0 %vm148_vm1, %v9851_v48  ;;  %9002 = vmatprep.mubr.msk.f32.mxu1 %vm148_vm1, %v10220_v47  ;;  %v7405_v13 = vld [vmem:[%s14810_s0 + $0x1e9] sm:$0xff] }
  0xeb   :  { %v10852_v44 = vpop.f32.mrf.mxu1  ;;  %9100 = vmatprep.mubr.msk.f32.mxu0 %vm148_vm1, %v9859_v50 }
  0xec   :  { %14952 = vst [vmem:[#allocation37_spill] sm:$0xff] %v10852_v44  ;;  %v10856_v46 = vpop.f32.mrf.mxu0  ;;  %v14972_v44 = vld [vmem:[#allocation7_spill] sm:$0xff] }
  0xed   :  { %v10858_v31 = vpop.f32.mrf.mxu1  ;;  %9003 = vmatmul.mubr.msk.f32.gmra.mxu1 %vm148_vm1, %v10233_v55 }
  0xee   :  { %14953 = vst [vmem:[#allocation38_spill] sm:$0xff] %v10858_v31  ;;  %v10862_v39 = vpop.f32.mrf.mxu0  ;;  %9101 = vmatmul.mubr.msk.f32.gmra.mxu0 %vm148_vm1, %v9873_v52  ;;  %9005 = vmatprep.mubr.msk.f32.mxu1 %vm148_vm1, %v10242_v63 }
  0xef   :  { %v10868_v48 = vpop.f32.mrf.mxu1  ;;  %9103 = vmatprep.mubr.msk.f32.mxu0 %vm148_vm1, %v9881_v54 }
  0xf0   :  { %14954 = vst [vmem:[#allocation39_spill] sm:$0xff] %v10868_v48  ;;  %v10872_v50 = vpop.f32.mrf.mxu0  ;;  %v7403_v48 = vld [vmem:[%s14810_s0 + $0x1d1] sm:$0xff] }
  0xf1   :  { %v10874_v47 = vpop.f32.mrf.mxu1  ;;  %9006 = vmatmul.mubr.msk.f32.gmra.mxu1 %vm148_vm1, %v10255_v6 }
  0xf2   :  { %14955 = vst [vmem:[#allocation40_spill] sm:$0xff] %v10874_v47  ;;  %v10878_v55 = vpop.f32.mrf.mxu0  ;;  %9104 = vmatmul.mubr.msk.f32.gmra.mxu0 %vm148_vm1, %v9895_v56  ;;  %9008 = vmatprep.mubr.msk.f32.mxu1 %vm148_vm1, %v10264_v19 }
  0xf3   :  { %v10884_v52 = vpop.f32.mrf.mxu1  ;;  %9106 = vmatprep.mubr.msk.f32.mxu0 %vm148_vm1, %v9903_v58 }
  0xf4   :  { %14956 = vst [vmem:[#allocation41_spill] sm:$0xff] %v10884_v52  ;;  %v10888_v54 = vpop.f32.mrf.mxu0 }
  0xf5   :  { %v10890_v63 = vpop.f32.mrf.mxu1  ;;  %9009 = vmatmul.mubr.msk.f32.gmra.mxu1 %vm148_vm1, %v10277_v35 }
  0xf6   :  { %14957 = vst [vmem:[#allocation42_spill] sm:$0xff] %v10890_v63  ;;  %v10894_v6 = vpop.f32.mrf.mxu0  ;;  %9107 = vmatmul.mubr.msk.f32.gmra.mxu0 %vm148_vm1, %v9917_v60  ;;  %9011 = vmatprep.mubr.msk.f32.mxu1 %vm148_vm1, %v10286_v51  ;;  %v14960_v63 = vld [vmem:[#allocation2_spill] sm:$0xff]  ;;  %v14961_v60 = vld [vmem:[#allocation5_spill] sm:$0xff] }
  0xf7   :  { %v10900_v56 = vpop.f32.mrf.mxu1  ;;  %9109 = vmatprep.mubr.msk.f32.mxu0 %vm148_vm1, %v9925_v62  ;;  %v10923_v62 = vld [vmem:[%s14810_s0 + $0x180] sm:$0xff] }
  0xf8   :  { %14958 = vst [vmem:[#allocation43_spill] sm:$0xff] %v10900_v56  ;;  %v10904_v58 = vpop.f32.mrf.mxu0  ;;  %v14963_v56 = vld [vmem:[#allocation3_spill] sm:$0xff]  ;;  %14964 = vst [vmem:[#allocation5_spill] sm:$0xff] %v10923_v62 }
  0xf9   :  { %v10906_v19 = vpop.f32.mrf.mxu1  ;;  %9012 = vmatmul.mubr.msk.f32.gmra.mxu1 %vm148_vm1, %v10299_v3  ;;  %v7400_v3 = vld [vmem:[%s14810_s0 + $0x181] sm:$0xff] }
  0xfa   :  { %14959 = vst [vmem:[#allocation44_spill] sm:$0xff] %v10906_v19  ;;  %v10910_v35 = vpop.f32.mrf.mxu0  ;;  %9110 = vmatmul.mubr.msk.f32.gmra.mxu0 %vm148_vm1, %v14960_v63  ;;  %9014 = vmatprep.mubr.msk.f32.mxu1 %vm148_vm1, %v14961_v60 }
  0xfb   :  { %v10916_v51 = vpop.f32.mrf.mxu1  ;;  %9112 = vmatprep.mubr.msk.f32.mxu0 %vm148_vm1, %v14963_v56  ;;  %v10943_v56 = vld [vmem:[%s14810_s0 + $0x188] sm:$0xff] }
  0xfc   :  { %14962 = vst [vmem:[#allocation2_spill] sm:$0xff] %v10916_v51  ;;  %v10925_v19 = vpop.f32.mrf.mxu0  ;;  %v14966_v51 = vld [vmem:[#allocation4_spill] sm:$0xff] }
  0xfd   :  { %v10930_v63 = vpop.f32.mrf.mxu1  ;;  %9015 = vmatmul.mubr.msk.f32.gmra.mxu1 %vm148_vm1, %v10321_v59  ;;  %14967 = vst [vmem:[#allocation4_spill] sm:$0xff] %v10943_v56  ;;  %v7401_v59 = vld [vmem:[%s14810_s0 + $0x189] sm:$0xff] }
  0xfe   :  { %14965 = vst [vmem:[#allocation3_spill] sm:$0xff] %v10930_v63  ;;  %v10934_v60 = vpop.f32.mrf.mxu0  ;;  %9113 = vmatmul.mubr.msk.f32.gmra.mxu0 %vm148_vm1, %v14966_v51  ;;  %9017 = vmatprep.mubr.msk.f32.mxu1 %vm148_vm1, %v10923_v62  ;;  %v7402_v51 = vld [vmem:[%s14810_s0 + $0x1c9] sm:$0xff] }
  0xff   :  { %v10945_v52 = vpop.f32.mrf.mxu1  ;;  %9115 = vmatprep.mubr.msk.f32.mxu0 %vm148_vm1, %v7400_v3  ;;  %v14970_v3 = vld [vmem:[#allocation6_spill] sm:$0xff] }
 0x100   :  { %14968 = vst [vmem:[#allocation45_spill] sm:$0xff] %v10945_v52  ;;  %v10951_v63 = vpop.f32.mrf.mxu0 }
 0x101   :  { %v10956_v62 = vpop.f32.mrf.mxu1  ;;  %9018 = vmatmul.mubr.msk.f32.gmra.mxu1 %vm148_vm1, %v10943_v56 }
 0x102   :  { %14969 = vst [vmem:[#allocation46_spill] sm:$0xff] %v10956_v62  ;;  %v10960_v47 = vpop.f32.mrf.mxu0  ;;  %9116 = vmatmul.mubr.msk.f32.gmra.mxu0 %vm148_vm1, %v7401_v59  ;;  %9020 = vmatprep.mubr.msk.f32.mxu1 %vm148_vm1, %v14970_v3  ;;  %v7404_v62 = vld [vmem:[%s14810_s0 + $0x1e1] sm:$0xff] }
 0x103   :  { %v10965_v52 = vpop.f32.mrf.mxu1  ;;  %9118 = vmatprep.mubr.msk.f32.mxu0 %vm148_vm1, %v7402_v51  ;;  %v14973_v51 = vld [vmem:[#allocation8_spill] sm:$0xff] }
 0x104   :  { %14971 = vst [vmem:[#allocation6_spill] sm:$0xff] %v10965_v52  ;;  %v10971_v31 = vpop.f32.mrf.mxu0 }
 0x105   :  { %v8778_v56 = vpop.f32.mrf.mxu1  ;;  %9021 = vmatmul.mubr.msk.f32.gmra.mxu1 %vm148_vm1, %v14972_v44 }
 0x106   :  { %v997_v59 = vadd.f32 %v8778_v56, %v10684_v9  ;;  %v8876_v3 = vpop.f32.mrf.mxu0  ;;  %9119 = vmatmul.mubr.msk.f32.gmra.mxu0 %vm148_vm1, %v7403_v48  ;;  %9023 = vmatprep.mubr.msk.f32.mxu1 %vm148_vm1, %v14973_v51  ;;  %v7406_v9 = vld [vmem:[%s14810_s0 + $0x1f9] sm:$0xff] }
 0x107   :  { %v991_v52 = vpop.f32.mrf.mxu1  ;;  %9121 = vmatprep.mubr.msk.f32.mxu0 %vm148_vm1, %v7404_v62  ;;  %v14974_v56 = vld [vmem:[#allocation9_spill] sm:$0xff] }
 0x108   :  { %v10986_v40 = vadd.f32 %v8876_v3, %v997_v59  ;;  %v992_v5 = vadd.f32 %v991_v52, %v10701_v8  ;;  %v1637_v44 = vpop.f32.mrf.mxu0  ;;  %v14975_v59 = vld [vmem:[#allocation10_spill] sm:$0xff] }
 0x109   :  { %v8781_v48 = vpop.f32.mrf.mxu1  ;;  %9024 = vmatmul.mubr.msk.f32.gmra.mxu1 %vm148_vm1, %v14974_v56  ;;  %v7407_v52 = vld [vmem:[%s14810_s0 + $0x201] sm:$0xff] }
 0x10a   :  { %v10994_v51 = vadd.f32 %v1637_v44, %v992_v5  ;;  %v1007_v62 = vadd.f32 %v8781_v48, %v10718_v17  ;;  %v8879_v36 = vpop.f32.mrf.mxu0  ;;  %9122 = vmatmul.mubr.msk.f32.gmra.mxu0 %vm148_vm1, %v7405_v13  ;;  %9026 = vmatprep.mubr.msk.f32.mxu1 %vm148_vm1, %v14975_v59  ;;  %v7408_v17 = vld [vmem:[%s14810_s0 + $0x211] sm:$0xff]  ;;  %v14976_v48 = vld [vmem:[#allocation11_spill] sm:$0xff] }
 0x10b   :  { %v1001_v8 = vpop.f32.mrf.mxu1  ;;  %9124 = vmatprep.mubr.msk.f32.mxu0 %vm148_vm1, %v7406_v9 }
 0x10c   :  { %v11004_v3 = vadd.f32 %v8879_v36, %v1007_v62  ;;  %v1002_v5 = vadd.f32 %v1001_v8, %v10728_v21  ;;  %v1647_v44 = vpop.f32.mrf.mxu0  ;;  %v14977_v36 = vld [vmem:[#allocation12_spill] sm:$0xff]  ;;  %v7409_v62 = vld [vmem:[%s14810_s0 + $0x219] sm:$0xff] }
 0x10d   :  { %v8784_v13 = vpop.f32.mrf.mxu1  ;;  %9027 = vmatmul.mubr.msk.f32.gmra.mxu1 %vm148_vm1, %v14976_v48 }
 0x10e   :  { %v11012_v56 = vadd.f32 %v1647_v44, %v1002_v5  ;;  %v1017_v9 = vadd.f32 %v8784_v13, %v10734_v27  ;;  %v8882_v59 = vpop.f32.mrf.mxu0  ;;  %9125 = vmatmul.mubr.msk.f32.gmra.mxu0 %vm148_vm1, %v7407_v52  ;;  %9029 = vmatprep.mubr.msk.f32.mxu1 %vm148_vm1, %v14977_v36  ;;  %v7410_v27 = vld [vmem:[%s14810_s0 + $0x229] sm:$0xff]  ;;  %v14978_v13 = vld [vmem:[#allocation13_spill] sm:$0xff] }
 0x10f   :  { %v1011_v21 = vpop.f32.mrf.mxu1  ;;  %9127 = vmatprep.mubr.msk.f32.mxu0 %vm148_vm1, %v7408_v17 }
 0x110   :  { %v11022_v8 = vadd.f32 %v8882_v59, %v1017_v9  ;;  %v1012_v5 = vadd.f32 %v1011_v21, %v10744_v16  ;;  %v1657_v44 = vpop.f32.mrf.mxu0  ;;  %v14979_v9 = vld [vmem:[#allocation14_spill] sm:$0xff]  ;;  %v7411_v59 = vld [vmem:[%s14810_s0 + $0x231] sm:$0xff] }
 0x111   :  { %v8787_v52 = vpop.f32.mrf.mxu1  ;;  %9030 = vmatmul.mubr.msk.f32.gmra.mxu1 %vm148_vm1, %v14978_v13 }
 0x112   :  { %v11030_v48 = vadd.f32 %v1657_v44, %v1012_v5  ;;  %v1027_v17 = vadd.f32 %v8787_v52, %v10750_v33  ;;  %v8885_v36 = vpop.f32.mrf.mxu0  ;;  %9128 = vmatmul.mubr.msk.f32.gmra.mxu0 %vm148_vm1, %v7409_v62  ;;  %9032 = vmatprep.mubr.msk.f32.mxu1 %vm148_vm1, %v14979_v9  ;;  %v7412_v33 = vld [vmem:[%s14810_s0 + $0x241] sm:$0xff] }
 0x113   :  { %v1021_v16 = vpop.f32.mrf.mxu1  ;;  %9130 = vmatprep.mubr.msk.f32.mxu0 %vm148_vm1, %v7410_v27  ;;  %v14980_v52 = vld [vmem:[#allocation15_spill] sm:$0xff] }
 0x114   :  { %v11040_v21 = vadd.f32 %v8885_v36, %v1027_v17  ;;  %v1022_v5 = vadd.f32 %v1021_v16, %v10760_v20  ;;  %v1667_v44 = vpop.f32.mrf.mxu0  ;;  %v14981_v17 = vld [vmem:[#allocation16_spill] sm:$0xff] }
 0x115   :  { %v8790_v62 = vpop.f32.mrf.mxu1  ;;  %9033 = vmatmul.mubr.msk.f32.gmra.mxu1 %vm148_vm1, %v14980_v52  ;;  %v7413_v36 = vld [vmem:[%s14810_s0 + $0x249] sm:$0xff] }
 0x116   :  { %v11048_v13 = vadd.f32 %v1667_v44, %v1022_v5  ;;  %v1037_v27 = vadd.f32 %v8790_v62, %v10766_v41  ;;  %v8888_v9 = vpop.f32.mrf.mxu0  ;;  %9131 = vmatmul.mubr.msk.f32.gmra.mxu0 %vm148_vm1, %v7411_v59  ;;  %9035 = vmatprep.mubr.msk.f32.mxu1 %vm148_vm1, %v14981_v17  ;;  %v7414_v41 = vld [vmem:[%s14810_s0 + $0x259] sm:$0xff] }
 0x117   :  { %v1031_v20 = vpop.f32.mrf.mxu1  ;;  %9133 = vmatprep.mubr.msk.f32.mxu0 %vm148_vm1, %v7412_v33  ;;  %v14982_v62 = vld [vmem:[#allocation17_spill] sm:$0xff] }
 0x118   :  { %v11058_v16 = vadd.f32 %v8888_v9, %v1037_v27  ;;  %v1032_v5 = vadd.f32 %v1031_v20, %v10776_v24  ;;  %v1677_v44 = vpop.f32.mrf.mxu0  ;;  %v14983_v27 = vld [vmem:[#allocation18_spill] sm:$0xff] }
 0x119   :  { %v8793_v59 = vpop.f32.mrf.mxu1  ;;  %9036 = vmatmul.mubr.msk.f32.gmra.mxu1 %vm148_vm1, %v14982_v62  ;;  %v7415_v9 = vld [vmem:[%s14810_s0 + $0x261] sm:$0xff] }
 0x11a   :  { %v11066_v52 = vadd.f32 %v1677_v44, %v1032_v5  ;;  %v1047_v33 = vadd.f32 %v8793_v59, %v10782_v49  ;;  %v8891_v17 = vpop.f32.mrf.mxu0  ;;  %9134 = vmatmul.mubr.msk.f32.gmra.mxu0 %vm148_vm1, %v7413_v36  ;;  %9038 = vmatprep.mubr.msk.f32.mxu1 %vm148_vm1, %v14983_v27  ;;  %v7416_v49 = vld [vmem:[%s14810_s0 + $0x271] sm:$0xff]  ;;  %v14984_v59 = vld [vmem:[#allocation19_spill] sm:$0xff] }
 0x11b   :  { %v1041_v24 = vpop.f32.mrf.mxu1  ;;  %9136 = vmatprep.mubr.msk.f32.mxu0 %vm148_vm1, %v7414_v41 }
 0x11c   :  { %v11076_v20 = vadd.f32 %v8891_v17, %v1047_v33  ;;  %v1042_v5 = vadd.f32 %v1041_v24, %v10792_v28  ;;  %v1687_v44 = vpop.f32.mrf.mxu0  ;;  %v14985_v33 = vld [vmem:[#allocation20_spill] sm:$0xff]  ;;  %v7417_v17 = vld [vmem:[%s14810_s0 + $0x279] sm:$0xff] }
 0x11d   :  { %v8796_v36 = vpop.f32.mrf.mxu1  ;;  %9039 = vmatmul.mubr.msk.f32.gmra.mxu1 %vm148_vm1, %v14984_v59 }
 0x11e   :  { %v11084_v62 = vadd.f32 %v1687_v44, %v1042_v5  ;;  %v1057_v41 = vadd.f32 %v8796_v36, %v10798_v57  ;;  %v8894_v27 = vpop.f32.mrf.mxu0  ;;  %9137 = vmatmul.mubr.msk.f32.gmra.mxu0 %vm148_vm1, %v7415_v9  ;;  %9041 = vmatprep.mubr.msk.f32.mxu1 %vm148_vm1, %v14985_v33  ;;  %v7418_v57 = vld [vmem:[%s14810_s0 + $0x289] sm:$0xff]  ;;  %v14986_v36 = vld [vmem:[#allocation21_spill] sm:$0xff] }
 0x11f   :  { %v1051_v28 = vpop.f32.mrf.mxu1  ;;  %9139 = vmatprep.mubr.msk.f32.mxu0 %vm148_vm1, %v7416_v49 }
 0x120   :  { %v11094_v24 = vadd.f32 %v8894_v27, %v1057_v41  ;;  %v1052_v5 = vadd.f32 %v1051_v28, %v10808_v34  ;;  %v1697_v44 = vpop.f32.mrf.mxu0  ;;  %v14987_v41 = vld [vmem:[#allocation22_spill] sm:$0xff]  ;;  %v7419_v27 = vld [vmem:[%s14810_s0 + $0x291] sm:$0xff] }
 0x121   :  { %v8799_v9 = vpop.f32.mrf.mxu1  ;;  %9042 = vmatmul.mubr.msk.f32.gmra.mxu1 %vm148_vm1, %v14986_v36 }
 0x122   :  { %v11102_v59 = vadd.f32 %v1697_v44, %v1052_v5  ;;  %v1067_v49 = vadd.f32 %v8799_v9, %v10814_v1  ;;  %v8897_v33 = vpop.f32.mrf.mxu0  ;;  %9140 = vmatmul.mubr.msk.f32.gmra.mxu0 %vm148_vm1, %v7417_v17  ;;  %9044 = vmatprep.mubr.msk.f32.mxu1 %vm148_vm1, %v14987_v41  ;;  %v7420_v1 = vld [vmem:[%s14810_s0 + $0x2a1] sm:$0xff] }
 0x123   :  { %v1061_v34 = vpop.f32.mrf.mxu1  ;;  %9142 = vmatprep.mubr.msk.f32.mxu0 %vm148_vm1, %v7418_v57  ;;  %v14988_v9 = vld [vmem:[#allocation23_spill] sm:$0xff] }
 0x124   :  { %v11112_v28 = vadd.f32 %v8897_v33, %v1067_v49  ;;  %v1062_v5 = vadd.f32 %v1061_v34, %v10824_v38  ;;  %v1707_v44 = vpop.f32.mrf.mxu0  ;;  %v14989_v49 = vld [vmem:[#allocation24_spill] sm:$0xff] }
 0x125   :  { %v8802_v17 = vpop.f32.mrf.mxu1  ;;  %9045 = vmatmul.mubr.msk.f32.gmra.mxu1 %vm148_vm1, %v14988_v9  ;;  %v7421_v33 = vld [vmem:[%s14810_s0 + $0x2a9] sm:$0xff] }
 0x126   :  { %v11120_v36 = vadd.f32 %v1707_v44, %v1062_v5  ;;  %v1077_v57 = vadd.f32 %v8802_v17, %v10830_v7  ;;  %v8900_v41 = vpop.f32.mrf.mxu0  ;;  %9143 = vmatmul.mubr.msk.f32.gmra.mxu0 %vm148_vm1, %v7419_v27  ;;  %9047 = vmatprep.mubr.msk.f32.mxu1 %vm148_vm1, %v14989_v49  ;;  %v7422_v7 = vld [vmem:[%s14810_s0 + $0x2b9] sm:$0xff] }
 0x127   :  { %v1071_v38 = vpop.f32.mrf.mxu1  ;;  %9145 = vmatprep.mubr.msk.f32.mxu0 %vm148_vm1, %v7420_v1  ;;  %v14990_v17 = vld [vmem:[#allocation25_spill] sm:$0xff] }
 0x128   :  { %v11130_v34 = vadd.f32 %v8900_v41, %v1077_v57  ;;  %v1072_v5 = vadd.f32 %v1071_v38, %v10840_v42  ;;  %v1717_v44 = vpop.f32.mrf.mxu0  ;;  %v14991_v57 = vld [vmem:[#allocation26_spill] sm:$0xff] }
 0x129   :  { %v8805_v27 = vpop.f32.mrf.mxu1  ;;  %9048 = vmatmul.mubr.msk.f32.gmra.mxu1 %vm148_vm1, %v14990_v17  ;;  %v7423_v41 = vld [vmem:[%s14810_s0 + $0x2c1] sm:$0xff] }
 0x12a   :  { %v11138_v9 = vadd.f32 %v1717_v44, %v1072_v5  ;;  %v1087_v1 = vadd.f32 %v8805_v27, %v10846_v25  ;;  %v8903_v49 = vpop.f32.mrf.mxu0  ;;  %9146 = vmatmul.mubr.msk.f32.gmra.mxu0 %vm148_vm1, %v7421_v33  ;;  %9050 = vmatprep.mubr.msk.f32.mxu1 %vm148_vm1, %v14991_v57  ;;  %v7424_v25 = vld [vmem:[%s14810_s0 + $0x2d1] sm:$0xff]  ;;  %v14992_v27 = vld [vmem:[#allocation27_spill] sm:$0xff] }
 0x12b   :  { %v1081_v42 = vpop.f32.mrf.mxu1  ;;  %9148 = vmatprep.mubr.msk.f32.mxu0 %vm148_vm1, %v7422_v7 }
 0x12c   :  { %v11148_v38 = vadd.f32 %v8903_v49, %v1087_v1  ;;  %v1082_v5 = vadd.f32 %v1081_v42, %v10856_v46  ;;  %v1727_v44 = vpop.f32.mrf.mxu0  ;;  %v14993_v1 = vld [vmem:[#allocation28_spill] sm:$0xff]  ;;  %v7425_v49 = vld [vmem:[%s14810_s0 + $0x2d9] sm:$0xff] }
 0x12d   :  { %v8808_v33 = vpop.f32.mrf.mxu1  ;;  %9051 = vmatmul.mubr.msk.f32.gmra.mxu1 %vm148_vm1, %v14992_v27 }
 0x12e   :  { %v11156_v17 = vadd.f32 %v1727_v44, %v1082_v5  ;;  %v1097_v7 = vadd.f32 %v8808_v33, %v10862_v39  ;;  %v8906_v57 = vpop.f32.mrf.mxu0  ;;  %9149 = vmatmul.mubr.msk.f32.gmra.mxu0 %vm148_vm1, %v7423_v41  ;;  %9053 = vmatprep.mubr.msk.f32.mxu1 %vm148_vm1, %v14993_v1  ;;  %v7426_v39 = vld [vmem:[%s14810_s0 + $0x2e9] sm:$0xff]  ;;  %v14994_v33 = vld [vmem:[#allocation29_spill] sm:$0xff] }
 0x12f   :  { %v1091_v46 = vpop.f32.mrf.mxu1  ;;  %9151 = vmatprep.mubr.msk.f32.mxu0 %vm148_vm1, %v7424_v25 }
 0x130   :  { %v11166_v42 = vadd.f32 %v8906_v57, %v1097_v7  ;;  %v1092_v5 = vadd.f32 %v1091_v46, %v10872_v50  ;;  %v1737_v44 = vpop.f32.mrf.mxu0  ;;  %v14995_v7 = vld [vmem:[#allocation30_spill] sm:$0xff]  ;;  %v7427_v57 = vld [vmem:[%s14810_s0 + $0x2f1] sm:$0xff] }
 0x131   :  { %v8811_v41 = vpop.f32.mrf.mxu1  ;;  %9054 = vmatmul.mubr.msk.f32.gmra.mxu1 %vm148_vm1, %v14994_v33 }
 0x132   :  { %v11174_v27 = vadd.f32 %v1737_v44, %v1092_v5  ;;  %v1107_v25 = vadd.f32 %v8811_v41, %v10878_v55  ;;  %v8909_v1 = vpop.f32.mrf.mxu0  ;;  %9152 = vmatmul.mubr.msk.f32.gmra.mxu0 %vm148_vm1, %v7425_v49  ;;  %9056 = vmatprep.mubr.msk.f32.mxu1 %vm148_vm1, %v14995_v7  ;;  %v7428_v55 = vld [vmem:[%s14810_s0 + $0x301] sm:$0xff] }
 0x133   :  { %v1101_v50 = vpop.f32.mrf.mxu1  ;;  %9154 = vmatprep.mubr.msk.f32.mxu0 %vm148_vm1, %v7426_v39  ;;  %v14996_v41 = vld [vmem:[#allocation31_spill] sm:$0xff] }
 0x134   :  { %v11184_v46 = vadd.f32 %v8909_v1, %v1107_v25  ;;  %v1102_v5 = vadd.f32 %v1101_v50, %v10888_v54  ;;  %v1747_v44 = vpop.f32.mrf.mxu0  ;;  %v14997_v25 = vld [vmem:[#allocation32_spill] sm:$0xff] }
 0x135   :  { %v8814_v49 = vpop.f32.mrf.mxu1  ;;  %9057 = vmatmul.mubr.msk.f32.gmra.mxu1 %vm148_vm1, %v14996_v41  ;;  %v7429_v1 = vld [vmem:[%s14810_s0 + $0x309] sm:$0xff] }
 0x136   :  { %v11192_v33 = vadd.f32 %v1747_v44, %v1102_v5  ;;  %v1117_v39 = vadd.f32 %v8814_v49, %v10894_v6  ;;  %v8912_v7 = vpop.f32.mrf.mxu0  ;;  %9155 = vmatmul.mubr.msk.f32.gmra.mxu0 %vm148_vm1, %v7427_v57  ;;  %9059 = vmatprep.mubr.msk.f32.mxu1 %vm148_vm1, %v14997_v25  ;;  %v7430_v6 = vld [vmem:[%s14810_s0 + $0x319] sm:$0xff] }
 0x137   :  { %v1111_v54 = vpop.f32.mrf.mxu1  ;;  %9157 = vmatprep.mubr.msk.f32.mxu0 %vm148_vm1, %v7428_v55 }
 0x138   :  { %v11202_v50 = vadd.f32 %v8912_v7, %v1117_v39  ;;  %v1112_v5 = vadd.f32 %v1111_v54, %v10904_v58  ;;  %v1757_v44 = vpop.f32.mrf.mxu0  ;;  %v7431_v39 = vld [vmem:[%s14810_s0 + $0x321] sm:$0xff] }
 0x139   :  { %v8817_v57 = vpop.f32.mrf.mxu1  ;;  %9060 = vmatmul.mubr.msk.f32.gmra.mxu1 %vm148_vm1, %v10645_v4  ;;  %v11223_v4 = vld [vmem:[%s14810_s0 + $0x330] sm:$0xff] }
 0x13a   :  { %v11210_v49 = vadd.f32 %v1757_v44, %v1112_v5  ;;  %v1127_v55 = vadd.f32 %v8817_v57, %v10910_v35  ;;  %v8915_v41 = vpop.f32.mrf.mxu0  ;;  %9158 = vmatmul.mubr.msk.f32.gmra.mxu0 %vm148_vm1, %v7429_v1  ;;  %9062 = vmatprep.mubr.msk.f32.mxu1 %vm148_vm1, %v10654_v2  ;;  %v7432_v2 = vld [vmem:[%s14810_s0 + $0x331] sm:$0xff] }
 0x13b   :  { %v1121_v58 = vpop.f32.mrf.mxu1  ;;  %9160 = vmatprep.mubr.msk.f32.mxu0 %vm148_vm1, %v7430_v6 }
 0x13c   :  { %v11225_v7 = vadd.f32 %v8915_v41, %v1127_v55  ;;  %v1122_v35 = vadd.f32 %v1121_v58, %v10925_v19  ;;  %v1767_v25 = vpop.f32.mrf.mxu0  ;;  %v11242_v19 = vld [vmem:[%s14810_s0 + $0x338] sm:$0xff]  ;;  %v7630_v58 = vld [vmem:[%s14810_s0 + $0x30] sm:$0xff] }
 0x13d   :  { %v8820_v54 = vpop.f32.mrf.mxu1  ;;  %9063 = vmatmul.mubr.msk.f32.gmra.mxu1 %vm148_vm1, %v10667_v29  ;;  %v7433_v29 = vld [vmem:[%s14810_s0 + $0x339] sm:$0xff] }
 0x13e   :  { %v11233_v1 = vadd.f32 %v1767_v25, %v1122_v35  ;;  %v1137_v5 = vadd.f32 %v8820_v54, %v10934_v60  ;;  %v8918_v44 = vpop.f32.mrf.mxu0  ;;  %9161 = vmatmul.mubr.msk.f32.gmra.mxu0 %vm148_vm1, %v7431_v39  ;;  %9065 = vmatprep.mubr.msk.f32.mxu1 %vm148_vm1, %v11223_v4  ;;  %v7500_v60 = vld [vmem:[%s14810_s0 + $0x1a] sm:$0xff] }
 0x13f   :  { %v1131_v6 = vpop.f32.mrf.mxu1  ;;  %9163 = vmatprep.mubr.msk.f32.mxu0 %vm148_vm1, %v7432_v2 }
 0x140   :  { %v11251_v57 = vadd.f32 %v8918_v44, %v1137_v5  ;;  %v1132_v55 = vadd.f32 %v1131_v6, %v10951_v63  ;;  %v1777_v41 = vpop.f32.mrf.mxu0  ;;  %v7501_v63 = vld [vmem:[%s14810_s0 + $0x22] sm:$0xff]  ;;  %v7631_v5 = vld [vmem:[%s14810_s0 + $0x38] sm:$0xff] }
 0x141   :  { %v8823_v39 = vpop.f32.mrf.mxu1  ;;  %9066 = vmatmul.mubr.msk.f32.gmra.mxu1 %vm148_vm1, %v11242_v19 }
 0x142   :  { %v11259_v35 = vadd.f32 %v1777_v41, %v1132_v55  ;;  %v1147_v25 = vadd.f32 %v8823_v39, %v10960_v47  ;;  %v8921_v2 = vpop.f32.mrf.mxu0  ;;  %9164 = vmatmul.mubr.msk.f32.gmra.mxu0 %vm148_vm1, %v7433_v29  ;;  %9168 = vmatprep.mubr.msk.f32.mxu1 %vm148_vm1, %v7500_v60  ;;  %v11277_v29 = vld [vmem:[%s14810_s0 + $0x32] sm:$0xff]  ;;  %v7632_v55 = vld [vmem:[%s14810_s0 + $0x48] sm:$0xff] }
 0x143   :  { %v1141_v54 = vpop.f32.mrf.mxu1  ;;  %9266 = vmatprep.mubr.msk.f32.mxu0 %vm148_vm1, %v7630_v58 }
 0x144   :  { %v11271_v44 = vadd.f32 %v8921_v2, %v1147_v25  ;;  %v1142_v47 = vadd.f32 %v1141_v54, %v10971_v31  ;;  %v1787_v6 = vpop.f32.mrf.mxu0  ;;  %v11292_v31 = vld [vmem:[%s14810_s0 + $0x3a] sm:$0xff] }
 0x145   :  { %v8826_v60 = vpop.f32.mrf.mxu1  ;;  %9169 = vmatmul.mubr.msk.f32.vlgmr.msra.gmra.mxu1 %vm148_vm1, %v7501_v63 }
 0x146   :  { %v11283_v41 = vadd.f32 %v1787_v6, %v1142_v47  ;;  %v1157_v58 = vadd.f32 %v8826_v60, %v10680_v0  ;;  %v8924_v39 = vpop.f32.mrf.mxu0  ;;  %9267 = vmatmul.mubr.msk.f32.vlgmr.msra.gmra.mxu0 %vm148_vm1, %v7631_v5  ;;  %9363 = vmatpush3.msk.msra.mxu1 %vm341_vm0, %v10693_v11  ;;  %v7633_v0 = vld [vmem:[%s14810_s0 + $0x50] sm:$0xff] }
 0x147   :  { %v1151_v25 = vpop.f32.mrf.mxu1  ;;  %9171 = vmatprep.mubr.msk.f32.mxu1 %vm148_vm1, %v11277_v29  ;;  %9461 = vmatpush3.msk.msra.mxu0 %vm341_vm0, %v10710_v10  ;;  %v11304_v11 = vld [vmem:[%s14810_s0 + $0x4a] sm:$0xff]  ;;  %v7634_v10 = vld [vmem:[%s14810_s0 + $0x60] sm:$0xff] }
 0x148   :  { %v11306_v2 = vadd.f32 %v8924_v39, %v1157_v58  ;;  %v1152_v63 = vadd.f32 %v1151_v25, %v10695_v43  ;;  %v1797_v54 = vpop.f32.mrf.mxu0  ;;  %9269 = vmatprep.mubr.msk.f32.mxu0 %vm148_vm1, %v7632_v55  ;;  %v11324_v43 = vld [vmem:[%s14810_s0 + $0x52] sm:$0xff]  ;;  %v7635_v58 = vld [vmem:[%s14810_s0 + $0x68] sm:$0xff] }
 0x149   :  { %v8829_v5 = vpop.f32.mrf.mxu1  ;;  %9172 = vmatmul.mubr.msk.f32.gmra.mxu1 %vm148_vm1, %v11292_v31 }
 0x14a   :  { %v11315_v47 = vadd.f32 %v1797_v54, %v1152_v63  ;;  %v1167_v6 = vadd.f32 %v8829_v5, %v10712_v15  ;;  %v8927_v60 = vpop.f32.mrf.mxu0  ;;  %9270 = vmatmul.mubr.msk.f32.gmra.mxu0 %vm148_vm1, %v7633_v0  ;;  %9174 = vmatprep.mubr.msk.f32.mxu1 %vm148_vm1, %v11304_v11  ;;  %v11333_v15 = vld [vmem:[%s14810_s0 + $0x62] sm:$0xff]  ;;  %v7636_v63 = vld [vmem:[%s14810_s0 + $0x78] sm:$0xff] }
 0x14b   :  { %v1161_v55 = vpop.f32.mrf.mxu1  ;;  %9272 = vmatprep.mubr.msk.f32.mxu0 %vm148_vm1, %v7634_v10  ;;  %14999 = vst [vmem:[#allocation8_spill] sm:$0xff] %v11333_v15 }
 0x14c   :  { %14998 = vst [vmem:[#allocation7_spill] sm:$0xff] %v11315_v47  ;;  %v11335_v39 = vadd.f32 %v8927_v60, %v1167_v6  ;;  %v1162_v25 = vadd.f32 %v1161_v55, %v10724_v12  ;;  %v1807_v0 = vpop.f32.mrf.mxu0  ;;  %v11352_v12 = vld [vmem:[%s14810_s0 + $0x6a] sm:$0xff]  ;;  %v7637_v60 = vld [vmem:[%s14810_s0 + $0x80] sm:$0xff] }
 0x14d   :  { %v8832_v54 = vpop.f32.mrf.mxu1  ;;  %9175 = vmatmul.mubr.msk.f32.gmra.mxu1 %vm148_vm1, %v11324_v43 }
 0x14e   :  { %v11343_v10 = vadd.f32 %v1807_v0, %v1162_v25  ;;  %v1177_v5 = vadd.f32 %v8832_v54, %v10730_v23  ;;  %v8930_v47 = vpop.f32.mrf.mxu0  ;;  %9273 = vmatmul.mubr.msk.f32.gmra.mxu0 %vm148_vm1, %v7635_v58  ;;  %9177 = vmatprep.mubr.msk.f32.mxu1 %vm148_vm1, %v11333_v15  ;;  %v11361_v23 = vld [vmem:[%s14810_s0 + $0x7a] sm:$0xff]  ;;  %v7638_v0 = vld [vmem:[%s14810_s0 + $0x90] sm:$0xff] }
 0x14f   :  { %v1171_v6 = vpop.f32.mrf.mxu1  ;;  %9275 = vmatprep.mubr.msk.f32.mxu0 %vm148_vm1, %v7636_v63  ;;  %15001 = vst [vmem:[#allocation10_spill] sm:$0xff] %v11361_v23 }
 0x150   :  { %15000 = vst [vmem:[#allocation9_spill] sm:$0xff] %v11343_v10  ;;  %v11363_v55 = vadd.f32 %v8930_v47, %v1177_v5  ;;  %v1172_v58 = vadd.f32 %v1171_v6, %v10740_v14  ;;  %v1817_v25 = vpop.f32.mrf.mxu0  ;;  %v11380_v14 = vld [vmem:[%s14810_s0 + $0x82] sm:$0xff]  ;;  %v7639_v5 = vld [vmem:[%s14810_s0 + $0x98] sm:$0xff] }
 0x151   :  { %v8835_v54 = vpop.f32.mrf.mxu1  ;;  %9178 = vmatmul.mubr.msk.f32.gmra.mxu1 %vm148_vm1, %v11352_v12 }
 0x152   :  { %v11371_v63 = vadd.f32 %v1817_v25, %v1172_v58  ;;  %v1187_v10 = vadd.f32 %v8835_v54, %v10746_v30  ;;  %v8933_v15 = vpop.f32.mrf.mxu0  ;;  %9276 = vmatmul.mubr.msk.f32.gmra.mxu0 %vm148_vm1, %v7637_v60  ;;  %9180 = vmatprep.mubr.msk.f32.mxu1 %vm148_vm1, %v11361_v23  ;;  %v11389_v30 = vld [vmem:[%s14810_s0 + $0x92] sm:$0xff]  ;;  %v7640_v25 = vld [vmem:[%s14810_s0 + $0xa8] sm:$0xff] }
 0x153   :  { %v1181_v47 = vpop.f32.mrf.mxu1  ;;  %9278 = vmatprep.mubr.msk.f32.mxu0 %vm148_vm1, %v7638_v0  ;;  %15003 = vst [vmem:[#allocation12_spill] sm:$0xff] %v11389_v30 }
 0x154   :  { %15002 = vst [vmem:[#allocation11_spill] sm:$0xff] %v11371_v63  ;;  %v11391_v6 = vadd.f32 %v8933_v15, %v1187_v10  ;;  %v1182_v60 = vadd.f32 %v1181_v47, %v10756_v18  ;;  %v1827_v58 = vpop.f32.mrf.mxu0  ;;  %v11408_v18 = vld [vmem:[%s14810_s0 + $0x9a] sm:$0xff]  ;;  %v7641_v10 = vld [vmem:[%s14810_s0 + $0xb0] sm:$0xff] }
 0x155   :  { %v8838_v54 = vpop.f32.mrf.mxu1  ;;  %9181 = vmatmul.mubr.msk.f32.gmra.mxu1 %vm148_vm1, %v11380_v14 }
 0x156   :  { %v11399_v0 = vadd.f32 %v1827_v58, %v1182_v60  ;;  %v1197_v63 = vadd.f32 %v8838_v54, %v10762_v37  ;;  %v8936_v23 = vpop.f32.mrf.mxu0  ;;  %9279 = vmatmul.mubr.msk.f32.gmra.mxu0 %vm148_vm1, %v7639_v5  ;;  %9183 = vmatprep.mubr.msk.f32.mxu1 %vm148_vm1, %v11389_v30  ;;  %v11417_v37 = vld [vmem:[%s14810_s0 + $0xaa] sm:$0xff]  ;;  %v7642_v58 = vld [vmem:[%s14810_s0 + $0xc0] sm:$0xff] }
 0x157   :  { %v1191_v15 = vpop.f32.mrf.mxu1  ;;  %9281 = vmatprep.mubr.msk.f32.mxu0 %vm148_vm1, %v7640_v25  ;;  %15005 = vst [vmem:[#allocation14_spill] sm:$0xff] %v11417_v37 }
 0x158   :  { %15004 = vst [vmem:[#allocation13_spill] sm:$0xff] %v11399_v0  ;;  %v11419_v47 = vadd.f32 %v8936_v23, %v1197_v63  ;;  %v1192_v5 = vadd.f32 %v1191_v15, %v10772_v22  ;;  %v1837_v60 = vpop.f32.mrf.mxu0  ;;  %v11436_v22 = vld [vmem:[%s14810_s0 + $0xb2] sm:$0xff]  ;;  %v7643_v63 = vld [vmem:[%s14810_s0 + $0xc8] sm:$0xff] }
 0x159   :  { %v8841_v54 = vpop.f32.mrf.mxu1  ;;  %9184 = vmatmul.mubr.msk.f32.gmra.mxu1 %vm148_vm1, %v11408_v18 }
 0x15a   :  { %v11427_v25 = vadd.f32 %v1837_v60, %v1192_v5  ;;  %v1207_v0 = vadd.f32 %v8841_v54, %v10778_v45  ;;  %v8939_v30 = vpop.f32.mrf.mxu0  ;;  %9282 = vmatmul.mubr.msk.f32.gmra.mxu0 %vm148_vm1, %v7641_v10  ;;  %9186 = vmatprep.mubr.msk.f32.mxu1 %vm148_vm1, %v11417_v37  ;;  %v11445_v45 = vld [vmem:[%s14810_s0 + $0xc2] sm:$0xff]  ;;  %v7644_v60 = vld [vmem:[%s14810_s0 + $0xd8] sm:$0xff] }
 0x15b   :  { %v1201_v23 = vpop.f32.mrf.mxu1  ;;  %9284 = vmatprep.mubr.msk.f32.mxu0 %vm148_vm1, %v7642_v58  ;;  %15007 = vst [vmem:[#allocation16_spill] sm:$0xff] %v11445_v45 }
 0x15c   :  { %15006 = vst [vmem:[#allocation15_spill] sm:$0xff] %v11427_v25  ;;  %v11447_v15 = vadd.f32 %v8939_v30, %v1207_v0  ;;  %v1202_v10 = vadd.f32 %v1201_v23, %v10788_v26  ;;  %v1847_v5 = vpop.f32.mrf.mxu0  ;;  %v11464_v26 = vld [vmem:[%s14810_s0 + $0xca] sm:$0xff]  ;;  %v7645_v0 = vld [vmem:[%s14810_s0 + $0xe0] sm:$0xff] }
 0x15d   :  { %v8844_v54 = vpop.f32.mrf.mxu1  ;;  %9187 = vmatmul.mubr.msk.f32.gmra.mxu1 %vm148_vm1, %v11436_v22  ;;  %15009 = vst [vmem:[#allocation18_spill] sm:$0xff] %v11464_v26 }
 0x15e   :  { %v11455_v58 = vadd.f32 %v1847_v5, %v1202_v10  ;;  %v1217_v25 = vadd.f32 %v8844_v54, %v10794_v53  ;;  %v8942_v37 = vpop.f32.mrf.mxu0  ;;  %9285 = vmatmul.mubr.msk.f32.gmra.mxu0 %vm148_vm1, %v7643_v63  ;;  %9189 = vmatprep.mubr.msk.f32.mxu1 %vm148_vm1, %v11445_v45  ;;  %v11473_v53 = vld [vmem:[%s14810_s0 + $0xda] sm:$0xff]  ;;  %v7646_v5 = vld [vmem:[%s14810_s0 + $0xf0] sm:$0xff] }
 0x15f   :  { %v1211_v30 = vpop.f32.mrf.mxu1  ;;  %9287 = vmatprep.mubr.msk.f32.mxu0 %vm148_vm1, %v7644_v60  ;;  %15010 = vst [vmem:[#allocation19_spill] sm:$0xff] %v11473_v53 }
 0x160   :  { %15008 = vst [vmem:[#allocation17_spill] sm:$0xff] %v11455_v58  ;;  %v11475_v23 = vadd.f32 %v8942_v37, %v1217_v25  ;;  %v1212_v63 = vadd.f32 %v1211_v30, %v10804_v32  ;;  %v1857_v10 = vpop.f32.mrf.mxu0  ;;  %v11492_v32 = vld [vmem:[%s14810_s0 + $0xe2] sm:$0xff]  ;;  %v7647_v25 = vld [vmem:[%s14810_s0 + $0xf8] sm:$0xff] }
 0x161   :  { %v8847_v54 = vpop.f32.mrf.mxu1  ;;  %9190 = vmatmul.mubr.msk.f32.gmra.mxu1 %vm148_vm1, %v11464_v26  ;;  %15013 = vst [vmem:[#allocation22_spill] sm:$0xff] %v11492_v32 }
 0x162   :  { %15011 = vst [vmem:[#allocation20_spill] sm:$0xff] %v11475_v23  ;;  %v11483_v60 = vadd.f32 %v1857_v10, %v1212_v63  ;;  %v1227_v58 = vadd.f32 %v8847_v54, %v10810_v61  ;;  %v8945_v45 = vpop.f32.mrf.mxu0  ;;  %9288 = vmatmul.mubr.msk.f32.gmra.mxu0 %vm148_vm1, %v7645_v0  ;;  %9192 = vmatprep.mubr.msk.f32.mxu1 %vm148_vm1, %v11473_v53  ;;  %v11501_v61 = vld [vmem:[%s14810_s0 + $0xf2] sm:$0xff]  ;;  %v7648_v54 = vld [vmem:[%s14810_s0 + $0x108] sm:$0xff]  ;;  %v15018_v53 = vld [vmem:[#allocation34_spill] sm:$0xff] }
 0x163   :  { %v1221_v37 = vpop.f32.mrf.mxu1  ;;  %9290 = vmatprep.mubr.msk.f32.mxu0 %vm148_vm1, %v7646_v5  ;;  %15014 = vst [vmem:[#allocation23_spill] sm:$0xff] %v11501_v61  ;;  %v15016_v0 = vld [vmem:[#allocation33_spill] sm:$0xff] }
 0x164   :  { %15012 = vst [vmem:[#allocation21_spill] sm:$0xff] %v11483_v60  ;;  %v11503_v30 = vadd.f32 %v8945_v45, %v1227_v58  ;;  %v1222_v63 = vadd.f32 %v1221_v37, %v15016_v0  ;;  %v1867_v10 = vpop.f32.mrf.mxu0  ;;  %v11520_v45 = vld [vmem:[%s14810_s0 + $0xfa] sm:$0xff]  ;;  %v7649_v37 = vld [vmem:[%s14810_s0 + $0x110] sm:$0xff] }
 0x165   :  { %v8850_v60 = vpop.f32.mrf.mxu1  ;;  %9193 = vmatmul.mubr.msk.f32.gmra.mxu1 %vm148_vm1, %v11492_v32  ;;  %15019 = vst [vmem:[#allocation26_spill] sm:$0xff] %v11520_v45 }
 0x166   :  { %15015 = vst [vmem:[#allocation24_spill] sm:$0xff] %v11503_v30  ;;  %v11511_v5 = vadd.f32 %v1867_v10, %v1222_v63  ;;  %v1237_v26 = vadd.f32 %v8850_v60, %v15018_v53  ;;  %v8948_v23 = vpop.f32.mrf.mxu0  ;;  %9291 = vmatmul.mubr.msk.f32.gmra.mxu0 %vm148_vm1, %v7647_v25  ;;  %9195 = vmatprep.mubr.msk.f32.mxu1 %vm148_vm1, %v11501_v61  ;;  %v11529_v53 = vld [vmem:[%s14810_s0 + $0x10a] sm:$0xff]  ;;  %v7650_v10 = vld [vmem:[%s14810_s0 + $0x120] sm:$0xff] }
 0x167   :  { %v1231_v58 = vpop.f32.mrf.mxu1  ;;  %9293 = vmatprep.mubr.msk.f32.mxu0 %vm148_vm1, %v7648_v54  ;;  %15020 = vst [vmem:[#allocation27_spill] sm:$0xff] %v11529_v53  ;;  %v15022_v25 = vld [vmem:[#allocation35_spill] sm:$0xff]  ;;  %v15024_v61 = vld [vmem:[#allocation36_spill] sm:$0xff] }
 0x168   :  { %15017 = vst [vmem:[#allocation25_spill] sm:$0xff] %v11511_v5  ;;  %v11531_v60 = vadd.f32 %v8948_v23, %v1237_v26  ;;  %v1232_v0 = vadd.f32 %v1231_v58, %v15022_v25  ;;  %v1877_v63 = vpop.f32.mrf.mxu0  ;;  %v11548_v26 = vld [vmem:[%s14810_s0 + $0x112] sm:$0xff]  ;;  %v7651_v58 = vld [vmem:[%s14810_s0 + $0x128] sm:$0xff] }
 0x169   :  { %v8853_v5 = vpop.f32.mrf.mxu1  ;;  %9196 = vmatmul.mubr.msk.f32.gmra.mxu1 %vm148_vm1, %v11520_v45  ;;  %15025 = vst [vmem:[#allocation30_spill] sm:$0xff] %v11548_v26 }
 0x16a   :  { %15021 = vst [vmem:[#allocation28_spill] sm:$0xff] %v11531_v60  ;;  %v11539_v54 = vadd.f32 %v1877_v63, %v1232_v0  ;;  %v1247_v32 = vadd.f32 %v8853_v5, %v15024_v61  ;;  %v8951_v30 = vpop.f32.mrf.mxu0  ;;  %9294 = vmatmul.mubr.msk.f32.gmra.mxu0 %vm148_vm1, %v7649_v37  ;;  %9198 = vmatprep.mubr.msk.f32.mxu1 %vm148_vm1, %v11529_v53  ;;  %v11557_v61 = vld [vmem:[%s14810_s0 + $0x122] sm:$0xff]  ;;  %v15028_v37 = vld [vmem:[#allocation37_spill] sm:$0xff] }
 0x16b   :  { %v1241_v23 = vpop.f32.mrf.mxu1  ;;  %9296 = vmatprep.mubr.msk.f32.mxu0 %vm148_vm1, %v7650_v10  ;;  %15026 = vst [vmem:[#allocation31_spill] sm:$0xff] %v11557_v61  ;;  %v7652_v63 = vld [vmem:[%s14810_s0 + $0x138] sm:$0xff]  ;;  %v15030_v53 = vld [vmem:[#allocation38_spill] sm:$0xff] }
 0x16c   :  { %15023 = vst [vmem:[#allocation29_spill] sm:$0xff] %v11539_v54  ;;  %v11559_v5 = vadd.f32 %v8951_v30, %v1247_v32  ;;  %v1242_v25 = vadd.f32 %v1241_v23, %v15028_v37  ;;  %v1887_v0 = vpop.f32.mrf.mxu0  ;;  %v11576_v32 = vld [vmem:[%s14810_s0 + $0x12a] sm:$0xff]  ;;  %v7653_v23 = vld [vmem:[%s14810_s0 + $0x140] sm:$0xff] }
 0x16d   :  { %v8856_v54 = vpop.f32.mrf.mxu1  ;;  %9199 = vmatmul.mubr.msk.f32.gmra.mxu1 %vm148_vm1, %v11548_v26  ;;  %15031 = vst [vmem:[#allocation34_spill] sm:$0xff] %v11576_v32 }
 0x16e   :  { %15027 = vst [vmem:[#allocation32_spill] sm:$0xff] %v11559_v5  ;;  %v11567_v10 = vadd.f32 %v1887_v0, %v1242_v25  ;;  %v1257_v45 = vadd.f32 %v8856_v54, %v15030_v53  ;;  %v8954_v60 = vpop.f32.mrf.mxu0  ;;  %9297 = vmatmul.mubr.msk.f32.gmra.mxu0 %vm148_vm1, %v7651_v58  ;;  %9201 = vmatprep.mubr.msk.f32.mxu1 %vm148_vm1, %v11557_v61  ;;  %v11585_v53 = vld [vmem:[%s14810_s0 + $0x13a] sm:$0xff]  ;;  %v15034_v58 = vld [vmem:[#allocation39_spill] sm:$0xff]  ;;  %v7654_v0 = vld [vmem:[%s14810_s0 + $0x150] sm:$0xff] }
 0x16f   :  { %v1251_v30 = vpop.f32.mrf.mxu1  ;;  %9299 = vmatprep.mubr.msk.f32.mxu0 %vm148_vm1, %v7652_v63  ;;  %15032 = vst [vmem:[#allocation35_spill] sm:$0xff] %v11585_v53  ;;  %v15036_v61 = vld [vmem:[#allocation40_spill] sm:$0xff] }
 0x170   :  { %15029 = vst [vmem:[#allocation33_spill] sm:$0xff] %v11567_v10  ;;  %v11587_v54 = vadd.f32 %v8954_v60, %v1257_v45  ;;  %v1252_v37 = vadd.f32 %v1251_v30, %v15034_v58  ;;  %v1897_v25 = vpop.f32.mrf.mxu0  ;;  %v11604_v45 = vld [vmem:[%s14810_s0 + $0x142] sm:$0xff]  ;;  %v7655_v30 = vld [vmem:[%s14810_s0 + $0x158] sm:$0xff] }
 0x171   :  { %v8859_v10 = vpop.f32.mrf.mxu1  ;;  %9202 = vmatmul.mubr.msk.f32.gmra.mxu1 %vm148_vm1, %v11576_v32  ;;  %15037 = vst [vmem:[#allocation38_spill] sm:$0xff] %v11604_v45 }
 0x172   :  { %15033 = vst [vmem:[#allocation36_spill] sm:$0xff] %v11587_v54  ;;  %v11595_v63 = vadd.f32 %v1897_v25, %v1252_v37  ;;  %v1267_v26 = vadd.f32 %v8859_v10, %v15036_v61  ;;  %v8957_v5 = vpop.f32.mrf.mxu0  ;;  %9300 = vmatmul.mubr.msk.f32.gmra.mxu0 %vm148_vm1, %v7653_v23  ;;  %9204 = vmatprep.mubr.msk.f32.mxu1 %vm148_vm1, %v11585_v53  ;;  %v11613_v61 = vld [vmem:[%s14810_s0 + $0x152] sm:$0xff]  ;;  %v7656_v25 = vld [vmem:[%s14810_s0 + $0x168] sm:$0xff]  ;;  %v15042_v53 = vld [vmem:[#allocation42_spill] sm:$0xff] }
 0x173   :  { %v1261_v60 = vpop.f32.mrf.mxu1  ;;  %9302 = vmatprep.mubr.msk.f32.mxu0 %vm148_vm1, %v7654_v0  ;;  %15038 = vst [vmem:[#allocation39_spill] sm:$0xff] %v11613_v61  ;;  %v15040_v23 = vld [vmem:[#allocation41_spill] sm:$0xff] }
 0x174   :  { %15035 = vst [vmem:[#allocation37_spill] sm:$0xff] %v11595_v63  ;;  %v11615_v10 = vadd.f32 %v8957_v5, %v1267_v26  ;;  %v1262_v58 = vadd.f32 %v1261_v60, %v15040_v23  ;;  %v1907_v37 = vpop.f32.mrf.mxu0  ;;  %v11632_v26 = vld [vmem:[%s14810_s0 + $0x15a] sm:$0xff]  ;;  %v7657_v60 = vld [vmem:[%s14810_s0 + $0x170] sm:$0xff] }
 0x175   :  { %v8862_v63 = vpop.f32.mrf.mxu1  ;;  %9205 = vmatmul.mubr.msk.f32.gmra.mxu1 %vm148_vm1, %v11604_v45  ;;  %15043 = vst [vmem:[#allocation42_spill] sm:$0xff] %v11632_v26 }
 0x176   :  { %15039 = vst [vmem:[#allocation40_spill] sm:$0xff] %v11615_v10  ;;  %v11623_v0 = vadd.f32 %v1907_v37, %v1262_v58  ;;  %v1277_v32 = vadd.f32 %v8862_v63, %v15042_v53  ;;  %v8960_v54 = vpop.f32.mrf.mxu0  ;;  %9303 = vmatmul.mubr.msk.f32.gmra.mxu0 %vm148_vm1, %v7655_v30  ;;  %9207 = vmatprep.mubr.msk.f32.mxu1 %vm148_vm1, %v11613_v61  ;;  %v11641_v53 = vld [vmem:[%s14810_s0 + $0x16a] sm:$0xff] }
 0x177   :  { %v1271_v5 = vpop.f32.mrf.mxu1  ;;  %9305 = vmatprep.mubr.msk.f32.mxu0 %vm148_vm1, %v7656_v25  ;;  %15044 = vst [vmem:[#allocation47_spill] sm:$0xff] %v11641_v53  ;;  %v15046_v30 = vld [vmem:[#allocation43_spill] sm:$0xff]  ;;  %v15048_v25 = vld [vmem:[#allocation44_spill] sm:$0xff] }
 0x178   :  { %15041 = vst [vmem:[#allocation41_spill] sm:$0xff] %v11623_v0  ;;  %v11643_v63 = vadd.f32 %v8960_v54, %v1277_v32  ;;  %v1272_v23 = vadd.f32 %v1271_v5, %v15046_v30  ;;  %v1917_v58 = vpop.f32.mrf.mxu0  ;;  %v11657_v32 = vld [vmem:[%s14810_s0 + $0x172] sm:$0xff]  ;;  %v11664_v30 = vld [vmem:[%s14810_s0 + $0x182] sm:$0xff] }
 0x179   :  { %v8865_v37 = vpop.f32.mrf.mxu1  ;;  %9208 = vmatmul.mubr.msk.f32.gmra.mxu1 %vm148_vm1, %v11632_v26  ;;  %15049 = vst [vmem:[#allocation44_spill] sm:$0xff] %v11657_v32  ;;  %v15050_v5 = vld [vmem:[#allocation5_spill] sm:$0xff]  ;;  %v15056_v10 = vld [vmem:[#allocation4_spill] sm:$0xff] }
 0x17a   :  { %15045 = vst [vmem:[#allocation48_spill] sm:$0xff] %v11643_v63  ;;  %v11648_v0 = vadd.f32 %v1917_v58, %v1272_v23  ;;  %v1287_v61 = vadd.f32 %v8865_v37, %v15048_v25  ;;  %v8963_v45 = vpop.f32.mrf.mxu0  ;;  %9306 = vmatmul.mubr.msk.f32.gmra.mxu0 %vm148_vm1, %v7657_v60  ;;  %9210 = vmatprep.mubr.msk.f32.mxu1 %vm148_vm1, %v11641_v53  ;;  %15051 = vst [vmem:[#allocation5_spill] sm:$0xff] %v11664_v30  ;;  %v15053_v60 = vld [vmem:[#allocation2_spill] sm:$0xff]  ;;  %v7660_v25 = vld [vmem:[%s14810_s0 + $0x198] sm:$0xff] }
 0x17b   :  { %v1281_v54 = vpop.f32.mrf.mxu1  ;;  %9308 = vmatprep.mubr.msk.f32.mxu0 %vm148_vm1, %v15050_v5  ;;  %v15055_v5 = vld [vmem:[#allocation3_spill] sm:$0xff] }
 0x17c   :  { %15047 = vst [vmem:[#allocation43_spill] sm:$0xff] %v11648_v0  ;;  %v11666_v23 = vadd.f32 %v8963_v45, %v1287_v61  ;;  %v1282_v58 = vadd.f32 %v1281_v54, %v15053_v60  ;;  %v1927_v37 = vpop.f32.mrf.mxu0  ;;  %v11684_v45 = vld [vmem:[%s14810_s0 + $0x18a] sm:$0xff]  ;;  %v7661_v54 = vld [vmem:[%s14810_s0 + $0x1a0] sm:$0xff]  ;;  %v15058_v60 = vld [vmem:[#allocation45_spill] sm:$0xff] }
 0x17d   :  { %v8868_v0 = vpop.f32.mrf.mxu1  ;;  %9211 = vmatmul.mubr.msk.f32.gmra.mxu1 %vm148_vm1, %v11657_v32  ;;  %15057 = vst [vmem:[#allocation3_spill] sm:$0xff] %v11684_v45 }
 0x17e   :  { %15052 = vst [vmem:[#allocation49_spill] sm:$0xff] %v11666_v23  ;;  %v11674_v53 = vadd.f32 %v1927_v37, %v1282_v58  ;;  %v1297_v26 = vadd.f32 %v8868_v0, %v15055_v5  ;;  %v8966_v63 = vpop.f32.mrf.mxu0  ;;  %9309 = vmatmul.mubr.msk.f32.gmra.mxu0 %vm148_vm1, %v15056_v10  ;;  %9213 = vmatprep.mubr.msk.f32.mxu1 %vm148_vm1, %v11664_v30  ;;  %v7532_v0 = vld [vmem:[%s14810_s0 + $0x1ca] sm:$0xff]  ;;  %v7662_v5 = vld [vmem:[%s14810_s0 + $0x1e0] sm:$0xff] }
 0x17f   :  { %v1291_v61 = vpop.f32.mrf.mxu1  ;;  %9311 = vmatprep.mubr.msk.f32.mxu0 %vm148_vm1, %v7660_v25  ;;  %v15060_v30 = vld [vmem:[#allocation46_spill] sm:$0xff] }
 0x180   :  { %15054 = vst [vmem:[#allocation2_spill] sm:$0xff] %v11674_v53  ;;  %v11693_v10 = vadd.f32 %v8966_v63, %v1297_v26  ;;  %v1292_v58 = vadd.f32 %v1291_v61, %v15058_v60  ;;  %v1937_v37 = vpop.f32.mrf.mxu0  ;;  %v7533_v26 = vld [vmem:[%s14810_s0 + $0x1d2] sm:$0xff]  ;;  %v7663_v61 = vld [vmem:[%s14810_s0 + $0x1e8] sm:$0xff] }
 0x181   :  { %v8871_v53 = vpop.f32.mrf.mxu1  ;;  %9214 = vmatmul.mubr.msk.f32.gmra.mxu1 %vm148_vm1, %v11684_v45 }
 0x182   :  { %v11701_v25 = vadd.f32 %v1937_v37, %v1292_v58  ;;  %v1307_v32 = vadd.f32 %v8871_v53, %v15060_v30  ;;  %v8969_v23 = vpop.f32.mrf.mxu0  ;;  %9312 = vmatmul.mubr.msk.f32.gmra.mxu0 %vm148_vm1, %v7661_v54  ;;  %9216 = vmatprep.mubr.msk.f32.mxu1 %vm148_vm1, %v7532_v0  ;;  %v11716_v53 = vld [vmem:[%s14810_s0 + $0x1e2] sm:$0xff]  ;;  %v7664_v58 = vld [vmem:[%s14810_s0 + $0x1f8] sm:$0xff] }
 0x183   :  { %v1301_v63 = vpop.f32.mrf.mxu1  ;;  %9314 = vmatprep.mubr.msk.f32.mxu0 %vm148_vm1, %v7662_v5  ;;  %v15061_v54 = vld [vmem:[#allocation6_spill] sm:$0xff] }
 0x184   :  { %15059 = vst [vmem:[#allocation4_spill] sm:$0xff] %v11701_v25  ;;  %v11718_v30 = vadd.f32 %v8969_v23, %v1307_v32  ;;  %v1302_v0 = vadd.f32 %v1301_v63, %v15061_v54  ;;  %v1947_v60 = vpop.f32.mrf.mxu0  ;;  %v11734_v32 = vld [vmem:[%s14810_s0 + $0x1ea] sm:$0xff] }
 0x185   :  { %v8974_v37 = vpop.f32.mrf.mxu1  ;;  %9217 = vmatmul.mubr.msk.f32.gmra.mxu1 %vm148_vm1, %v7533_v26  ;;  %v7665_v26 = vld [vmem:[%s14810_s0 + $0x200] sm:$0xff] }
 0x186   :  { %v11725_v5 = vadd.f32 %v1947_v60, %v1302_v0  ;;  %v2668_v25 = vadd.f32 %v8974_v37, %v10986_v40  ;;  %v9072_v45 = vpop.f32.mrf.mxu0  ;;  %9315 = vmatmul.mubr.msk.f32.gmra.mxu0 %vm148_vm1, %v7663_v61  ;;  %9219 = vmatprep.mubr.msk.f32.mxu1 %vm148_vm1, %v11716_v53  ;;  %v11743_v40 = vld [vmem:[%s14810_s0 + $0x1fa] sm:$0xff]  ;;  %v7666_v0 = vld [vmem:[%s14810_s0 + $0x210] sm:$0xff] }
 0x187   :  { %v2348_v23 = vpop.f32.mrf.mxu1  ;;  %9317 = vmatprep.mubr.msk.f32.mxu0 %vm148_vm1, %v7664_v58  ;;  %15063 = vst [vmem:[#allocation46_spill] sm:$0xff] %v11743_v40 }
 0x188   :  { %15062 = vst [vmem:[#allocation45_spill] sm:$0xff] %v11725_v5  ;;  %v11745_v63 = vadd.f32 %v9072_v45, %v2668_v25  ;;  %v2667_v61 = vadd.f32 %v2348_v23, %v10994_v51  ;;  %v3058_v54 = vpop.f32.mrf.mxu0  ;;  %v11762_v51 = vld [vmem:[%s14810_s0 + $0x202] sm:$0xff]  ;;  %v7667_v25 = vld [vmem:[%s14810_s0 + $0x218] sm:$0xff] }
 0x189   :  { %v8977_v60 = vpop.f32.mrf.mxu1  ;;  %9220 = vmatmul.mubr.msk.f32.gmra.mxu1 %vm148_vm1, %v11734_v32 }
 0x18a   :  { %v11753_v58 = vadd.f32 %v3058_v54, %v2667_v61  ;;  %v2670_v37 = vadd.f32 %v8977_v60, %v11004_v3  ;;  %v9075_v5 = vpop.f32.mrf.mxu0  ;;  %9318 = vmatmul.mubr.msk.f32.gmra.mxu0 %vm148_vm1, %v7665_v26  ;;  %9222 = vmatprep.mubr.msk.f32.mxu1 %vm148_vm1, %v11743_v40  ;;  %v11771_v3 = vld [vmem:[%s14810_s0 + $0x212] sm:$0xff]  ;;  %v7668_v54 = vld [vmem:[%s14810_s0 + $0x228] sm:$0xff] }
 0x18b   :  { %v2358_v45 = vpop.f32.mrf.mxu1  ;;  %9320 = vmatprep.mubr.msk.f32.mxu0 %vm148_vm1, %v7666_v0  ;;  %15065 = vst [vmem:[#allocation50_spill] sm:$0xff] %v11771_v3 }
 0x18c   :  { %15064 = vst [vmem:[#allocation6_spill] sm:$0xff] %v11753_v58  ;;  %v11773_v23 = vadd.f32 %v9075_v5, %v2670_v37  ;;  %v2669_v26 = vadd.f32 %v2358_v45, %v11012_v56  ;;  %v3068_v61 = vpop.f32.mrf.mxu0  ;;  %v11790_v56 = vld [vmem:[%s14810_s0 + $0x21a] sm:$0xff]  ;;  %v7669_v37 = vld [vmem:[%s14810_s0 + $0x230] sm:$0xff] }
 0x18d   :  { %v8980_v60 = vpop.f32.mrf.mxu1  ;;  %9223 = vmatmul.mubr.msk.f32.gmra.mxu1 %vm148_vm1, %v11762_v51 }
 0x18e   :  { %v11781_v0 = vadd.f32 %v3068_v61, %v2669_v26  ;;  %v2672_v58 = vadd.f32 %v8980_v60, %v11022_v8  ;;  %v9078_v40 = vpop.f32.mrf.mxu0  ;;  %9321 = vmatmul.mubr.msk.f32.gmra.mxu0 %vm148_vm1, %v7667_v25  ;;  %9225 = vmatprep.mubr.msk.f32.mxu1 %vm148_vm1, %v11771_v3  ;;  %v11799_v8 = vld [vmem:[%s14810_s0 + $0x22a] sm:$0xff]  ;;  %v7670_v61 = vld [vmem:[%s14810_s0 + $0x240] sm:$0xff] }
 0x18f   :  { %v2368_v5 = vpop.f32.mrf.mxu1  ;;  %9323 = vmatprep.mubr.msk.f32.mxu0 %vm148_vm1, %v7668_v54  ;;  %15067 = vst [vmem:[#allocation52_spill] sm:$0xff] %v11799_v8 }
 0x190   :  { %15066 = vst [vmem:[#allocation51_spill] sm:$0xff] %v11781_v0  ;;  %v11801_v45 = vadd.f32 %v9078_v40, %v2672_v58  ;;  %v2671_v25 = vadd.f32 %v2368_v5, %v11030_v48  ;;  %v3078_v26 = vpop.f32.mrf.mxu0  ;;  %v11818_v48 = vld [vmem:[%s14810_s0 + $0x232] sm:$0xff]  ;;  %v7671_v58 = vld [vmem:[%s14810_s0 + $0x248] sm:$0xff] }
 0x191   :  { %v8983_v60 = vpop.f32.mrf.mxu1  ;;  %9226 = vmatmul.mubr.msk.f32.gmra.mxu1 %vm148_vm1, %v11790_v56 }
 0x192   :  { %v11809_v54 = vadd.f32 %v3078_v26, %v2671_v25  ;;  %v2674_v0 = vadd.f32 %v8983_v60, %v11040_v21  ;;  %v9081_v3 = vpop.f32.mrf.mxu0  ;;  %9324 = vmatmul.mubr.msk.f32.gmra.mxu0 %vm148_vm1, %v7669_v37  ;;  %9228 = vmatprep.mubr.msk.f32.mxu1 %vm148_vm1, %v11799_v8  ;;  %v11827_v21 = vld [vmem:[%s14810_s0 + $0x242] sm:$0xff]  ;;  %v7672_v26 = vld [vmem:[%s14810_s0 + $0x258] sm:$0xff] }
 0x193   :  { %v2378_v40 = vpop.f32.mrf.mxu1  ;;  %9326 = vmatprep.mubr.msk.f32.mxu0 %vm148_vm1, %v7670_v61  ;;  %15069 = vst [vmem:[#allocation54_spill] sm:$0xff] %v11827_v21 }
 0x194   :  { %15068 = vst [vmem:[#allocation53_spill] sm:$0xff] %v11809_v54  ;;  %v11829_v5 = vadd.f32 %v9081_v3, %v2674_v0  ;;  %v2673_v37 = vadd.f32 %v2378_v40, %v11048_v13  ;;  %v3088_v25 = vpop.f32.mrf.mxu0  ;;  %v11846_v13 = vld [vmem:[%s14810_s0 + $0x24a] sm:$0xff]  ;;  %v7673_v0 = vld [vmem:[%s14810_s0 + $0x260] sm:$0xff] }
 0x195   :  { %v8986_v60 = vpop.f32.mrf.mxu1  ;;  %9229 = vmatmul.mubr.msk.f32.gmra.mxu1 %vm148_vm1, %v11818_v48 }
 0x196   :  { %v11837_v61 = vadd.f32 %v3088_v25, %v2673_v37  ;;  %v2676_v54 = vadd.f32 %v8986_v60, %v11058_v16  ;;  %v9084_v8 = vpop.f32.mrf.mxu0  ;;  %9327 = vmatmul.mubr.msk.f32.gmra.mxu0 %vm148_vm1, %v7671_v58  ;;  %9231 = vmatprep.mubr.msk.f32.mxu1 %vm148_vm1, %v11827_v21  ;;  %v11855_v16 = vld [vmem:[%s14810_s0 + $0x25a] sm:$0xff]  ;;  %v7674_v25 = vld [vmem:[%s14810_s0 + $0x270] sm:$0xff] }
 0x197   :  { %v2388_v3 = vpop.f32.mrf.mxu1  ;;  %9329 = vmatprep.mubr.msk.f32.mxu0 %vm148_vm1, %v7672_v26  ;;  %15071 = vst [vmem:[#allocation56_spill] sm:$0xff] %v11855_v16 }
 0x198   :  { %15070 = vst [vmem:[#allocation55_spill] sm:$0xff] %v11837_v61  ;;  %v11857_v40 = vadd.f32 %v9084_v8, %v2676_v54  ;;  %v2675_v58 = vadd.f32 %v2388_v3, %v11066_v52  ;;  %v3098_v37 = vpop.f32.mrf.mxu0  ;;  %v11874_v52 = vld [vmem:[%s14810_s0 + $0x262] sm:$0xff]  ;;  %v7675_v54 = vld [vmem:[%s14810_s0 + $0x278] sm:$0xff] }
 0x199   :  { %v8989_v60 = vpop.f32.mrf.mxu1  ;;  %9232 = vmatmul.mubr.msk.f32.gmra.mxu1 %vm148_vm1, %v11846_v13 }
 0x19a   :  { %v11865_v26 = vadd.f32 %v3098_v37, %v2675_v58  ;;  %v2678_v61 = vadd.f32 %v8989_v60, %v11076_v20  ;;  %v9087_v21 = vpop.f32.mrf.mxu0  ;;  %9330 = vmatmul.mubr.msk.f32.gmra.mxu0 %vm148_vm1, %v7673_v0  ;;  %9234 = vmatprep.mubr.msk.f32.mxu1 %vm148_vm1, %v11855_v16  ;;  %v11883_v20 = vld [vmem:[%s14810_s0 + $0x272] sm:$0xff]  ;;  %v7676_v37 = vld [vmem:[%s14810_s0 + $0x288] sm:$0xff] }
 0x19b   :  { %v2398_v8 = vpop.f32.mrf.mxu1  ;;  %9332 = vmatprep.mubr.msk.f32.mxu0 %vm148_vm1, %v7674_v25  ;;  %15073 = vst [vmem:[#allocation58_spill] sm:$0xff] %v11883_v20 }
 0x19c   :  { %15072 = vst [vmem:[#allocation57_spill] sm:$0xff] %v11865_v26  ;;  %v11885_v3 = vadd.f32 %v9087_v21, %v2678_v61  ;;  %v2677_v0 = vadd.f32 %v2398_v8, %v11084_v62  ;;  %v3108_v58 = vpop.f32.mrf.mxu0  ;;  %v11902_v62 = vld [vmem:[%s14810_s0 + $0x27a] sm:$0xff]  ;;  %v7677_v61 = vld [vmem:[%s14810_s0 + $0x290] sm:$0xff] }
 0x19d   :  { %v8992_v60 = vpop.f32.mrf.mxu1  ;;  %9235 = vmatmul.mubr.msk.f32.gmra.mxu1 %vm148_vm1, %v11874_v52 }
 0x19e   :  { %v11893_v25 = vadd.f32 %v3108_v58, %v2677_v0  ;;  %v2680_v26 = vadd.f32 %v8992_v60, %v11094_v24  ;;  %v9090_v16 = vpop.f32.mrf.mxu0  ;;  %9333 = vmatmul.mubr.msk.f32.gmra.mxu0 %vm148_vm1, %v7675_v54  ;;  %9237 = vmatprep.mubr.msk.f32.mxu1 %vm148_vm1, %v11883_v20  ;;  %v11911_v24 = vld [vmem:[%s14810_s0 + $0x28a] sm:$0xff]  ;;  %v7678_v58 = vld [vmem:[%s14810_s0 + $0x2a0] sm:$0xff] }
 0x19f   :  { %v2408_v21 = vpop.f32.mrf.mxu1  ;;  %9335 = vmatprep.mubr.msk.f32.mxu0 %vm148_vm1, %v7676_v37  ;;  %15075 = vst [vmem:[#allocation60_spill] sm:$0xff] %v11911_v24 }
 0x1a0   :  { %15074 = vst [vmem:[#allocation59_spill] sm:$0xff] %v11893_v25  ;;  %v11913_v8 = vadd.f32 %v9090_v16, %v2680_v26  ;;  %v2679_v54 = vadd.f32 %v2408_v21, %v11102_v59  ;;  %v3118_v0 = vpop.f32.mrf.mxu0  ;;  %v11930_v59 = vld [vmem:[%s14810_s0 + $0x292] sm:$0xff]  ;;  %v7679_v26 = vld [vmem:[%s14810_s0 + $0x2a8] sm:$0xff] }
 0x1a1   :  { %v8995_v60 = vpop.f32.mrf.mxu1  ;;  %9238 = vmatmul.mubr.msk.f32.gmra.mxu1 %vm148_vm1, %v11902_v62 }
 0x1a2   :  { %v11921_v37 = vadd.f32 %v3118_v0, %v2679_v54  ;;  %v2682_v25 = vadd.f32 %v8995_v60, %v11112_v28  ;;  %v9093_v20 = vpop.f32.mrf.mxu0  ;;  %9336 = vmatmul.mubr.msk.f32.gmra.mxu0 %vm148_vm1, %v7677_v61  ;;  %9240 = vmatprep.mubr.msk.f32.mxu1 %vm148_vm1, %v11911_v24  ;;  %v11939_v28 = vld [vmem:[%s14810_s0 + $0x2a2] sm:$0xff]  ;;  %v7680_v0 = vld [vmem:[%s14810_s0 + $0x2b8] sm:$0xff] }
 0x1a3   :  { %v2418_v16 = vpop.f32.mrf.mxu1  ;;  %9338 = vmatprep.mubr.msk.f32.mxu0 %vm148_vm1, %v7678_v58  ;;  %15077 = vst [vmem:[#allocation62_spill] sm:$0xff] %v11939_v28 }
 0x1a4   :  { %15076 = vst [vmem:[#allocation61_spill] sm:$0xff] %v11921_v37  ;;  %v11941_v21 = vadd.f32 %v9093_v20, %v2682_v25  ;;  %v2681_v61 = vadd.f32 %v2418_v16, %v11120_v36  ;;  %v3128_v54 = vpop.f32.mrf.mxu0  ;;  %v11958_v36 = vld [vmem:[%s14810_s0 + $0x2aa] sm:$0xff]  ;;  %v7681_v25 = vld [vmem:[%s14810_s0 + $0x2c0] sm:$0xff] }
 0x1a5   :  { %v8998_v60 = vpop.f32.mrf.mxu1  ;;  %9241 = vmatmul.mubr.msk.f32.gmra.mxu1 %vm148_vm1, %v11930_v59 }
 0x1a6   :  { %v11949_v58 = vadd.f32 %v3128_v54, %v2681_v61  ;;  %v2684_v37 = vadd.f32 %v8998_v60, %v11130_v34  ;;  %v9096_v24 = vpop.f32.mrf.mxu0  ;;  %9339 = vmatmul.mubr.msk.f32.gmra.mxu0 %vm148_vm1, %v7679_v26  ;;  %9243 = vmatprep.mubr.msk.f32.mxu1 %vm148_vm1, %v11939_v28  ;;  %v11967_v34 = vld [vmem:[%s14810_s0 + $0x2ba] sm:$0xff]  ;;  %v7682_v54 = vld [vmem:[%s14810_s0 + $0x2d0] sm:$0xff] }
 0x1a7   :  { %v2428_v20 = vpop.f32.mrf.mxu1  ;;  %9341 = vmatprep.mubr.msk.f32.mxu0 %vm148_vm1, %v7680_v0  ;;  %15079 = vst [vmem:[#allocation64_spill] sm:$0xff] %v11967_v34 }
 0x1a8   :  { %15078 = vst [vmem:[#allocation63_spill] sm:$0xff] %v11949_v58  ;;  %v11969_v16 = vadd.f32 %v9096_v24, %v2684_v37  ;;  %v2683_v26 = vadd.f32 %v2428_v20, %v11138_v9  ;;  %v3138_v61 = vpop.f32.mrf.mxu0  ;;  %v11986_v9 = vld [vmem:[%s14810_s0 + $0x2c2] sm:$0xff]  ;;  %v7683_v37 = vld [vmem:[%s14810_s0 + $0x2d8] sm:$0xff] }
 0x1a9   :  { %v9001_v60 = vpop.f32.mrf.mxu1  ;;  %9244 = vmatmul.mubr.msk.f32.gmra.mxu1 %vm148_vm1, %v11958_v36 }
 0x1aa   :  { %v11977_v0 = vadd.f32 %v3138_v61, %v2683_v26  ;;  %v2686_v58 = vadd.f32 %v9001_v60, %v11148_v38  ;;  %v9099_v28 = vpop.f32.mrf.mxu0  ;;  %9342 = vmatmul.mubr.msk.f32.gmra.mxu0 %vm148_vm1, %v7681_v25  ;;  %9246 = vmatprep.mubr.msk.f32.mxu1 %vm148_vm1, %v11967_v34  ;;  %v11995_v38 = vld [vmem:[%s14810_s0 + $0x2d2] sm:$0xff]  ;;  %v7684_v61 = vld [vmem:[%s14810_s0 + $0x2e8] sm:$0xff] }
 0x1ab   :  { %v2438_v24 = vpop.f32.mrf.mxu1  ;;  %9344 = vmatprep.mubr.msk.f32.mxu0 %vm148_vm1, %v7682_v54  ;;  %15081 = vst [vmem:[#allocation66_spill] sm:$0xff] %v11995_v38 }
 0x1ac   :  { %15080 = vst [vmem:[#allocation65_spill] sm:$0xff] %v11977_v0  ;;  %v11997_v20 = vadd.f32 %v9099_v28, %v2686_v58  ;;  %v2685_v25 = vadd.f32 %v2438_v24, %v11156_v17  ;;  %v3148_v26 = vpop.f32.mrf.mxu0  ;;  %v12014_v17 = vld [vmem:[%s14810_s0 + $0x2da] sm:$0xff]  ;;  %v7685_v58 = vld [vmem:[%s14810_s0 + $0x2f0] sm:$0xff] }
 0x1ad   :  { %v9004_v60 = vpop.f32.mrf.mxu1  ;;  %9247 = vmatmul.mubr.msk.f32.gmra.mxu1 %vm148_vm1, %v11986_v9 }
 0x1ae   :  { %v12005_v54 = vadd.f32 %v3148_v26, %v2685_v25  ;;  %v2688_v0 = vadd.f32 %v9004_v60, %v11166_v42  ;;  %v9102_v34 = vpop.f32.mrf.mxu0  ;;  %9345 = vmatmul.mubr.msk.f32.gmra.mxu0 %vm148_vm1, %v7683_v37  ;;  %9249 = vmatprep.mubr.msk.f32.mxu1 %vm148_vm1, %v11995_v38  ;;  %v12023_v42 = vld [vmem:[%s14810_s0 + $0x2ea] sm:$0xff]  ;;  %v7686_v26 = vld [vmem:[%s14810_s0 + $0x300] sm:$0xff] }
 0x1af   :  { %v2448_v28 = vpop.f32.mrf.mxu1  ;;  %9347 = vmatprep.mubr.msk.f32.mxu0 %vm148_vm1, %v7684_v61  ;;  %15083 = vst [vmem:[#allocation68_spill] sm:$0xff] %v12023_v42 }
 0x1b0   :  { %15082 = vst [vmem:[#allocation67_spill] sm:$0xff] %v12005_v54  ;;  %v12025_v24 = vadd.f32 %v9102_v34, %v2688_v0  ;;  %v2687_v37 = vadd.f32 %v2448_v28, %v11174_v27  ;;  %v3158_v25 = vpop.f32.mrf.mxu0  ;;  %v12042_v27 = vld [vmem:[%s14810_s0 + $0x2f2] sm:$0xff]  ;;  %v7687_v0 = vld [vmem:[%s14810_s0 + $0x308] sm:$0xff] }
 0x1b1   :  { %v9007_v60 = vpop.f32.mrf.mxu1  ;;  %9250 = vmatmul.mubr.msk.f32.gmra.mxu1 %vm148_vm1, %v12014_v17 }
 0x1b2   :  { %v12033_v61 = vadd.f32 %v3158_v25, %v2687_v37  ;;  %v2690_v54 = vadd.f32 %v9007_v60, %v11184_v46  ;;  %v9105_v38 = vpop.f32.mrf.mxu0  ;;  %9348 = vmatmul.mubr.msk.f32.gmra.mxu0 %vm148_vm1, %v7685_v58  ;;  %9252 = vmatprep.mubr.msk.f32.mxu1 %vm148_vm1, %v12023_v42  ;;  %v12051_v46 = vld [vmem:[%s14810_s0 + $0x302] sm:$0xff]  ;;  %v7688_v25 = vld [vmem:[%s14810_s0 + $0x318] sm:$0xff] }
 0x1b3   :  { %v2458_v34 = vpop.f32.mrf.mxu1  ;;  %9350 = vmatprep.mubr.msk.f32.mxu0 %vm148_vm1, %v7686_v26 }
 0x1b4   :  { %15084 = vst [vmem:[#allocation69_spill] sm:$0xff] %v12033_v61  ;;  %v12053_v28 = vadd.f32 %v9105_v38, %v2690_v54  ;;  %v2689_v58 = vadd.f32 %v2458_v34, %v11192_v33  ;;  %v3168_v37 = vpop.f32.mrf.mxu0  ;;  %v12070_v33 = vld [vmem:[%s14810_s0 + $0x30a] sm:$0xff]  ;;  %v7689_v54 = vld [vmem:[%s14810_s0 + $0x320] sm:$0xff] }
 0x1b5   :  { %v9010_v60 = vpop.f32.mrf.mxu1  ;;  %9253 = vmatmul.mubr.msk.f32.gmra.mxu1 %vm148_vm1, %v12042_v27 }
 0x1b6   :  { %v12061_v26 = vadd.f32 %v3168_v37, %v2689_v58  ;;  %v2692_v61 = vadd.f32 %v9010_v60, %v11202_v50  ;;  %v9108_v42 = vpop.f32.mrf.mxu0  ;;  %9351 = vmatmul.mubr.msk.f32.gmra.mxu0 %vm148_vm1, %v7687_v0  ;;  %9255 = vmatprep.mubr.msk.f32.mxu1 %vm148_vm1, %v12051_v46  ;;  %v12079_v50 = vld [vmem:[%s14810_s0 + $0x31a] sm:$0xff] }
 0x1b7   :  { %v2468_v38 = vpop.f32.mrf.mxu1  ;;  %9353 = vmatprep.mubr.msk.f32.mxu0 %vm148_vm1, %v7688_v25 }
 0x1b8   :  { %15085 = vst [vmem:[#allocation70_spill] sm:$0xff] %v12061_v26  ;;  %v12081_v34 = vadd.f32 %v9108_v42, %v2692_v61  ;;  %v2691_v0 = vadd.f32 %v2468_v38, %v11210_v49  ;;  %v3178_v58 = vpop.f32.mrf.mxu0  ;;  %v12095_v42 = vld [vmem:[%s14810_s0 + $0x322] sm:$0xff]  ;;  %v12102_v61 = vld [vmem:[%s14810_s0 + $0x332] sm:$0xff] }
 0x1b9   :  { %v9013_v37 = vpop.f32.mrf.mxu1  ;;  %9256 = vmatmul.mubr.msk.f32.gmra.mxu1 %vm148_vm1, %v12070_v33 }
 0x1ba   :  { %v12086_v60 = vadd.f32 %v3178_v58, %v2691_v0  ;;  %v2694_v25 = vadd.f32 %v9013_v37, %v11225_v7  ;;  %v9111_v26 = vpop.f32.mrf.mxu0  ;;  %9354 = vmatmul.mubr.msk.f32.gmra.mxu0 %vm148_vm1, %v7689_v54  ;;  %9258 = vmatprep.mubr.msk.f32.mxu1 %vm148_vm1, %v12079_v50  ;;  %v7692_v0 = vld [vmem:[%s14810_s0 + $0x348] sm:$0xff] }
 0x1bb   :  { %v2478_v49 = vpop.f32.mrf.mxu1  ;;  %9356 = vmatprep.mubr.msk.f32.mxu0 %vm148_vm1, %v11223_v4 }
 0x1bc   :  { %15086 = vst [vmem:[#allocation71_spill] sm:$0xff] %v12086_v60  ;;  %v12104_v7 = vadd.f32 %v9111_v26, %v2694_v25  ;;  %v2693_v38 = vadd.f32 %v2478_v49, %v11233_v1  ;;  %v3188_v54 = vpop.f32.mrf.mxu0  ;;  %v12122_v1 = vld [vmem:[%s14810_s0 + $0x33a] sm:$0xff]  ;;  %v7693_v25 = vld [vmem:[%s14810_s0 + $0x350] sm:$0xff] }
 0x1bd   :  { %v9016_v58 = vpop.f32.mrf.mxu1  ;;  %9259 = vmatmul.mubr.msk.f32.gmra.mxu1 %vm148_vm1, %v12095_v42 }
 0x1be   :  { %v12112_v37 = vadd.f32 %v3188_v54, %v2693_v38  ;;  %v2696_v4 = vadd.f32 %v9016_v58, %v11251_v57  ;;  %v9114_v60 = vpop.f32.mrf.mxu0  ;;  %9357 = vmatmul.mubr.msk.f32.gmra.mxu0 %vm148_vm1, %v11242_v19  ;;  %9261 = vmatprep.mubr.msk.f32.mxu1 %vm148_vm1, %v12102_v61  ;;  %v7760_v57 = vld [vmem:[%s14810_s0 + $0x31] sm:$0xff] }
 0x1bf   :  { %v2488_v26 = vpop.f32.mrf.mxu1  ;;  %9359 = vmatprep.mubr.msk.f32.mxu0 %vm148_vm1, %v7692_v0 }
 0x1c0   :  { %15087 = vst [vmem:[#allocation72_spill] sm:$0xff] %v12112_v37  ;;  %v12131_v19 = vadd.f32 %v9114_v60, %v2696_v4  ;;  %v2695_v49 = vadd.f32 %v2488_v26, %v11259_v35  ;;  %v3198_v38 = vpop.f32.mrf.mxu0  ;;  %v7761_v60 = vld [vmem:[%s14810_s0 + $0x39] sm:$0xff]  ;;  %v7762_v35 = vld [vmem:[%s14810_s0 + $0x49] sm:$0xff] }
 0x1c1   :  { %v9019_v54 = vpop.f32.mrf.mxu1  ;;  %9262 = vmatmul.mubr.msk.f32.gmra.mxu1 %vm148_vm1, %v12122_v1 }
 0x1c2   :  { %v12136_v58 = vadd.f32 %v3198_v38, %v2695_v49  ;;  %v2698_v0 = vadd.f32 %v9019_v54, %v11271_v44  ;;  %v9117_v37 = vpop.f32.mrf.mxu0  ;;  %9360 = vmatmul.mubr.msk.f32.gmra.mxu0 %vm148_vm1, %v7693_v25  ;;  %9364 = vmatprep.mubr.msk.f32.mxu1 %vm148_vm1, %v7760_v57 }
 0x1c3   :  { %v2498_v4 = vpop.f32.mrf.mxu1  ;;  %9462 = vmatprep.mubr.msk.f32.mxu0 %vm148_vm1, %v11277_v29  ;;  %v7763_v29 = vld [vmem:[%s14810_s0 + $0x51] sm:$0xff] }
 0x1c4   :  { %v12149_v26 = vadd.f32 %v9117_v37, %v2698_v0  ;;  %v2697_v44 = vadd.f32 %v2498_v4, %v11283_v41  ;;  %v3208_v49 = vpop.f32.mrf.mxu0  ;;  %v7764_v41 = vld [vmem:[%s14810_s0 + $0x61] sm:$0xff] }
 0x1c5   :  { %v9022_v25 = vpop.f32.mrf.mxu1  ;;  %9365 = vmatmul.mubr.msk.f32.vlgmr.msra.gmra.mxu1 %vm148_vm1, %v7761_v60 }
 0x1c6   :  { %v12153_v57 = vadd.f32 %v3208_v49, %v2697_v44  ;;  %v2700_v38 = vadd.f32 %v9022_v25, %v11306_v2  ;;  %v9120_v54 = vpop.f32.mrf.mxu0  ;;  %9463 = vmatmul.mubr.msk.f32.vlgmr.msra.gmra.mxu0 %vm148_vm1, %v11292_v31  ;;  %9367 = vmatprep.mubr.msk.f32.mxu1 %vm148_vm1, %v7762_v35  ;;  %v15088_v2 = vld [vmem:[#allocation7_spill] sm:$0xff] }
 0x1c7   :  { %v2508_v37 = vpop.f32.mrf.mxu1  ;;  %9465 = vmatprep.mubr.msk.f32.mxu0 %vm148_vm1, %v11304_v11  ;;  %v7765_v11 = vld [vmem:[%s14810_s0 + $0x69] sm:$0xff] }
 0x1c8   :  { %v12167_v0 = vadd.f32 %v9120_v54, %v2700_v38  ;;  %v2699_v60 = vadd.f32 %v2508_v37, %v15088_v2  ;;  %v3218_v4 = vpop.f32.mrf.mxu0  ;;  %v15089_v38 = vld [vmem:[#allocation8_spill] sm:$0xff]  ;;  %v7766_v54 = vld [vmem:[%s14810_s0 + $0x79] sm:$0xff] }
 0x1c9   :  { %v9025_v31 = vpop.f32.mrf.mxu1  ;;  %9368 = vmatmul.mubr.msk.f32.gmra.mxu1 %vm148_vm1, %v7763_v29 }
 0x1ca   :  { %v12171_v35 = vadd.f32 %v3218_v4, %v2699_v60  ;;  %v2702_v44 = vadd.f32 %v9025_v31, %v11335_v39  ;;  %v9123_v49 = vpop.f32.mrf.mxu0  ;;  %9466 = vmatmul.mubr.msk.f32.gmra.mxu0 %vm148_vm1, %v11324_v43  ;;  %9370 = vmatprep.mubr.msk.f32.mxu1 %vm148_vm1, %v7764_v41  ;;  %v15090_v39 = vld [vmem:[#allocation9_spill] sm:$0xff]  ;;  %v7767_v31 = vld [vmem:[%s14810_s0 + $0x81] sm:$0xff] }
 0x1cb   :  { %v2518_v25 = vpop.f32.mrf.mxu1  ;;  %9468 = vmatprep.mubr.msk.f32.mxu0 %vm148_vm1, %v15089_v38 }
 0x1cc   :  { %v12185_v29 = vadd.f32 %v9123_v49, %v2702_v44  ;;  %v2701_v37 = vadd.f32 %v2518_v25, %v15090_v39  ;;  %v3228_v2 = vpop.f32.mrf.mxu0  ;;  %v15091_v49 = vld [vmem:[#allocation10_spill] sm:$0xff] }
 0x1cd   :  { %v9028_v43 = vpop.f32.mrf.mxu1  ;;  %9371 = vmatmul.mubr.msk.f32.gmra.mxu1 %vm148_vm1, %v7765_v11  ;;  %v7768_v11 = vld [vmem:[%s14810_s0 + $0x91] sm:$0xff] }
 0x1ce   :  { %v12189_v41 = vadd.f32 %v3228_v2, %v2701_v37  ;;  %v2704_v60 = vadd.f32 %v9028_v43, %v11363_v55  ;;  %v9126_v4 = vpop.f32.mrf.mxu0  ;;  %9469 = vmatmul.mubr.msk.f32.gmra.mxu0 %vm148_vm1, %v11352_v12  ;;  %9373 = vmatprep.mubr.msk.f32.mxu1 %vm148_vm1, %v7766_v54  ;;  %v15092_v55 = vld [vmem:[#allocation11_spill] sm:$0xff]  ;;  %v7769_v43 = vld [vmem:[%s14810_s0 + $0x99] sm:$0xff] }
 0x1cf   :  { %v2528_v44 = vpop.f32.mrf.mxu1  ;;  %9471 = vmatprep.mubr.msk.f32.mxu0 %vm148_vm1, %v15091_v49 }
 0x1d0   :  { %v12203_v25 = vadd.f32 %v9126_v4, %v2704_v60  ;;  %v2703_v38 = vadd.f32 %v2528_v44, %v15092_v55  ;;  %v3238_v39 = vpop.f32.mrf.mxu0  ;;  %v15093_v4 = vld [vmem:[#allocation12_spill] sm:$0xff] }
 0x1d1   :  { %v9031_v12 = vpop.f32.mrf.mxu1  ;;  %9374 = vmatmul.mubr.msk.f32.gmra.mxu1 %vm148_vm1, %v7767_v31  ;;  %v7770_v31 = vld [vmem:[%s14810_s0 + $0xa9] sm:$0xff] }
 0x1d2   :  { %v12207_v54 = vadd.f32 %v3238_v39, %v2703_v38  ;;  %v2706_v37 = vadd.f32 %v9031_v12, %v11391_v6  ;;  %v9129_v2 = vpop.f32.mrf.mxu0  ;;  %9472 = vmatmul.mubr.msk.f32.gmra.mxu0 %vm148_vm1, %v11380_v14  ;;  %9376 = vmatprep.mubr.msk.f32.mxu1 %vm148_vm1, %v7768_v11  ;;  %v15094_v6 = vld [vmem:[#allocation13_spill] sm:$0xff] }
 0x1d3   :  { %v2538_v60 = vpop.f32.mrf.mxu1  ;;  %9474 = vmatprep.mubr.msk.f32.mxu0 %vm148_vm1, %v15093_v4  ;;  %v7771_v12 = vld [vmem:[%s14810_s0 + $0xb1] sm:$0xff] }
 0x1d4   :  { %v12221_v44 = vadd.f32 %v9129_v2, %v2706_v37  ;;  %v2705_v49 = vadd.f32 %v2538_v60, %v15094_v6  ;;  %v3248_v55 = vpop.f32.mrf.mxu0  ;;  %v15095_v2 = vld [vmem:[#allocation14_spill] sm:$0xff] }
 0x1d5   :  { %v9034_v14 = vpop.f32.mrf.mxu1  ;;  %9377 = vmatmul.mubr.msk.f32.gmra.mxu1 %vm148_vm1, %v7769_v43  ;;  %v7772_v43 = vld [vmem:[%s14810_s0 + $0xc1] sm:$0xff] }
 0x1d6   :  { %v12225_v11 = vadd.f32 %v3248_v55, %v2705_v49  ;;  %v2708_v38 = vadd.f32 %v9034_v14, %v11419_v47  ;;  %v9132_v39 = vpop.f32.mrf.mxu0  ;;  %9475 = vmatmul.mubr.msk.f32.gmra.mxu0 %vm148_vm1, %v11408_v18  ;;  %9379 = vmatprep.mubr.msk.f32.mxu1 %vm148_vm1, %v7770_v31  ;;  %v15096_v47 = vld [vmem:[#allocation15_spill] sm:$0xff] }
 0x1d7   :  { %v2548_v37 = vpop.f32.mrf.mxu1  ;;  %9477 = vmatprep.mubr.msk.f32.mxu0 %vm148_vm1, %v15095_v2  ;;  %v7773_v14 = vld [vmem:[%s14810_s0 + $0xc9] sm:$0xff] }
 0x1d8   :  { %v12239_v60 = vadd.f32 %v9132_v39, %v2708_v38  ;;  %v2707_v4 = vadd.f32 %v2548_v37, %v15096_v47  ;;  %v3258_v6 = vpop.f32.mrf.mxu0  ;;  %v15098_v39 = vld [vmem:[#allocation16_spill] sm:$0xff] }
 0x1d9   :  { %v9037_v18 = vpop.f32.mrf.mxu1  ;;  %9380 = vmatmul.mubr.msk.f32.gmra.mxu1 %vm148_vm1, %v7771_v12  ;;  %v7774_v12 = vld [vmem:[%s14810_s0 + $0xd9] sm:$0xff] }
 0x1da   :  { %v12243_v31 = vadd.f32 %v3258_v6, %v2707_v4  ;;  %v2710_v49 = vadd.f32 %v9037_v18, %v11447_v15  ;;  %v9135_v55 = vpop.f32.mrf.mxu0  ;;  %9478 = vmatmul.mubr.msk.f32.gmra.mxu0 %vm148_vm1, %v11436_v22  ;;  %9382 = vmatprep.mubr.msk.f32.mxu1 %vm148_vm1, %v7772_v43  ;;  %v15100_v15 = vld [vmem:[#allocation17_spill] sm:$0xff]  ;;  %v15102_v4 = vld [vmem:[#allocation20_spill] sm:$0xff] }
 0x1db   :  { %v2558_v38 = vpop.f32.mrf.mxu1  ;;  %9480 = vmatprep.mubr.msk.f32.mxu0 %vm148_vm1, %v15098_v39 }
 0x1dc   :  { %15097 = vst [vmem:[#allocation7_spill] sm:$0xff] %v12243_v31  ;;  %v12257_v37 = vadd.f32 %v9135_v55, %v2710_v49  ;;  %v2709_v2 = vadd.f32 %v2558_v38, %v15100_v15  ;;  %v3268_v47 = vpop.f32.mrf.mxu0  ;;  %v15103_v31 = vld [vmem:[#allocation18_spill] sm:$0xff]  ;;  %v15104_v38 = vld [vmem:[#allocation19_spill] sm:$0xff]  ;;  %v15106_v15 = vld [vmem:[#allocation21_spill] sm:$0xff] }
 0x1dd   :  { %v9040_v22 = vpop.f32.mrf.mxu1  ;;  %9383 = vmatmul.mubr.msk.f32.gmra.mxu1 %vm148_vm1, %v7773_v14  ;;  %v7775_v49 = vld [vmem:[%s14810_s0 + $0xe1] sm:$0xff]  ;;  %v7776_v14 = vld [vmem:[%s14810_s0 + $0xf1] sm:$0xff] }
 0x1de   :  { %15099 = vst [vmem:[#allocation8_spill] sm:$0xff] %v12257_v37  ;;  %v12261_v43 = vadd.f32 %v3268_v47, %v2709_v2  ;;  %v2712_v6 = vadd.f32 %v9040_v22, %v15102_v4  ;;  %v9138_v18 = vpop.f32.mrf.mxu0  ;;  %9481 = vmatmul.mubr.msk.f32.gmra.mxu0 %vm148_vm1, %v15103_v31  ;;  %9385 = vmatprep.mubr.msk.f32.mxu1 %vm148_vm1, %v7774_v12  ;;  %v15108_v22 = vld [vmem:[#allocation24_spill] sm:$0xff]  ;;  %v15109_v37 = vld [vmem:[#allocation22_spill] sm:$0xff] }
 0x1df   :  { %v2568_v55 = vpop.f32.mrf.mxu1  ;;  %9483 = vmatprep.mubr.msk.f32.mxu0 %vm148_vm1, %v15104_v38 }
 0x1e0   :  { %15101 = vst [vmem:[#allocation9_spill] sm:$0xff] %v12261_v43  ;;  %v12275_v39 = vadd.f32 %v9138_v18, %v2712_v6  ;;  %v2711_v2 = vadd.f32 %v2568_v55, %v15106_v15  ;;  %v3278_v47 = vpop.f32.mrf.mxu0  ;;  %v7777_v6 = vld [vmem:[%s14810_s0 + $0xf9] sm:$0xff]  ;;  %v15110_v55 = vld [vmem:[#allocation23_spill] sm:$0xff] }
 0x1e1   :  { %v9043_v31 = vpop.f32.mrf.mxu1  ;;  %9386 = vmatmul.mubr.msk.f32.gmra.mxu1 %vm148_vm1, %v7775_v49  ;;  %v7778_v49 = vld [vmem:[%s14810_s0 + $0x109] sm:$0xff]  ;;  %v15112_v15 = vld [vmem:[#allocation25_spill] sm:$0xff] }
 0x1e2   :  { %15105 = vst [vmem:[#allocation10_spill] sm:$0xff] %v12275_v39  ;;  %v12279_v12 = vadd.f32 %v3278_v47, %v2711_v2  ;;  %v2714_v4 = vadd.f32 %v9043_v31, %v15108_v22  ;;  %v9141_v43 = vpop.f32.mrf.mxu0  ;;  %9484 = vmatmul.mubr.msk.f32.gmra.mxu0 %vm148_vm1, %v15109_v37  ;;  %9388 = vmatprep.mubr.msk.f32.mxu1 %vm148_vm1, %v7776_v14  ;;  %v15114_v31 = vld [vmem:[#allocation28_spill] sm:$0xff]  ;;  %v15115_v39 = vld [vmem:[#allocation26_spill] sm:$0xff] }
 0x1e3   :  { %v2578_v18 = vpop.f32.mrf.mxu1  ;;  %9486 = vmatprep.mubr.msk.f32.mxu0 %vm148_vm1, %v15110_v55 }
 0x1e4   :  { %15107 = vst [vmem:[#allocation11_spill] sm:$0xff] %v12279_v12  ;;  %v12293_v38 = vadd.f32 %v9141_v43, %v2714_v4  ;;  %v2713_v2 = vadd.f32 %v2578_v18, %v15112_v15  ;;  %v3288_v47 = vpop.f32.mrf.mxu0  ;;  %v7779_v43 = vld [vmem:[%s14810_s0 + $0x111] sm:$0xff]  ;;  %v15116_v18 = vld [vmem:[#allocation27_spill] sm:$0xff] }
 0x1e5   :  { %v9046_v37 = vpop.f32.mrf.mxu1  ;;  %9389 = vmatmul.mubr.msk.f32.gmra.mxu1 %vm148_vm1, %v7777_v6  ;;  %v7780_v6 = vld [vmem:[%s14810_s0 + $0x121] sm:$0xff]  ;;  %v15118_v15 = vld [vmem:[#allocation29_spill] sm:$0xff] }
 0x1e6   :  { %15111 = vst [vmem:[#allocation12_spill] sm:$0xff] %v12293_v38  ;;  %v12297_v14 = vadd.f32 %v3288_v47, %v2713_v2  ;;  %v2716_v22 = vadd.f32 %v9046_v37, %v15114_v31  ;;  %v9144_v12 = vpop.f32.mrf.mxu0  ;;  %9487 = vmatmul.mubr.msk.f32.gmra.mxu0 %vm148_vm1, %v15115_v39  ;;  %9391 = vmatprep.mubr.msk.f32.mxu1 %vm148_vm1, %v7778_v49  ;;  %v15120_v37 = vld [vmem:[#allocation32_spill] sm:$0xff]  ;;  %v15121_v38 = vld [vmem:[#allocation30_spill] sm:$0xff] }
 0x1e7   :  { %v2588_v4 = vpop.f32.mrf.mxu1  ;;  %9489 = vmatprep.mubr.msk.f32.mxu0 %vm148_vm1, %v15116_v18 }
 0x1e8   :  { %15113 = vst [vmem:[#allocation13_spill] sm:$0xff] %v12297_v14  ;;  %v12311_v55 = vadd.f32 %v9144_v12, %v2716_v22  ;;  %v2715_v2 = vadd.f32 %v2588_v4, %v15118_v15  ;;  %v3298_v47 = vpop.f32.mrf.mxu0  ;;  %v7781_v12 = vld [vmem:[%s14810_s0 + $0x129] sm:$0xff]  ;;  %v15124_v15 = vld [vmem:[#allocation33_spill] sm:$0xff] }
 0x1e9   :  { %v9049_v39 = vpop.f32.mrf.mxu1  ;;  %9392 = vmatmul.mubr.msk.f32.gmra.mxu1 %vm148_vm1, %v7779_v43  ;;  %v15122_v4 = vld [vmem:[#allocation31_spill] sm:$0xff]  ;;  %v7782_v43 = vld [vmem:[%s14810_s0 + $0x139] sm:$0xff] }
 0x1ea   :  { %15117 = vst [vmem:[#allocation14_spill] sm:$0xff] %v12311_v55  ;;  %v12315_v49 = vadd.f32 %v3298_v47, %v2715_v2  ;;  %v2718_v31 = vadd.f32 %v9049_v39, %v15120_v37  ;;  %v9147_v14 = vpop.f32.mrf.mxu0  ;;  %9490 = vmatmul.mubr.msk.f32.gmra.mxu0 %vm148_vm1, %v15121_v38  ;;  %9394 = vmatprep.mubr.msk.f32.mxu1 %vm148_vm1, %v7780_v6  ;;  %v15126_v39 = vld [vmem:[#allocation36_spill] sm:$0xff]  ;;  %v15127_v55 = vld [vmem:[#allocation34_spill] sm:$0xff] }
 0x1eb   :  { %v2598_v22 = vpop.f32.mrf.mxu1  ;;  %9492 = vmatprep.mubr.msk.f32.mxu0 %vm148_vm1, %v15122_v4 }
 0x1ec   :  { %15119 = vst [vmem:[#allocation15_spill] sm:$0xff] %v12315_v49  ;;  %v12329_v18 = vadd.f32 %v9147_v14, %v2718_v31  ;;  %v2717_v2 = vadd.f32 %v2598_v22, %v15124_v15  ;;  %v3308_v47 = vpop.f32.mrf.mxu0  ;;  %v7783_v14 = vld [vmem:[%s14810_s0 + $0x141] sm:$0xff]  ;;  %v15130_v15 = vld [vmem:[#allocation37_spill] sm:$0xff] }
 0x1ed   :  { %v9052_v38 = vpop.f32.mrf.mxu1  ;;  %9395 = vmatmul.mubr.msk.f32.gmra.mxu1 %vm148_vm1, %v7781_v12  ;;  %v15128_v22 = vld [vmem:[#allocation35_spill] sm:$0xff]  ;;  %v7784_v12 = vld [vmem:[%s14810_s0 + $0x151] sm:$0xff] }
 0x1ee   :  { %15123 = vst [vmem:[#allocation16_spill] sm:$0xff] %v12329_v18  ;;  %v12333_v6 = vadd.f32 %v3308_v47, %v2717_v2  ;;  %v2720_v37 = vadd.f32 %v9052_v38, %v15126_v39  ;;  %v9150_v49 = vpop.f32.mrf.mxu0  ;;  %9493 = vmatmul.mubr.msk.f32.gmra.mxu0 %vm148_vm1, %v15127_v55  ;;  %9397 = vmatprep.mubr.msk.f32.mxu1 %vm148_vm1, %v7782_v43  ;;  %v15132_v38 = vld [vmem:[#allocation40_spill] sm:$0xff]  ;;  %v15133_v18 = vld [vmem:[#allocation38_spill] sm:$0xff] }
 0x1ef   :  { %v2608_v31 = vpop.f32.mrf.mxu1  ;;  %9495 = vmatprep.mubr.msk.f32.mxu0 %vm148_vm1, %v15128_v22 }
 0x1f0   :  { %15125 = vst [vmem:[#allocation17_spill] sm:$0xff] %v12333_v6  ;;  %v12347_v4 = vadd.f32 %v9150_v49, %v2720_v37  ;;  %v2719_v2 = vadd.f32 %v2608_v31, %v15130_v15  ;;  %v3318_v47 = vpop.f32.mrf.mxu0  ;;  %v7785_v49 = vld [vmem:[%s14810_s0 + $0x159] sm:$0xff]  ;;  %v15134_v31 = vld [vmem:[#allocation39_spill] sm:$0xff] }
 0x1f1   :  { %v9055_v55 = vpop.f32.mrf.mxu1  ;;  %9398 = vmatmul.mubr.msk.f32.gmra.mxu1 %vm148_vm1, %v7783_v14  ;;  %v7786_v14 = vld [vmem:[%s14810_s0 + $0x169] sm:$0xff]  ;;  %v15136_v15 = vld [vmem:[#allocation41_spill] sm:$0xff] }
 0x1f2   :  { %15129 = vst [vmem:[#allocation20_spill] sm:$0xff] %v12347_v4  ;;  %v12351_v43 = vadd.f32 %v3318_v47, %v2719_v2  ;;  %v2722_v39 = vadd.f32 %v9055_v55, %v15132_v38  ;;  %v9153_v6 = vpop.f32.mrf.mxu0  ;;  %9496 = vmatmul.mubr.msk.f32.gmra.mxu0 %vm148_vm1, %v15133_v18  ;;  %9400 = vmatprep.mubr.msk.f32.mxu1 %vm148_vm1, %v7784_v12  ;;  %v15138_v55 = vld [vmem:[#allocation48_spill] sm:$0xff]  ;;  %v15139_v4 = vld [vmem:[#allocation42_spill] sm:$0xff] }
 0x1f3   :  { %v2618_v37 = vpop.f32.mrf.mxu1  ;;  %9498 = vmatprep.mubr.msk.f32.mxu0 %vm148_vm1, %v15134_v31 }
 0x1f4   :  { %15131 = vst [vmem:[#allocation18_spill] sm:$0xff] %v12351_v43  ;;  %v12365_v22 = vadd.f32 %v9153_v6, %v2722_v39  ;;  %v2721_v2 = vadd.f32 %v2618_v37, %v15136_v15  ;;  %v3328_v47 = vpop.f32.mrf.mxu0  ;;  %v7787_v6 = vld [vmem:[%s14810_s0 + $0x171] sm:$0xff]  ;;  %v15140_v37 = vld [vmem:[#allocation47_spill] sm:$0xff] }
 0x1f5   :  { %v9058_v18 = vpop.f32.mrf.mxu1  ;;  %9401 = vmatmul.mubr.msk.f32.gmra.mxu1 %vm148_vm1, %v7785_v49  ;;  %v7788_v49 = vld [vmem:[%s14810_s0 + $0x181] sm:$0xff] }
 0x1f6   :  { %15135 = vst [vmem:[#allocation19_spill] sm:$0xff] %v12365_v22  ;;  %v12369_v12 = vadd.f32 %v3328_v47, %v2721_v2  ;;  %v2724_v38 = vadd.f32 %v9058_v18, %v15138_v55  ;;  %v9156_v43 = vpop.f32.mrf.mxu0  ;;  %9499 = vmatmul.mubr.msk.f32.gmra.mxu0 %vm148_vm1, %v15139_v4  ;;  %9403 = vmatprep.mubr.msk.f32.mxu1 %vm148_vm1, %v7786_v14  ;;  %v15141_v15 = vld [vmem:[#allocation43_spill] sm:$0xff]  ;;  %v15143_v18 = vld [vmem:[#allocation49_spill] sm:$0xff]  ;;  %v15144_v22 = vld [vmem:[#allocation44_spill] sm:$0xff] }
 0x1f7   :  { %v2628_v39 = vpop.f32.mrf.mxu1  ;;  %9501 = vmatprep.mubr.msk.f32.mxu0 %vm148_vm1, %v15140_v37 }
 0x1f8   :  { %15137 = vst [vmem:[#allocation21_spill] sm:$0xff] %v12369_v12  ;;  %v12383_v31 = vadd.f32 %v9156_v43, %v2724_v38  ;;  %v2723_v2 = vadd.f32 %v2628_v39, %v15141_v15  ;;  %v3338_v47 = vpop.f32.mrf.mxu0  ;;  %v7789_v43 = vld [vmem:[%s14810_s0 + $0x189] sm:$0xff]  ;;  %v15145_v39 = vld [vmem:[#allocation5_spill] sm:$0xff]  ;;  %v15146_v15 = vld [vmem:[#allocation2_spill] sm:$0xff] }
 0x1f9   :  { %v9061_v4 = vpop.f32.mrf.mxu1  ;;  %9404 = vmatmul.mubr.msk.f32.gmra.mxu1 %vm148_vm1, %v7787_v6  ;;  %v7790_v6 = vld [vmem:[%s14810_s0 + $0x199] sm:$0xff] }
 0x1fa   :  { %v12387_v14 = vadd.f32 %v3338_v47, %v2723_v2  ;;  %v2726_v55 = vadd.f32 %v9061_v4, %v15143_v18  ;;  %v9159_v12 = vpop.f32.mrf.mxu0  ;;  %9502 = vmatmul.mubr.msk.f32.gmra.mxu0 %vm148_vm1, %v15144_v22  ;;  %9406 = vmatprep.mubr.msk.f32.mxu1 %vm148_vm1, %v7788_v49  ;;  %v7920_v22 = vld [vmem:[%s14810_s0 + $0x19a] sm:$0xff] }
 0x1fb   :  { %v2638_v38 = vpop.f32.mrf.mxu1  ;;  %9504 = vmatprep.mubr.msk.f32.mxu0 %vm148_vm1, %v15145_v39 }
 0x1fc   :  { %15142 = vst [vmem:[#allocation24_spill] sm:$0xff] %v12387_v14  ;;  %v12401_v37 = vadd.f32 %v9159_v12, %v2726_v55  ;;  %v2725_v2 = vadd.f32 %v2638_v38, %v15146_v15  ;;  %v3348_v47 = vpop.f32.mrf.mxu0  ;;  %v15147_v14 = vld [vmem:[#allocation3_spill] sm:$0xff] }
 0x1fd   :  { %v9064_v49 = vpop.f32.mrf.mxu1  ;;  %9407 = vmatmul.mubr.msk.f32.gmra.mxu1 %vm148_vm1, %v7789_v43  ;;  %v7791_v12 = vld [vmem:[%s14810_s0 + $0x1a1] sm:$0xff] }
 0x1fe   :  { %v12408_v4 = vadd.f32 %v3348_v47, %v2725_v2  ;;  %v2728_v18 = vadd.f32 %v9064_v49, %v11693_v10  ;;  %v9162_v39 = vpop.f32.mrf.mxu0  ;;  %9505 = vmatmul.mubr.msk.f32.gmra.mxu0 %vm148_vm1, %v15147_v14  ;;  %9409 = vmatprep.mubr.msk.f32.mxu1 %vm148_vm1, %v7790_v6  ;;  %v7921_v43 = vld [vmem:[%s14810_s0 + $0x1a2] sm:$0xff]  ;;  %v15148_v14 = vld [vmem:[#allocation4_spill] sm:$0xff] }
 0x1ff   :  { %v2648_v55 = vpop.f32.mrf.mxu1  ;;  %9507 = vmatprep.mubr.msk.f32.mxu0 %vm148_vm1, %v7920_v22  ;;  %v7792_v10 = vld [vmem:[%s14810_s0 + $0x1e1] sm:$0xff] }
 0x200   :  { %v12424_v38 = vadd.f32 %v9162_v39, %v2728_v18  ;;  %v2727_v15 = vadd.f32 %v2648_v55, %v15148_v14  ;;  %v3358_v6 = vpop.f32.mrf.mxu0  ;;  %v7793_v18 = vld [vmem:[%s14810_s0 + $0x1e9] sm:$0xff] }
 0x201   :  { %v9067_v2 = vpop.f32.mrf.mxu1  ;;  %9410 = vmatmul.mubr.msk.f32.gmra.mxu1 %vm148_vm1, %v7791_v12  ;;  %v7794_v12 = vld [vmem:[%s14810_s0 + $0x1f9] sm:$0xff] }
 0x202   :  { %v12428_v47 = vadd.f32 %v3358_v6, %v2727_v15  ;;  %v2730_v22 = vadd.f32 %v9067_v2, %v11718_v30  ;;  %v9165_v49 = vpop.f32.mrf.mxu0  ;;  %9508 = vmatmul.mubr.msk.f32.gmra.mxu0 %vm148_vm1, %v7921_v43  ;;  %9412 = vmatprep.mubr.msk.f32.mxu1 %vm148_vm1, %v7792_v10  ;;  %v15149_v30 = vld [vmem:[#allocation45_spill] sm:$0xff] }
 0x203   :  { %v2658_v39 = vpop.f32.mrf.mxu1  ;;  %9510 = vmatprep.mubr.msk.f32.mxu0 %vm148_vm1, %v11716_v53  ;;  %v7795_v53 = vld [vmem:[%s14810_s0 + $0x201] sm:$0xff] }
 0x204   :  { %v12441_v55 = vadd.f32 %v9165_v49, %v2730_v22  ;;  %v2729_v14 = vadd.f32 %v2658_v39, %v15149_v30  ;;  %v3368_v15 = vpop.f32.mrf.mxu0  ;;  %v15150_v49 = vld [vmem:[#allocation46_spill] sm:$0xff] }
 0x205   :  { %v9170_v43 = vpop.f32.mrf.mxu1  ;;  %9413 = vmatmul.mubr.msk.f32.gmra.mxu1 %vm148_vm1, %v7793_v18  ;;  %v7796_v18 = vld [vmem:[%s14810_s0 + $0x211] sm:$0xff] }
 0x206   :  { %v12445_v10 = vadd.f32 %v3368_v15, %v2729_v14  ;;  %v4088_v6 = vadd.f32 %v9170_v43, %v11745_v63  ;;  %v9268_v2 = vpop.f32.mrf.mxu0  ;;  %9511 = vmatmul.mubr.msk.f32.gmra.mxu0 %vm148_vm1, %v11734_v32  ;;  %9415 = vmatprep.mubr.msk.f32.mxu1 %vm148_vm1, %v7794_v12  ;;  %v15151_v63 = vld [vmem:[#allocation6_spill] sm:$0xff] }
 0x207   :  { %v3768_v22 = vpop.f32.mrf.mxu1  ;;  %9513 = vmatprep.mubr.msk.f32.mxu0 %vm148_vm1, %v15150_v49 }
 0x208   :  { %v12459_v39 = vadd.f32 %v9268_v2, %v4088_v6  ;;  %v4087_v30 = vadd.f32 %v3768_v22, %v15151_v63  ;;  %v4479_v14 = vpop.f32.mrf.mxu0  ;;  %v7797_v6 = vld [vmem:[%s14810_s0 + $0x219] sm:$0xff] }
 0x209   :  { %v9173_v32 = vpop.f32.mrf.mxu1  ;;  %9416 = vmatmul.mubr.msk.f32.gmra.mxu1 %vm148_vm1, %v7795_v53  ;;  %v15152_v22 = vld [vmem:[#allocation50_spill] sm:$0xff]  ;;  %v7798_v53 = vld [vmem:[%s14810_s0 + $0x229] sm:$0xff] }
 0x20a   :  { %v12463_v12 = vadd.f32 %v4479_v14, %v4087_v30  ;;  %v4090_v15 = vadd.f32 %v9173_v32, %v11773_v23  ;;  %v9271_v43 = vpop.f32.mrf.mxu0  ;;  %9514 = vmatmul.mubr.msk.f32.gmra.mxu0 %vm148_vm1, %v11762_v51  ;;  %9418 = vmatprep.mubr.msk.f32.mxu1 %vm148_vm1, %v7796_v18  ;;  %v15153_v23 = vld [vmem:[#allocation51_spill] sm:$0xff] }
 0x20b   :  { %v3778_v2 = vpop.f32.mrf.mxu1  ;;  %9516 = vmatprep.mubr.msk.f32.mxu0 %vm148_vm1, %v15152_v22 }
 0x20c   :  { %v12477_v49 = vadd.f32 %v9271_v43, %v4090_v15  ;;  %v4089_v63 = vadd.f32 %v3778_v2, %v15153_v23  ;;  %v4489_v30 = vpop.f32.mrf.mxu0  ;;  %v7799_v15 = vld [vmem:[%s14810_s0 + $0x231] sm:$0xff] }
 0x20d   :  { %v9176_v51 = vpop.f32.mrf.mxu1  ;;  %9419 = vmatmul.mubr.msk.f32.gmra.mxu1 %vm148_vm1, %v7797_v6  ;;  %v15154_v2 = vld [vmem:[#allocation52_spill] sm:$0xff]  ;;  %v7800_v6 = vld [vmem:[%s14810_s0 + $0x241] sm:$0xff] }
 0x20e   :  { %v12481_v18 = vadd.f32 %v4489_v30, %v4089_v63  ;;  %v4092_v14 = vadd.f32 %v9176_v51, %v11801_v45  ;;  %v9274_v32 = vpop.f32.mrf.mxu0  ;;  %9517 = vmatmul.mubr.msk.f32.gmra.mxu0 %vm148_vm1, %v11790_v56  ;;  %9421 = vmatprep.mubr.msk.f32.mxu1 %vm148_vm1, %v7798_v53  ;;  %v15155_v45 = vld [vmem:[#allocation53_spill] sm:$0xff] }
 0x20f   :  { %v3788_v43 = vpop.f32.mrf.mxu1  ;;  %9519 = vmatprep.mubr.msk.f32.mxu0 %vm148_vm1, %v15154_v2 }
 0x210   :  { %v12495_v22 = vadd.f32 %v9274_v32, %v4092_v14  ;;  %v4091_v23 = vadd.f32 %v3788_v43, %v15155_v45  ;;  %v4499_v63 = vpop.f32.mrf.mxu0  ;;  %v7801_v14 = vld [vmem:[%s14810_s0 + $0x249] sm:$0xff]  ;;  %v15156_v43 = vld [vmem:[#allocation54_spill] sm:$0xff] }
 0x211   :  { %v9179_v56 = vpop.f32.mrf.mxu1  ;;  %9422 = vmatmul.mubr.msk.f32.gmra.mxu1 %vm148_vm1, %v7799_v15  ;;  %v7802_v15 = vld [vmem:[%s14810_s0 + $0x259] sm:$0xff] }
 0x212   :  { %v12499_v53 = vadd.f32 %v4499_v63, %v4091_v23  ;;  %v4094_v30 = vadd.f32 %v9179_v56, %v11829_v5  ;;  %v9277_v51 = vpop.f32.mrf.mxu0  ;;  %9520 = vmatmul.mubr.msk.f32.gmra.mxu0 %vm148_vm1, %v11818_v48  ;;  %9424 = vmatprep.mubr.msk.f32.mxu1 %vm148_vm1, %v7800_v6  ;;  %v15157_v5 = vld [vmem:[#allocation55_spill] sm:$0xff] }
 0x213   :  { %v3798_v32 = vpop.f32.mrf.mxu1  ;;  %9522 = vmatprep.mubr.msk.f32.mxu0 %vm148_vm1, %v15156_v43 }
 0x214   :  { %v12513_v2 = vadd.f32 %v9277_v51, %v4094_v30  ;;  %v4093_v45 = vadd.f32 %v3798_v32, %v15157_v5  ;;  %v4509_v23 = vpop.f32.mrf.mxu0  ;;  %v7803_v30 = vld [vmem:[%s14810_s0 + $0x261] sm:$0xff]  ;;  %v15158_v32 = vld [vmem:[#allocation56_spill] sm:$0xff] }
 0x215   :  { %v9182_v48 = vpop.f32.mrf.mxu1  ;;  %9425 = vmatmul.mubr.msk.f32.gmra.mxu1 %vm148_vm1, %v7801_v14  ;;  %v7804_v14 = vld [vmem:[%s14810_s0 + $0x271] sm:$0xff] }
 0x216   :  { %v12517_v6 = vadd.f32 %v4509_v23, %v4093_v45  ;;  %v4096_v63 = vadd.f32 %v9182_v48, %v11857_v40  ;;  %v9280_v56 = vpop.f32.mrf.mxu0  ;;  %9523 = vmatmul.mubr.msk.f32.gmra.mxu0 %vm148_vm1, %v11846_v13  ;;  %9427 = vmatprep.mubr.msk.f32.mxu1 %vm148_vm1, %v7802_v15  ;;  %v15159_v40 = vld [vmem:[#allocation57_spill] sm:$0xff] }
 0x217   :  { %v3808_v51 = vpop.f32.mrf.mxu1  ;;  %9525 = vmatprep.mubr.msk.f32.mxu0 %vm148_vm1, %v15158_v32 }
 0x218   :  { %v12531_v43 = vadd.f32 %v9280_v56, %v4096_v63  ;;  %v4095_v5 = vadd.f32 %v3808_v51, %v15159_v40  ;;  %v4519_v45 = vpop.f32.mrf.mxu0  ;;  %v7805_v63 = vld [vmem:[%s14810_s0 + $0x279] sm:$0xff] }
 0x219   :  { %v9185_v13 = vpop.f32.mrf.mxu1  ;;  %9428 = vmatmul.mubr.msk.f32.gmra.mxu1 %vm148_vm1, %v7803_v30  ;;  %v15160_v51 = vld [vmem:[#allocation58_spill] sm:$0xff]  ;;  %v7806_v30 = vld [vmem:[%s14810_s0 + $0x289] sm:$0xff] }
 0x21a   :  { %v12535_v15 = vadd.f32 %v4519_v45, %v4095_v5  ;;  %v4098_v23 = vadd.f32 %v9185_v13, %v11885_v3  ;;  %v9283_v48 = vpop.f32.mrf.mxu0  ;;  %9526 = vmatmul.mubr.msk.f32.gmra.mxu0 %vm148_vm1, %v11874_v52  ;;  %9430 = vmatprep.mubr.msk.f32.mxu1 %vm148_vm1, %v7804_v14  ;;  %v15161_v3 = vld [vmem:[#allocation59_spill] sm:$0xff] }
 0x21b   :  { %v3818_v56 = vpop.f32.mrf.mxu1  ;;  %9528 = vmatprep.mubr.msk.f32.mxu0 %vm148_vm1, %v15160_v51 }
 0x21c   :  { %v12549_v32 = vadd.f32 %v9283_v48, %v4098_v23  ;;  %v4097_v40 = vadd.f32 %v3818_v56, %v15161_v3  ;;  %v4529_v5 = vpop.f32.mrf.mxu0  ;;  %v7807_v23 = vld [vmem:[%s14810_s0 + $0x291] sm:$0xff] }
 0x21d   :  { %v9188_v52 = vpop.f32.mrf.mxu1  ;;  %9431 = vmatmul.mubr.msk.f32.gmra.mxu1 %vm148_vm1, %v7805_v63  ;;  %v15162_v56 = vld [vmem:[#allocation60_spill] sm:$0xff]  ;;  %v7808_v63 = vld [vmem:[%s14810_s0 + $0x2a1] sm:$0xff] }
 0x21e   :  { %v12553_v14 = vadd.f32 %v4529_v5, %v4097_v40  ;;  %v4100_v45 = vadd.f32 %v9188_v52, %v11913_v8  ;;  %v9286_v13 = vpop.f32.mrf.mxu0  ;;  %9529 = vmatmul.mubr.msk.f32.gmra.mxu0 %vm148_vm1, %v11902_v62  ;;  %9433 = vmatprep.mubr.msk.f32.mxu1 %vm148_vm1, %v7806_v30  ;;  %v15163_v8 = vld [vmem:[#allocation61_spill] sm:$0xff] }
 0x21f   :  { %v3828_v48 = vpop.f32.mrf.mxu1  ;;  %9531 = vmatprep.mubr.msk.f32.mxu0 %vm148_vm1, %v15162_v56 }
 0x220   :  { %v12567_v51 = vadd.f32 %v9286_v13, %v4100_v45  ;;  %v4099_v3 = vadd.f32 %v3828_v48, %v15163_v8  ;;  %v4539_v40 = vpop.f32.mrf.mxu0  ;;  %v7809_v45 = vld [vmem:[%s14810_s0 + $0x2a9] sm:$0xff]  ;;  %v15164_v48 = vld [vmem:[#allocation62_spill] sm:$0xff] }
 0x221   :  { %v9191_v62 = vpop.f32.mrf.mxu1  ;;  %9434 = vmatmul.mubr.msk.f32.gmra.mxu1 %vm148_vm1, %v7807_v23  ;;  %v7810_v23 = vld [vmem:[%s14810_s0 + $0x2b9] sm:$0xff] }
 0x222   :  { %v12571_v30 = vadd.f32 %v4539_v40, %v4099_v3  ;;  %v4102_v5 = vadd.f32 %v9191_v62, %v11941_v21  ;;  %v9289_v52 = vpop.f32.mrf.mxu0  ;;  %9532 = vmatmul.mubr.msk.f32.gmra.mxu0 %vm148_vm1, %v11930_v59  ;;  %9436 = vmatprep.mubr.msk.f32.mxu1 %vm148_vm1, %v7808_v63  ;;  %v15165_v21 = vld [vmem:[#allocation63_spill] sm:$0xff] }
 0x223   :  { %v3838_v13 = vpop.f32.mrf.mxu1  ;;  %9534 = vmatprep.mubr.msk.f32.mxu0 %vm148_vm1, %v15164_v48 }
 0x224   :  { %v12585_v56 = vadd.f32 %v9289_v52, %v4102_v5  ;;  %v4101_v8 = vadd.f32 %v3838_v13, %v15165_v21  ;;  %v4549_v3 = vpop.f32.mrf.mxu0  ;;  %v7811_v5 = vld [vmem:[%s14810_s0 + $0x2c1] sm:$0xff]  ;;  %v15166_v13 = vld [vmem:[#allocation64_spill] sm:$0xff] }
 0x225   :  { %v9194_v59 = vpop.f32.mrf.mxu1  ;;  %9437 = vmatmul.mubr.msk.f32.gmra.mxu1 %vm148_vm1, %v7809_v45  ;;  %v7812_v45 = vld [vmem:[%s14810_s0 + $0x2d1] sm:$0xff] }
 0x226   :  { %v12589_v63 = vadd.f32 %v4549_v3, %v4101_v8  ;;  %v4104_v40 = vadd.f32 %v9194_v59, %v11969_v16  ;;  %v9292_v62 = vpop.f32.mrf.mxu0  ;;  %9535 = vmatmul.mubr.msk.f32.gmra.mxu0 %vm148_vm1, %v11958_v36  ;;  %9439 = vmatprep.mubr.msk.f32.mxu1 %vm148_vm1, %v7810_v23  ;;  %v15167_v16 = vld [vmem:[#allocation65_spill] sm:$0xff] }
 0x227   :  { %v3848_v52 = vpop.f32.mrf.mxu1  ;;  %9537 = vmatprep.mubr.msk.f32.mxu0 %vm148_vm1, %v15166_v13 }
 0x228   :  { %v12603_v48 = vadd.f32 %v9292_v62, %v4104_v40  ;;  %v4103_v21 = vadd.f32 %v3848_v52, %v15167_v16  ;;  %v4559_v8 = vpop.f32.mrf.mxu0  ;;  %v7813_v40 = vld [vmem:[%s14810_s0 + $0x2d9] sm:$0xff] }
 0x229   :  { %v9197_v36 = vpop.f32.mrf.mxu1  ;;  %9440 = vmatmul.mubr.msk.f32.gmra.mxu1 %vm148_vm1, %v7811_v5  ;;  %v15168_v52 = vld [vmem:[#allocation66_spill] sm:$0xff]  ;;  %v7814_v5 = vld [vmem:[%s14810_s0 + $0x2e9] sm:$0xff] }
 0x22a   :  { %v12607_v23 = vadd.f32 %v4559_v8, %v4103_v21  ;;  %v4106_v3 = vadd.f32 %v9197_v36, %v11997_v20  ;;  %v9295_v59 = vpop.f32.mrf.mxu0  ;;  %9538 = vmatmul.mubr.msk.f32.gmra.mxu0 %vm148_vm1, %v11986_v9  ;;  %9442 = vmatprep.mubr.msk.f32.mxu1 %vm148_vm1, %v7812_v45  ;;  %v15169_v20 = vld [vmem:[#allocation67_spill] sm:$0xff] }
 0x22b   :  { %v3858_v62 = vpop.f32.mrf.mxu1  ;;  %9540 = vmatprep.mubr.msk.f32.mxu0 %vm148_vm1, %v15168_v52 }
 0x22c   :  { %v12621_v13 = vadd.f32 %v9295_v59, %v4106_v3  ;;  %v4105_v16 = vadd.f32 %v3858_v62, %v15169_v20  ;;  %v4569_v21 = vpop.f32.mrf.mxu0  ;;  %v7815_v3 = vld [vmem:[%s14810_s0 + $0x2f1] sm:$0xff] }
 0x22d   :  { %v9200_v9 = vpop.f32.mrf.mxu1  ;;  %9443 = vmatmul.mubr.msk.f32.gmra.mxu1 %vm148_vm1, %v7813_v40  ;;  %v15170_v62 = vld [vmem:[#allocation68_spill] sm:$0xff]  ;;  %v7816_v40 = vld [vmem:[%s14810_s0 + $0x301] sm:$0xff] }
 0x22e   :  { %v12625_v45 = vadd.f32 %v4569_v21, %v4105_v16  ;;  %v4108_v8 = vadd.f32 %v9200_v9, %v12025_v24  ;;  %v9298_v36 = vpop.f32.mrf.mxu0  ;;  %9541 = vmatmul.mubr.msk.f32.gmra.mxu0 %vm148_vm1, %v12014_v17  ;;  %9445 = vmatprep.mubr.msk.f32.mxu1 %vm148_vm1, %v7814_v5  ;;  %v15171_v24 = vld [vmem:[#allocation69_spill] sm:$0xff] }
 0x22f   :  { %v3868_v59 = vpop.f32.mrf.mxu1  ;;  %9543 = vmatprep.mubr.msk.f32.mxu0 %vm148_vm1, %v15170_v62 }
 0x230   :  { %v12639_v52 = vadd.f32 %v9298_v36, %v4108_v8  ;;  %v4107_v20 = vadd.f32 %v3868_v59, %v15171_v24  ;;  %v4579_v16 = vpop.f32.mrf.mxu0  ;;  %v7817_v8 = vld [vmem:[%s14810_s0 + $0x309] sm:$0xff] }
 0x231   :  { %v9203_v17 = vpop.f32.mrf.mxu1  ;;  %9446 = vmatmul.mubr.msk.f32.gmra.mxu1 %vm148_vm1, %v7815_v3  ;;  %v7818_v3 = vld [vmem:[%s14810_s0 + $0x319] sm:$0xff] }
 0x232   :  { %v12643_v5 = vadd.f32 %v4579_v16, %v4107_v20  ;;  %v4110_v21 = vadd.f32 %v9203_v17, %v12053_v28  ;;  %v9301_v9 = vpop.f32.mrf.mxu0  ;;  %9544 = vmatmul.mubr.msk.f32.gmra.mxu0 %vm148_vm1, %v12042_v27  ;;  %9448 = vmatprep.mubr.msk.f32.mxu1 %vm148_vm1, %v7816_v40  ;;  %v15172_v28 = vld [vmem:[#allocation70_spill] sm:$0xff] }
 0x233   :  { %v3878_v36 = vpop.f32.mrf.mxu1  ;;  %9546 = vmatprep.mubr.msk.f32.mxu0 %vm148_vm1, %v12051_v46  ;;  %v7819_v46 = vld [vmem:[%s14810_s0 + $0x321] sm:$0xff] }
 0x234   :  { %v12657_v59 = vadd.f32 %v9301_v9, %v4110_v21  ;;  %v4109_v62 = vadd.f32 %v3878_v36, %v15172_v28  ;;  %v4589_v24 = vpop.f32.mrf.mxu0  ;;  %v7820_v21 = vld [vmem:[%s14810_s0 + $0x331] sm:$0xff] }
 0x235   :  { %v9206_v27 = vpop.f32.mrf.mxu1  ;;  %9449 = vmatmul.mubr.msk.f32.gmra.mxu1 %vm148_vm1, %v7817_v8 }
 0x236   :  { %v12661_v40 = vadd.f32 %v4589_v24, %v4109_v62  ;;  %v4112_v20 = vadd.f32 %v9206_v27, %v12081_v34  ;;  %v9304_v16 = vpop.f32.mrf.mxu0  ;;  %9547 = vmatmul.mubr.msk.f32.gmra.mxu0 %vm148_vm1, %v12070_v33  ;;  %9451 = vmatprep.mubr.msk.f32.mxu1 %vm148_vm1, %v7818_v3  ;;  %v15173_v34 = vld [vmem:[#allocation71_spill] sm:$0xff] }
 0x237   :  { %v3888_v17 = vpop.f32.mrf.mxu1  ;;  %9549 = vmatprep.mubr.msk.f32.mxu0 %vm148_vm1, %v12079_v50  ;;  %v7821_v50 = vld [vmem:[%s14810_s0 + $0x339] sm:$0xff]  ;;  %v7822_v27 = vld [vmem:[%s14810_s0 + $0x349] sm:$0xff] }
 0x238   :  { %v12675_v9 = vadd.f32 %v9304_v16, %v4112_v20  ;;  %v4111_v8 = vadd.f32 %v3888_v17, %v15173_v34  ;;  %v4599_v36 = vpop.f32.mrf.mxu0 }
 0x239   :  { %v9209_v33 = vpop.f32.mrf.mxu1  ;;  %9452 = vmatmul.mubr.msk.f32.gmra.mxu1 %vm148_vm1, %v7819_v46 }
 0x23a   :  { %v12679_v3 = vadd.f32 %v4599_v36, %v4111_v8  ;;  %v4114_v28 = vadd.f32 %v9209_v33, %v12104_v7  ;;  %v9307_v62 = vpop.f32.mrf.mxu0  ;;  %9550 = vmatmul.mubr.msk.f32.gmra.mxu0 %vm148_vm1, %v12095_v42  ;;  %9454 = vmatprep.mubr.msk.f32.mxu1 %vm148_vm1, %v7820_v21  ;;  %v15174_v7 = vld [vmem:[#allocation72_spill] sm:$0xff] }
 0x23b   :  { %v3898_v24 = vpop.f32.mrf.mxu1  ;;  %9552 = vmatprep.mubr.msk.f32.mxu0 %vm148_vm1, %v12102_v61  ;;  %v7952_v42 = vld [vmem:[%s14810_s0 + $0x34a] sm:$0xff]  ;;  %v7953_v33 = vld [vmem:[%s14810_s0 + $0x352] sm:$0xff] }
 0x23c   :  { %v12693_v20 = vadd.f32 %v9307_v62, %v4114_v28  ;;  %v4113_v16 = vadd.f32 %v3898_v24, %v15174_v7  ;;  %v4609_v46 = vpop.f32.mrf.mxu0  ;;  %v7823_v8 = vld [vmem:[%s14810_s0 + $0x351] sm:$0xff] }
 0x23d   :  { %v9212_v17 = vpop.f32.mrf.mxu1  ;;  %9455 = vmatmul.mubr.msk.f32.gmra.mxu1 %vm148_vm1, %v7821_v50 }
 0x23e   :  { %v12700_v21 = vadd.f32 %v4609_v46, %v4113_v16  ;;  %v4116_v61 = vadd.f32 %v9212_v17, %v12131_v19  ;;  %v9310_v34 = vpop.f32.mrf.mxu0  ;;  %9553 = vmatmul.mubr.msk.f32.gmra.mxu0 %vm148_vm1, %v12122_v1  ;;  %9457 = vmatprep.mubr.msk.f32.mxu1 %vm148_vm1, %v7822_v27 }
 0x23f   :  { %v3908_v36 = vpop.f32.mrf.mxu1  ;;  %9555 = vmatprep.mubr.msk.f32.mxu0 %vm148_vm1, %v7952_v42 }
 0x240   :  { %v12713_v28 = vadd.f32 %v9310_v34, %v4116_v61  ;;  %v4115_v19 = vadd.f32 %v3908_v36, %v12136_v58  ;;  %v4619_v62 = vpop.f32.mrf.mxu0 }
 0x241   :  { %v9215_v50 = vpop.f32.mrf.mxu1  ;;  %9458 = vmatmul.mubr.msk.f32.gmra.mxu1 %vm148_vm1, %v7823_v8 }
 0x242   :  { %v12717_v1 = vadd.f32 %v4619_v62, %v4115_v19  ;;  %v4118_v24 = vadd.f32 %v9215_v50, %v12149_v26  ;;  %v9313_v27 = vpop.f32.mrf.mxu0  ;;  %9556 = vmatmul.mubr.msk.f32.gmra.mxu0 %vm148_vm1, %v7953_v33 }
 0x243   :  { %v3918_v7 = vpop.f32.mrf.mxu1 }
 0x244   :  { %v12721_v16 = vadd.f32 %v9313_v27, %v4118_v24  ;;  %v4117_v46 = vadd.f32 %v3918_v7, %v12153_v57  ;;  %v4629_v42 = vpop.f32.mrf.mxu0 }
 0x245   :  { %v9218_v17 = vpop.f32.mrf.mxu1 }
 0x246   :  { %v12724_v61 = vadd.f32 %v4629_v42, %v4117_v46  ;;  %v4120_v58 = vadd.f32 %v9218_v17, %v12167_v0  ;;  %v9316_v34 = vpop.f32.mrf.mxu0 }
 0x247   :  { %v3928_v8 = vpop.f32.mrf.mxu1 }
 0x248   :  { %v12727_v36 = vadd.f32 %v9316_v34, %v4120_v58  ;;  %v4119_v26 = vadd.f32 %v3928_v8, %v12171_v35  ;;  %v4639_v19 = vpop.f32.mrf.mxu0 }
 0x249   :  { %v9221_v62 = vpop.f32.mrf.mxu1 }
 0x24a   :  { %v12730_v33 = vadd.f32 %v4639_v19, %v4119_v26  ;;  %v4122_v50 = vadd.f32 %v9221_v62, %v12185_v29  ;;  %v9319_v24 = vpop.f32.mrf.mxu0 }
 0x24b   :  { %v3938_v57 = vpop.f32.mrf.mxu1 }
 0x24c   :  { %v12733_v27 = vadd.f32 %v9319_v24, %v4122_v50  ;;  %v4121_v7 = vadd.f32 %v3938_v57, %v12189_v41  ;;  %v4649_v46 = vpop.f32.mrf.mxu0 }
 0x24d   :  { %v9224_v0 = vpop.f32.mrf.mxu1 }
 0x24e   :  { %v12736_v42 = vadd.f32 %v4649_v46, %v4121_v7  ;;  %v4124_v17 = vadd.f32 %v9224_v0, %v12203_v25  ;;  %v9322_v58 = vpop.f32.mrf.mxu0 }
 0x24f   :  { %v3948_v35 = vpop.f32.mrf.mxu1 }
 0x250   :  { %v12739_v34 = vadd.f32 %v9322_v58, %v4124_v17  ;;  %v4123_v8 = vadd.f32 %v3948_v35, %v12207_v54  ;;  %v4659_v26 = vpop.f32.mrf.mxu0  ;;  %v15178_v35 = vld [vmem:[#allocation7_spill] sm:$0xff] }
 0x251   :  { %v9227_v29 = vpop.f32.mrf.mxu1 }
 0x252   :  { %v12742_v19 = vadd.f32 %v4659_v26, %v4123_v8  ;;  %v4126_v62 = vadd.f32 %v9227_v29, %v12221_v44  ;;  %v9325_v50 = vpop.f32.mrf.mxu0 }
 0x253   :  { %v3958_v41 = vpop.f32.mrf.mxu1 }
 0x254   :  { %v12745_v24 = vadd.f32 %v9325_v50, %v4126_v62  ;;  %v4125_v57 = vadd.f32 %v3958_v41, %v12225_v11  ;;  %v4669_v7 = vpop.f32.mrf.mxu0  ;;  %v15180_v62 = vld [vmem:[#allocation8_spill] sm:$0xff] }
 0x255   :  { %v9230_v25 = vpop.f32.mrf.mxu1 }
 0x256   :  { %15175 = vst [vmem:[#allocation22_spill] sm:$0xff] %v12745_v24  ;;  %v12748_v46 = vadd.f32 %v4669_v7, %v4125_v57  ;;  %v4128_v0 = vadd.f32 %v9230_v25, %v12239_v60  ;;  %v9328_v17 = vpop.f32.mrf.mxu0  ;;  %v15182_v57 = vld [vmem:[#allocation9_spill] sm:$0xff] }
 0x257   :  { %v3968_v54 = vpop.f32.mrf.mxu1 }
 0x258   :  { %15176 = vst [vmem:[#allocation23_spill] sm:$0xff] %v12748_v46  ;;  %v12751_v58 = vadd.f32 %v9328_v17, %v4128_v0  ;;  %v4127_v8 = vadd.f32 %v3968_v54, %v15178_v35  ;;  %v4679_v26 = vpop.f32.mrf.mxu0  ;;  %v15184_v0 = vld [vmem:[#allocation10_spill] sm:$0xff] }
 0x259   :  { %v9233_v44 = vpop.f32.mrf.mxu1 }
 0x25a   :  { %15177 = vst [vmem:[#allocation25_spill] sm:$0xff] %v12751_v58  ;;  %v12754_v29 = vadd.f32 %v4679_v26, %v4127_v8  ;;  %v4130_v50 = vadd.f32 %v9233_v44, %v15180_v62  ;;  %v9331_v24 = vpop.f32.mrf.mxu0  ;;  %v15186_v8 = vld [vmem:[#allocation11_spill] sm:$0xff] }
 0x25b   :  { %v3978_v11 = vpop.f32.mrf.mxu1 }
 0x25c   :  { %15179 = vst [vmem:[#allocation28_spill] sm:$0xff] %v12754_v29  ;;  %v12757_v41 = vadd.f32 %v9331_v24, %v4130_v50  ;;  %v4129_v7 = vadd.f32 %v3978_v11, %v15182_v57  ;;  %v4689_v46 = vpop.f32.mrf.mxu0  ;;  %v15188_v24 = vld [vmem:[#allocation12_spill] sm:$0xff] }
 0x25d   :  { %v9236_v60 = vpop.f32.mrf.mxu1 }
 0x25e   :  { %15181 = vst [vmem:[#allocation26_spill] sm:$0xff] %v12757_v41  ;;  %v12760_v25 = vadd.f32 %v4689_v46, %v4129_v7  ;;  %v4132_v17 = vadd.f32 %v9236_v60, %v15184_v0  ;;  %v9334_v58 = vpop.f32.mrf.mxu0  ;;  %v15190_v46 = vld [vmem:[#allocation13_spill] sm:$0xff] }
 0x25f   :  { %v3988_v54 = vpop.f32.mrf.mxu1 }
 0x260   :  { %15183 = vst [vmem:[#allocation27_spill] sm:$0xff] %v12760_v25  ;;  %v12763_v35 = vadd.f32 %v9334_v58, %v4132_v17  ;;  %v4131_v26 = vadd.f32 %v3988_v54, %v15186_v8  ;;  %v4699_v29 = vpop.f32.mrf.mxu0  ;;  %v15192_v58 = vld [vmem:[#allocation14_spill] sm:$0xff] }
 0x261   :  { %v9239_v44 = vpop.f32.mrf.mxu1 }
 0x262   :  { %15185 = vst [vmem:[#allocation29_spill] sm:$0xff] %v12763_v35  ;;  %v12766_v62 = vadd.f32 %v4699_v29, %v4131_v26  ;;  %v4134_v50 = vadd.f32 %v9239_v44, %v15188_v24  ;;  %v9337_v41 = vpop.f32.mrf.mxu0  ;;  %v15194_v29 = vld [vmem:[#allocation15_spill] sm:$0xff] }
 0x263   :  { %v3998_v11 = vpop.f32.mrf.mxu1 }
 0x264   :  { %15187 = vst [vmem:[#allocation32_spill] sm:$0xff] %v12766_v62  ;;  %v12769_v57 = vadd.f32 %v9337_v41, %v4134_v50  ;;  %v4133_v7 = vadd.f32 %v3998_v11, %v15190_v46  ;;  %v4709_v25 = vpop.f32.mrf.mxu0  ;;  %v15196_v41 = vld [vmem:[#allocation16_spill] sm:$0xff] }
 0x265   :  { %v9242_v60 = vpop.f32.mrf.mxu1 }
 0x266   :  { %15189 = vst [vmem:[#allocation30_spill] sm:$0xff] %v12769_v57  ;;  %v12772_v0 = vadd.f32 %v4709_v25, %v4133_v7  ;;  %v4136_v17 = vadd.f32 %v9242_v60, %v15192_v58  ;;  %v9340_v35 = vpop.f32.mrf.mxu0  ;;  %v15198_v25 = vld [vmem:[#allocation17_spill] sm:$0xff] }
 0x267   :  { %v4008_v54 = vpop.f32.mrf.mxu1 }
 0x268   :  { %15191 = vst [vmem:[#allocation31_spill] sm:$0xff] %v12772_v0  ;;  %v12775_v8 = vadd.f32 %v9340_v35, %v4136_v17  ;;  %v4135_v26 = vadd.f32 %v4008_v54, %v15194_v29  ;;  %v4719_v62 = vpop.f32.mrf.mxu0  ;;  %v15200_v35 = vld [vmem:[#allocation20_spill] sm:$0xff] }
 0x269   :  { %v9245_v44 = vpop.f32.mrf.mxu1 }
 0x26a   :  { %15193 = vst [vmem:[#allocation33_spill] sm:$0xff] %v12775_v8  ;;  %v12778_v24 = vadd.f32 %v4719_v62, %v4135_v26  ;;  %v4138_v50 = vadd.f32 %v9245_v44, %v15196_v41  ;;  %v9343_v57 = vpop.f32.mrf.mxu0  ;;  %v15201_v62 = vld [vmem:[#allocation18_spill] sm:$0xff] }
 0x26b   :  { %v4018_v11 = vpop.f32.mrf.mxu1 }
 0x26c   :  { %15195 = vst [vmem:[#allocation36_spill] sm:$0xff] %v12778_v24  ;;  %v12781_v46 = vadd.f32 %v9343_v57, %v4138_v50  ;;  %v4137_v7 = vadd.f32 %v4018_v11, %v15198_v25  ;;  %v4729_v0 = vpop.f32.mrf.mxu0  ;;  %v15203_v57 = vld [vmem:[#allocation19_spill] sm:$0xff] }
 0x26d   :  { %v9248_v60 = vpop.f32.mrf.mxu1 }
 0x26e   :  { %15197 = vst [vmem:[#allocation34_spill] sm:$0xff] %v12781_v46  ;;  %v12784_v58 = vadd.f32 %v4729_v0, %v4137_v7  ;;  %v4140_v17 = vadd.f32 %v9248_v60, %v15200_v35  ;;  %v9346_v8 = vpop.f32.mrf.mxu0  ;;  %v15204_v0 = vld [vmem:[#allocation21_spill] sm:$0xff] }
 0x26f   :  { %v4028_v54 = vpop.f32.mrf.mxu1 }
 0x270   :  { %15199 = vst [vmem:[#allocation35_spill] sm:$0xff] %v12784_v58  ;;  %v12787_v29 = vadd.f32 %v9346_v8, %v4140_v17  ;;  %v4139_v26 = vadd.f32 %v4028_v54, %v15201_v62  ;;  %v4739_v24 = vpop.f32.mrf.mxu0 }
 0x271   :  { %v9251_v44 = vpop.f32.mrf.mxu1 }
 0x272   :  { %v12790_v41 = vadd.f32 %v4739_v24, %v4139_v26  ;;  %v4142_v50 = vadd.f32 %v9251_v44, %v15203_v57  ;;  %v9349_v46 = vpop.f32.mrf.mxu0  ;;  %v15205_v24 = vld [vmem:[#allocation24_spill] sm:$0xff] }
 0x273   :  { %v4038_v11 = vpop.f32.mrf.mxu1 }
 0x274   :  { %15202 = vst [vmem:[#allocation37_spill] sm:$0xff] %v12790_v41  ;;  %v12793_v25 = vadd.f32 %v9349_v46, %v4142_v50  ;;  %v4141_v7 = vadd.f32 %v4038_v11, %v15204_v0  ;;  %v4749_v58 = vpop.f32.mrf.mxu0 }
 0x275   :  { %v9254_v60 = vpop.f32.mrf.mxu1 }
 0x276   :  { %v12796_v35 = vadd.f32 %v4749_v58, %v4141_v7  ;;  %v4144_v8 = vadd.f32 %v9254_v60, %v12383_v31  ;;  %v9352_v17 = vpop.f32.mrf.mxu0 }
 0x277   :  { %v4048_v54 = vpop.f32.mrf.mxu1 }
 0x278   :  { %v12799_v62 = vadd.f32 %v9352_v17, %v4144_v8  ;;  %v4143_v26 = vadd.f32 %v4048_v54, %v15205_v24  ;;  %v4759_v41 = vpop.f32.mrf.mxu0 }
 0x279   :  { %v9257_v44 = vpop.f32.mrf.mxu1 }
 0x27a   :  { %v12802_v57 = vadd.f32 %v4759_v41, %v4143_v26  ;;  %v4146_v46 = vadd.f32 %v9257_v44, %v12401_v37  ;;  %v9355_v50 = vpop.f32.mrf.mxu0 }
 0x27b   :  { %v4058_v11 = vpop.f32.mrf.mxu1 }
 0x27c   :  { %v12805_v0 = vadd.f32 %v9355_v50, %v4146_v46  ;;  %v4145_v58 = vadd.f32 %v4058_v11, %v12408_v4  ;;  %v4769_v7 = vpop.f32.mrf.mxu0 }
 0x27d   :  { %v9260_v31 = vpop.f32.mrf.mxu1 }
 0x27e   :  { %v12808_v60 = vadd.f32 %v4769_v7, %v4145_v58  ;;  %v4148_v8 = vadd.f32 %v9260_v31, %v12424_v38  ;;  %v9358_v17 = vpop.f32.mrf.mxu0 }
 0x27f   :  { %v4068_v54 = vpop.f32.mrf.mxu1 }
 0x280   :  { %v12811_v24 = vadd.f32 %v9358_v17, %v4148_v8  ;;  %v4147_v41 = vadd.f32 %v4068_v54, %v12428_v47  ;;  %v4779_v26 = vpop.f32.mrf.mxu0 }
 0x281   :  { %v9263_v37 = vpop.f32.mrf.mxu1 }
 0x282   :  { %v12814_v44 = vadd.f32 %v4779_v26, %v4147_v41  ;;  %v4150_v46 = vadd.f32 %v9263_v37, %v12441_v55  ;;  %v9361_v50 = vpop.f32.mrf.mxu0 }
 0x283   :  { %v4078_v4 = vpop.f32.mrf.mxu1 }
 0x284   :  { %15206 = vst [vmem:[#allocation40_spill] sm:$0xff] %v12814_v44  ;;  %v12817_v11 = vadd.f32 %v9361_v50, %v4150_v46  ;;  %v4149_v58 = vadd.f32 %v4078_v4, %v12445_v10  ;;  %v4789_v7 = vpop.f32.mrf.mxu0 }
 0x285   :  { %v9366_v38 = vpop.f32.mrf.mxu1 }
 0x286   :  { %15207 = vst [vmem:[#allocation38_spill] sm:$0xff] %v12817_v11  ;;  %v12820_v31 = vadd.f32 %v4789_v7, %v4149_v58  ;;  %v5509_v8 = vadd.f32 %v9366_v38, %v12459_v39  ;;  %v9464_v17 = vpop.f32.mrf.mxu0 }
 0x287   :  { %v5189_v47 = vpop.f32.mrf.mxu1 }
 0x288   :  { %15208 = vst [vmem:[#allocation39_spill] sm:$0xff] %v12820_v31  ;;  %v5508_v54 = vadd.f32 %v5189_v47, %v12463_v12  ;;  %v5899_v41 = vpop.f32.mrf.mxu0  ;;  %v12824_v26 = vadd.f32 %v9464_v17, %v5509_v8 }
 0x289   :  { %v9369_v55 = vpop.f32.mrf.mxu1 }
 0x28a   :  { %15209 = vst [vmem:[#allocation41_spill] sm:$0xff] %v12824_v26  ;;  %v12826_v37 = vadd.f32 %v5899_v41, %v5508_v54  ;;  %v5511_v46 = vadd.f32 %v9369_v55, %v12477_v49  ;;  %v9467_v50 = vpop.f32.mrf.mxu0  ;;  %v6417_v7 = vmul.f32 %v12824_v26, %v12824_v26  ;;  %v6283_v47 = vsel %vm148_vm1, %v12824_v26, 0.0 }
 0x28b   :  { %v5199_v10 = vpop.f32.mrf.mxu1 }
 0x28c   :  { %15210 = vst [vmem:[#allocation48_spill] sm:$0xff] %v12826_v37  ;;  %v6416_v4 = vmul.f32 %v12826_v37, %v12826_v37  ;;  %v12831_v58 = vadd.f32 %v9467_v50, %v5511_v46  ;;  %v5909_v39 = vpop.f32.mrf.mxu0  ;;  %v6282_v12 = vsel %vm148_vm1, %v12826_v37, 0.0  ;;  %v5510_v38 = vadd.f32 %v5199_v10, %v12481_v18 }
 0x28d   :  { %v9372_v8 = vpop.f32.mrf.mxu1  ;;  %v6284_v46 = vadd.f32 %v6283_v47, %v6282_v12  ;;  %v6481_v18 = vsel %vm148_vm1, %v6417_v7, 0.0 }
 0x28e   :  { %v5513_v17 = vadd.f32 %v9372_v8, %v12495_v22  ;;  %v9470_v49 = vpop.f32.mrf.mxu0  ;;  %v6480_v54 = vsel %vm148_vm1, %v6416_v4, 0.0  ;;  %v12842_v41 = vadd.f32 %v5909_v39, %v5510_v38  ;;  %v6419_v50 = vmul.f32 %v12831_v58, %v12831_v58 }
 0x28f   :  { %v5209_v55 = vpop.f32.mrf.mxu1  ;;  %v6482_v39 = vadd.f32 %v6481_v18, %v6480_v54 }
 0x290   :  { %15211 = vst [vmem:[#allocation42_spill] sm:$0xff] %v12842_v41  ;;  %v5512_v37 = vadd.f32 %v5209_v55, %v12499_v53  ;;  %v5919_v31 = vpop.f32.mrf.mxu0  ;;  %v6285_v22 = vsel %vm148_vm1, %v12842_v41, 0.0  ;;  %v6418_v10 = vmul.f32 %v12842_v41, %v12842_v41  ;;  %v12852_v8 = vadd.f32 %v9470_v49, %v5513_v17 }
 0x291   :  { %v9375_v4 = vpop.f32.mrf.mxu1  ;;  %v6286_v38 = vadd.f32 %v6285_v22, %v6284_v46  ;;  %v6287_v53 = vsel %vm148_vm1, %v12831_v58, 0.0  ;;  %v6485_v11 = vsel %vm148_vm1, %v6419_v50, 0.0 }
 0x292   :  { %v12854_v12 = vadd.f32 %v5919_v31, %v5512_v37  ;;  %v9473_v47 = vpop.f32.mrf.mxu0  ;;  %v6483_v55 = vsel %vm148_vm1, %v6418_v10, 0.0  ;;  %v5515_v7 = vadd.f32 %v9375_v4, %v12513_v2  ;;  %v6421_v31 = vmul.f32 %v12852_v8, %v12852_v8 }
 0x293   :  { %v5219_v26 = vpop.f32.mrf.mxu1  ;;  %v6288_v44 = vadd.f32 %v6287_v53, %v6286_v38  ;;  %v6484_v41 = vadd.f32 %v6483_v55, %v6482_v39  ;;  %v6291_v4 = vsel %vm148_vm1, %v12852_v8, 0.0 }
 0x294   :  { %v6289_v17 = vsel %vm148_vm1, %v12854_v12, 0.0  ;;  %v5929_v49 = vpop.f32.mrf.mxu0  ;;  %v6420_v37 = vmul.f32 %v12854_v12, %v12854_v12  ;;  %v12867_v54 = vadd.f32 %v9473_v47, %v5515_v7  ;;  %v5514_v46 = vadd.f32 %v5219_v26, %v12517_v6 }
 0x295   :  { %v9378_v2 = vpop.f32.mrf.mxu1  ;;  %v6486_v18 = vadd.f32 %v6485_v11, %v6484_v41  ;;  %v6290_v22 = vadd.f32 %v6289_v17, %v6288_v44  ;;  %v6489_v44 = vsel %vm148_vm1, %v6421_v31, 0.0 }
 0x296   :  { %v5517_v50 = vadd.f32 %v9378_v2, %v12531_v43  ;;  %v9476_v10 = vpop.f32.mrf.mxu0  ;;  %v6487_v39 = vsel %vm148_vm1, %v6420_v37, 0.0  ;;  %v12874_v38 = vadd.f32 %v5929_v49, %v5514_v46  ;;  %v6423_v47 = vmul.f32 %v12867_v54, %v12867_v54 }
 0x297   :  { %v5229_v53 = vpop.f32.mrf.mxu1  ;;  %v6488_v55 = vadd.f32 %v6487_v39, %v6486_v18  ;;  %v6292_v7 = vadd.f32 %v6291_v4, %v6290_v22  ;;  %v6295_v2 = vsel %vm148_vm1, %v12867_v54, 0.0 }
 0x298   :  { %v5516_v6 = vadd.f32 %v5229_v53, %v12535_v15  ;;  %v5939_v11 = vpop.f32.mrf.mxu0  ;;  %v6293_v43 = vsel %vm148_vm1, %v12874_v38, 0.0  ;;  %v6422_v26 = vmul.f32 %v12874_v38, %v12874_v38  ;;  %v12884_v41 = vadd.f32 %v9476_v10, %v5517_v50 }
 0x299   :  { %v9381_v17 = vpop.f32.mrf.mxu1  ;;  %v6294_v49 = vadd.f32 %v6293_v43, %v6292_v7  ;;  %v6490_v37 = vadd.f32 %v6489_v44, %v6488_v55  ;;  %v6493_v4 = vsel %vm148_vm1, %v6423_v47, 0.0 }
 0x29a   :  { %v9479_v46 = vpop.f32.mrf.mxu0  ;;  %v6491_v15 = vsel %vm148_vm1, %v6422_v26, 0.0  ;;  %v12889_v18 = vadd.f32 %v5939_v11, %v5516_v6  ;;  %v5519_v31 = vadd.f32 %v9381_v17, %v12549_v32  ;;  %v6425_v55 = vmul.f32 %v12884_v41, %v12884_v41 }
 0x29b   :  { %v5239_v22 = vpop.f32.mrf.mxu1  ;;  %v6492_v39 = vadd.f32 %v6491_v15, %v6490_v37  ;;  %v6296_v53 = vadd.f32 %v6295_v2, %v6294_v49  ;;  %v6299_v17 = vsel %vm148_vm1, %v12884_v41, 0.0 }
 0x29c   :  { %v5518_v50 = vadd.f32 %v5239_v22, %v12553_v14  ;;  %v5949_v10 = vpop.f32.mrf.mxu0  ;;  %v6297_v7 = vsel %vm148_vm1, %v12889_v18, 0.0  ;;  %v6424_v6 = vmul.f32 %v12889_v18, %v12889_v18  ;;  %v12900_v11 = vadd.f32 %v9479_v46, %v5519_v31 }
 0x29d   :  { %v9384_v32 = vpop.f32.mrf.mxu1  ;;  %v6298_v44 = vadd.f32 %v6297_v7, %v6296_v53  ;;  %v6494_v43 = vadd.f32 %v6493_v4, %v6492_v39  ;;  %v6497_v4 = vsel %vm148_vm1, %v6425_v55, 0.0 }
 0x29e   :  { %v12902_v47 = vadd.f32 %v5949_v10, %v5518_v50  ;;  %v5521_v26 = vadd.f32 %v9384_v32, %v12567_v51  ;;  %v9482_v14 = vpop.f32.mrf.mxu0  ;;  %v6495_v49 = vsel %vm148_vm1, %v6424_v6, 0.0  ;;  %v6427_v51 = vmul.f32 %v12900_v11, %v12900_v11 }
 0x29f   :  { %v5249_v37 = vpop.f32.mrf.mxu1  ;;  %v6496_v2 = vadd.f32 %v6495_v49, %v6494_v43  ;;  %v6300_v15 = vadd.f32 %v6299_v17, %v6298_v44  ;;  %v6303_v43 = vsel %vm148_vm1, %v12900_v11, 0.0 }
 0x2a0   :  { %v6301_v46 = vsel %vm148_vm1, %v12902_v47, 0.0  ;;  %v6426_v31 = vmul.f32 %v12902_v47, %v12902_v47  ;;  %v5959_v22 = vpop.f32.mrf.mxu0  ;;  %v12915_v39 = vadd.f32 %v9482_v14, %v5521_v26  ;;  %v5520_v53 = vadd.f32 %v5249_v37, %v12571_v30 }
 0x2a1   :  { %v9387_v50 = vpop.f32.mrf.mxu1  ;;  %v6302_v10 = vadd.f32 %v6301_v46, %v6300_v15  ;;  %v6498_v7 = vadd.f32 %v6497_v4, %v6496_v2  ;;  %v6501_v2 = vsel %vm148_vm1, %v6427_v51, 0.0 }
 0x2a2   :  { %v6499_v6 = vsel %vm148_vm1, %v6426_v31, 0.0  ;;  %v5523_v32 = vadd.f32 %v9387_v50, %v12585_v56  ;;  %v9485_v44 = vpop.f32.mrf.mxu0  ;;  %v12922_v17 = vadd.f32 %v5959_v22, %v5520_v53  ;;  %v6429_v26 = vmul.f32 %v12915_v39, %v12915_v39 }
 0x2a3   :  { %v5259_v55 = vpop.f32.mrf.mxu1  ;;  %v6500_v49 = vadd.f32 %v6499_v6, %v6498_v7  ;;  %v6304_v14 = vadd.f32 %v6303_v43, %v6302_v10  ;;  %v6307_v50 = vsel %vm148_vm1, %v12915_v39, 0.0 }
 0x2a4   :  { %v5522_v30 = vadd.f32 %v5259_v55, %v12589_v63  ;;  %v5969_v37 = vpop.f32.mrf.mxu0  ;;  %v6305_v56 = vsel %vm148_vm1, %v12922_v17, 0.0  ;;  %v6428_v15 = vmul.f32 %v12922_v17, %v12922_v17  ;;  %v12932_v46 = vadd.f32 %v9485_v44, %v5523_v32 }
 0x2a5   :  { %v9390_v31 = vpop.f32.mrf.mxu1  ;;  %v6306_v22 = vadd.f32 %v6305_v56, %v6304_v14  ;;  %v6502_v4 = vadd.f32 %v6501_v2, %v6500_v49  ;;  %v6505_v6 = vsel %vm148_vm1, %v6429_v26, 0.0 }
 0x2a6   :  { %v9488_v53 = vpop.f32.mrf.mxu0  ;;  %v6503_v63 = vsel %vm148_vm1, %v6428_v15, 0.0  ;;  %v12937_v10 = vadd.f32 %v5969_v37, %v5522_v30  ;;  %v5525_v51 = vadd.f32 %v9390_v31, %v12603_v48  ;;  %v6431_v49 = vmul.f32 %v12932_v46, %v12932_v46 }
 0x2a7   :  { %v5269_v7 = vpop.f32.mrf.mxu1  ;;  %v6504_v43 = vadd.f32 %v6503_v63, %v6502_v4  ;;  %v6308_v55 = vadd.f32 %v6307_v50, %v6306_v22  ;;  %v6311_v31 = vsel %vm148_vm1, %v12932_v46, 0.0 }
 0x2a8   :  { %v5524_v32 = vadd.f32 %v5269_v7, %v12607_v23  ;;  %v5979_v44 = vpop.f32.mrf.mxu0  ;;  %v6309_v14 = vsel %vm148_vm1, %v12937_v10, 0.0  ;;  %v6430_v30 = vmul.f32 %v12937_v10, %v12937_v10  ;;  %v12948_v37 = vadd.f32 %v9488_v53, %v5525_v51 }
 0x2a9   :  { %v9393_v48 = vpop.f32.mrf.mxu1  ;;  %v6310_v2 = vadd.f32 %v6309_v14, %v6308_v55  ;;  %v6506_v56 = vadd.f32 %v6505_v6, %v6504_v43  ;;  %v6509_v6 = vsel %vm148_vm1, %v6431_v49, 0.0 }
 0x2aa   :  { %v12950_v26 = vadd.f32 %v5979_v44, %v5524_v32  ;;  %v5527_v15 = vadd.f32 %v9393_v48, %v12621_v13  ;;  %v9491_v23 = vpop.f32.mrf.mxu0  ;;  %v6507_v22 = vsel %vm148_vm1, %v6430_v30, 0.0  ;;  %v6433_v13 = vmul.f32 %v12948_v37, %v12948_v37 }
 0x2ab   :  { %v5279_v4 = vpop.f32.mrf.mxu1  ;;  %v6508_v50 = vadd.f32 %v6507_v22, %v6506_v56  ;;  %v6312_v63 = vadd.f32 %v6311_v31, %v6310_v2  ;;  %v6315_v56 = vsel %vm148_vm1, %v12948_v37, 0.0 }
 0x2ac   :  { %v6313_v53 = vsel %vm148_vm1, %v12950_v26, 0.0  ;;  %v6432_v51 = vmul.f32 %v12950_v26, %v12950_v26  ;;  %v5989_v7 = vpop.f32.mrf.mxu0  ;;  %v12963_v43 = vadd.f32 %v9491_v23, %v5527_v15  ;;  %v5526_v55 = vadd.f32 %v5279_v4, %v12625_v45 }
 0x2ad   :  { %v9396_v32 = vpop.f32.mrf.mxu1  ;;  %v6314_v44 = vadd.f32 %v6313_v53, %v6312_v63  ;;  %v6510_v14 = vadd.f32 %v6509_v6, %v6508_v50  ;;  %v6513_v50 = vsel %vm148_vm1, %v6433_v13, 0.0 }
 0x2ae   :  { %v6511_v30 = vsel %vm148_vm1, %v6432_v51, 0.0  ;;  %v5529_v48 = vadd.f32 %v9396_v32, %v12639_v52  ;;  %v9494_v2 = vpop.f32.mrf.mxu0  ;;  %v12970_v31 = vadd.f32 %v5989_v7, %v5526_v55  ;;  %v6435_v15 = vmul.f32 %v12963_v43, %v12963_v43 }
 0x2af   :  { %v5289_v49 = vpop.f32.mrf.mxu1  ;;  %v6512_v22 = vadd.f32 %v6511_v30, %v6510_v14  ;;  %v6316_v23 = vadd.f32 %v6315_v56, %v6314_v44  ;;  %v6319_v32 = vsel %vm148_vm1, %v12963_v43, 0.0 }
 0x2b0   :  { %v5528_v45 = vadd.f32 %v5289_v49, %v12643_v5  ;;  %v5999_v4 = vpop.f32.mrf.mxu0  ;;  %v6317_v52 = vsel %vm148_vm1, %v12970_v31, 0.0  ;;  %v6434_v63 = vmul.f32 %v12970_v31, %v12970_v31  ;;  %v12980_v53 = vadd.f32 %v9494_v2, %v5529_v48 }
 0x2b1   :  { %v9399_v51 = vpop.f32.mrf.mxu1  ;;  %v6318_v7 = vadd.f32 %v6317_v52, %v6316_v23  ;;  %v6514_v6 = vadd.f32 %v6513_v50, %v6512_v22  ;;  %v6517_v30 = vsel %vm148_vm1, %v6435_v15, 0.0 }
 0x2b2   :  { %v9497_v55 = vpop.f32.mrf.mxu0  ;;  %v6515_v5 = vsel %vm148_vm1, %v6434_v63, 0.0  ;;  %v12985_v44 = vadd.f32 %v5999_v4, %v5528_v45  ;;  %v5531_v13 = vadd.f32 %v9399_v51, %v12657_v59  ;;  %v6437_v22 = vmul.f32 %v12980_v53, %v12980_v53 }
 0x2b3   :  { %v5299_v14 = vpop.f32.mrf.mxu1  ;;  %v6516_v56 = vadd.f32 %v6515_v5, %v6514_v6  ;;  %v6320_v49 = vadd.f32 %v6319_v32, %v6318_v7  ;;  %v6323_v51 = vsel %vm148_vm1, %v12980_v53, 0.0 }
 0x2b4   :  { %v5530_v48 = vadd.f32 %v5299_v14, %v12661_v40  ;;  %v6009_v2 = vpop.f32.mrf.mxu0  ;;  %v6321_v23 = vsel %vm148_vm1, %v12985_v44, 0.0  ;;  %v6436_v45 = vmul.f32 %v12985_v44, %v12985_v44  ;;  %v12996_v4 = vadd.f32 %v9497_v55, %v5531_v13 }
 0x2b5   :  { %v9402_v59 = vpop.f32.mrf.mxu1  ;;  %v6322_v50 = vadd.f32 %v6321_v23, %v6320_v49  ;;  %v6518_v52 = vadd.f32 %v6517_v30, %v6516_v56  ;;  %v6521_v30 = vsel %vm148_vm1, %v6437_v22, 0.0 }
 0x2b6   :  { %v12998_v15 = vadd.f32 %v6009_v2, %v5530_v48  ;;  %v5533_v63 = vadd.f32 %v9402_v59, %v12675_v9  ;;  %v9500_v40 = vpop.f32.mrf.mxu0  ;;  %v6519_v7 = vsel %vm148_vm1, %v6436_v45, 0.0  ;;  %v6439_v9 = vmul.f32 %v12996_v4, %v12996_v4 }
 0x2b7   :  { %v5309_v6 = vpop.f32.mrf.mxu1  ;;  %v6520_v32 = vadd.f32 %v6519_v7, %v6518_v52  ;;  %v6324_v5 = vadd.f32 %v6323_v51, %v6322_v50  ;;  %v6327_v52 = vsel %vm148_vm1, %v12996_v4, 0.0 }
 0x2b8   :  { %v6325_v55 = vsel %vm148_vm1, %v12998_v15, 0.0  ;;  %v6438_v13 = vmul.f32 %v12998_v15, %v12998_v15  ;;  %v6019_v14 = vpop.f32.mrf.mxu0  ;;  %v13011_v56 = vadd.f32 %v9500_v40, %v5533_v63  ;;  %v5532_v49 = vadd.f32 %v5309_v6, %v12679_v3 }
 0x2b9   :  { %v9405_v48 = vpop.f32.mrf.mxu1  ;;  %v6326_v2 = vadd.f32 %v6325_v55, %v6324_v5  ;;  %v6522_v23 = vadd.f32 %v6521_v30, %v6520_v32  ;;  %v6525_v32 = vsel %vm148_vm1, %v6439_v9, 0.0 }
 0x2ba   :  { %v6523_v45 = vsel %vm148_vm1, %v6438_v13, 0.0  ;;  %v5535_v59 = vadd.f32 %v9405_v48, %v12693_v20  ;;  %v9503_v50 = vpop.f32.mrf.mxu0  ;;  %v13018_v51 = vadd.f32 %v6019_v14, %v5532_v49  ;;  %v6441_v63 = vmul.f32 %v13011_v56, %v13011_v56 }
 0x2bb   :  { %v5319_v22 = vpop.f32.mrf.mxu1  ;;  %v6524_v7 = vadd.f32 %v6523_v45, %v6522_v23  ;;  %v6328_v40 = vadd.f32 %v6327_v52, %v6326_v2  ;;  %v6331_v48 = vsel %vm148_vm1, %v13011_v56, 0.0 }
 0x2bc   :  { %v5534_v3 = vadd.f32 %v5319_v22, %v12700_v21  ;;  %v6029_v6 = vpop.f32.mrf.mxu0  ;;  %v6329_v20 = vsel %vm148_vm1, %v13018_v51, 0.0  ;;  %v6440_v5 = vmul.f32 %v13018_v51, %v13018_v51  ;;  %v13028_v55 = vadd.f32 %v9503_v50, %v5535_v59 }
 0x2bd   :  { %v9408_v13 = vpop.f32.mrf.mxu1  ;;  %v6330_v14 = vadd.f32 %v6329_v20, %v6328_v40  ;;  %v6526_v30 = vadd.f32 %v6525_v32, %v6524_v7  ;;  %v6529_v45 = vsel %vm148_vm1, %v6441_v63, 0.0 }
 0x2be   :  { %15212 = vst [vmem:[#allocation47_spill] sm:$0xff] %v13028_v55  ;;  %v9506_v49 = vpop.f32.mrf.mxu0  ;;  %v6527_v21 = vsel %vm148_vm1, %v6440_v5, 0.0  ;;  %v13033_v2 = vadd.f32 %v6029_v6, %v5534_v3  ;;  %v5537_v9 = vadd.f32 %v9408_v13, %v12713_v28  ;;  %v6443_v7 = vmul.f32 %v13028_v55, %v13028_v55 }
 0x2bf   :  { %v5329_v23 = vpop.f32.mrf.mxu1  ;;  %v6528_v52 = vadd.f32 %v6527_v21, %v6526_v30  ;;  %v6332_v22 = vadd.f32 %v6331_v48, %v6330_v14  ;;  %v6335_v13 = vsel %vm148_vm1, %v13028_v55, 0.0 }
 0x2c0   :  { %v5536_v59 = vadd.f32 %v5329_v23, %v12717_v1  ;;  %v6039_v50 = vpop.f32.mrf.mxu0  ;;  %v6333_v40 = vsel %vm148_vm1, %v13033_v2, 0.0  ;;  %v6442_v3 = vmul.f32 %v13033_v2, %v13033_v2  ;;  %v13044_v6 = vadd.f32 %v9506_v49, %v5537_v9 }
 0x2c1   :  { %v9411_v28 = vpop.f32.mrf.mxu1  ;;  %v6334_v32 = vadd.f32 %v6333_v40, %v6332_v22  ;;  %v6530_v20 = vadd.f32 %v6529_v45, %v6528_v52  ;;  %v6533_v45 = vsel %vm148_vm1, %v6443_v7, 0.0 }
 0x2c2   :  { %15213 = vst [vmem:[#allocation43_spill] sm:$0xff] %v13044_v6  ;;  %v13046_v63 = vadd.f32 %v6039_v50, %v5536_v59  ;;  %v5539_v5 = vadd.f32 %v9411_v28, %v12721_v16  ;;  %v9509_v1 = vpop.f32.mrf.mxu0  ;;  %v6531_v14 = vsel %vm148_vm1, %v6442_v3, 0.0  ;;  %v6445_v16 = vmul.f32 %v13044_v6, %v13044_v6 }
 0x2c3   :  { %v5339_v30 = vpop.f32.mrf.mxu1  ;;  %v6532_v48 = vadd.f32 %v6531_v14, %v6530_v20  ;;  %v6336_v21 = vadd.f32 %v6335_v13, %v6334_v32  ;;  %v6339_v20 = vsel %vm148_vm1, %v13044_v6, 0.0  ;;  %v15258_v6 = vld [vmem:[#allocation39_spill] sm:$0xff] }
 0x2c4   :  { %15214 = vst [vmem:[#allocation49_spill] sm:$0xff] %v13046_v63  ;;  %v6337_v49 = vsel %vm148_vm1, %v13046_v63, 0.0  ;;  %v6444_v9 = vmul.f32 %v13046_v63, %v13046_v63  ;;  %v6049_v23 = vpop.f32.mrf.mxu0  ;;  %v13059_v52 = vadd.f32 %v9509_v1, %v5539_v5  ;;  %v5538_v22 = vadd.f32 %v5339_v30, %v12724_v61 }
 0x2c5   :  { %v9414_v59 = vpop.f32.mrf.mxu1  ;;  %v6338_v50 = vadd.f32 %v6337_v49, %v6336_v21  ;;  %v6534_v40 = vadd.f32 %v6533_v45, %v6532_v48  ;;  %v6537_v48 = vsel %vm148_vm1, %v6445_v16, 0.0 }
 0x2c6   :  { %15215 = vst [vmem:[#allocation44_spill] sm:$0xff] %v13059_v52  ;;  %v6535_v3 = vsel %vm148_vm1, %v6444_v9, 0.0  ;;  %v5541_v28 = vadd.f32 %v9414_v59, %v12727_v36  ;;  %v9512_v32 = vpop.f32.mrf.mxu0  ;;  %v13066_v13 = vadd.f32 %v6049_v23, %v5538_v22  ;;  %v6447_v5 = vmul.f32 %v13059_v52, %v13059_v52 }
 0x2c7   :  { %v5349_v7 = vpop.f32.mrf.mxu1  ;;  %v6536_v14 = vadd.f32 %v6535_v3, %v6534_v40  ;;  %v6340_v1 = vadd.f32 %v6339_v20, %v6338_v50  ;;  %v6343_v59 = vsel %vm148_vm1, %v13059_v52, 0.0 }
 0x2c8   :  { %15216 = vst [vmem:[#allocation5_spill] sm:$0xff] %v13066_v13  ;;  %v5540_v61 = vadd.f32 %v5349_v7, %v12730_v33  ;;  %v6059_v30 = vpop.f32.mrf.mxu0  ;;  %v6341_v36 = vsel %vm148_vm1, %v13066_v13, 0.0  ;;  %v6446_v21 = vmul.f32 %v13066_v13, %v13066_v13  ;;  %v13076_v49 = vadd.f32 %v9512_v32, %v5541_v28 }
 0x2c9   :  { %v9417_v9 = vpop.f32.mrf.mxu1  ;;  %v6342_v23 = vadd.f32 %v6341_v36, %v6340_v1  ;;  %v6538_v45 = vadd.f32 %v6537_v48, %v6536_v14  ;;  %v6541_v3 = vsel %vm148_vm1, %v6447_v5, 0.0 }
 0x2ca   :  { %15217 = vst [vmem:[#allocation2_spill] sm:$0xff] %v13076_v49  ;;  %v9515_v22 = vpop.f32.mrf.mxu0  ;;  %v6539_v33 = vsel %vm148_vm1, %v6446_v21, 0.0  ;;  %v13081_v50 = vadd.f32 %v6059_v30, %v5540_v61  ;;  %v5543_v16 = vadd.f32 %v9417_v9, %v12733_v27  ;;  %v6449_v14 = vmul.f32 %v13076_v49, %v13076_v49 }
 0x2cb   :  { %v5359_v40 = vpop.f32.mrf.mxu1  ;;  %v6540_v20 = vadd.f32 %v6539_v33, %v6538_v45  ;;  %v6344_v7 = vadd.f32 %v6343_v59, %v6342_v23  ;;  %v6347_v9 = vsel %vm148_vm1, %v13076_v49, 0.0 }
 0x2cc   :  { %15218 = vst [vmem:[#allocation3_spill] sm:$0xff] %v13081_v50  ;;  %v5542_v28 = vadd.f32 %v5359_v40, %v12736_v42  ;;  %v6069_v32 = vpop.f32.mrf.mxu0  ;;  %v6345_v1 = vsel %vm148_vm1, %v13081_v50, 0.0  ;;  %v6448_v61 = vmul.f32 %v13081_v50, %v13081_v50  ;;  %v13092_v30 = vadd.f32 %v9515_v22, %v5543_v16 }
 0x2cd   :  { %v9420_v27 = vpop.f32.mrf.mxu1  ;;  %v6346_v48 = vadd.f32 %v6345_v1, %v6344_v7  ;;  %v6542_v36 = vadd.f32 %v6541_v3, %v6540_v20  ;;  %v6545_v3 = vsel %vm148_vm1, %v6449_v14, 0.0 }
 0x2ce   :  { %15219 = vst [vmem:[#allocation4_spill] sm:$0xff] %v13092_v30  ;;  %v13094_v5 = vadd.f32 %v6069_v32, %v5542_v28  ;;  %v5545_v21 = vadd.f32 %v9420_v27, %v12739_v34  ;;  %v9518_v42 = vpop.f32.mrf.mxu0  ;;  %v6543_v23 = vsel %vm148_vm1, %v6448_v61, 0.0  ;;  %v6451_v34 = vmul.f32 %v13092_v30, %v13092_v30  ;;  %v15222_v27 = vld [vmem:[#allocation22_spill] sm:$0xff] }
 0x2cf   :  { %v5369_v45 = vpop.f32.mrf.mxu1  ;;  %v6544_v59 = vadd.f32 %v6543_v23, %v6542_v36  ;;  %v6348_v33 = vadd.f32 %v6347_v9, %v6346_v48  ;;  %v6351_v9 = vsel %vm148_vm1, %v13092_v30, 0.0 }
 0x2d0   :  { %15220 = vst [vmem:[#allocation45_spill] sm:$0xff] %v13094_v5  ;;  %v6349_v22 = vsel %vm148_vm1, %v13094_v5, 0.0  ;;  %v6450_v16 = vmul.f32 %v13094_v5, %v13094_v5  ;;  %v6079_v40 = vpop.f32.mrf.mxu0  ;;  %v13107_v20 = vadd.f32 %v9518_v42, %v5545_v21  ;;  %v5544_v7 = vadd.f32 %v5369_v45, %v12742_v19  ;;  %v15224_v19 = vld [vmem:[#allocation23_spill] sm:$0xff] }
 0x2d1   :  { %v9423_v28 = vpop.f32.mrf.mxu1  ;;  %v6350_v32 = vadd.f32 %v6349_v22, %v6348_v33  ;;  %v6546_v1 = vadd.f32 %v6545_v3, %v6544_v59  ;;  %v6549_v59 = vsel %vm148_vm1, %v6451_v34, 0.0  ;;  %v15227_v34 = vld [vmem:[#allocation25_spill] sm:$0xff] }
 0x2d2   :  { %15221 = vst [vmem:[#allocation46_spill] sm:$0xff] %v13107_v20  ;;  %v6547_v61 = vsel %vm148_vm1, %v6450_v16, 0.0  ;;  %v5547_v48 = vadd.f32 %v9423_v28, %v15222_v27  ;;  %v9521_v36 = vpop.f32.mrf.mxu0  ;;  %v13114_v23 = vadd.f32 %v6079_v40, %v5544_v7  ;;  %v6453_v21 = vmul.f32 %v13107_v20, %v13107_v20 }
 0x2d3   :  { %v5379_v14 = vpop.f32.mrf.mxu1  ;;  %v6548_v5 = vadd.f32 %v6547_v61, %v6546_v1  ;;  %v6352_v42 = vadd.f32 %v6351_v9, %v6350_v32  ;;  %v6355_v32 = vsel %vm148_vm1, %v13107_v20, 0.0 }
 0x2d4   :  { %15223 = vst [vmem:[#allocation6_spill] sm:$0xff] %v13114_v23  ;;  %v5546_v45 = vadd.f32 %v5379_v14, %v15224_v19  ;;  %v6089_v33 = vpop.f32.mrf.mxu0  ;;  %v6353_v22 = vsel %vm148_vm1, %v13114_v23, 0.0  ;;  %v6452_v16 = vmul.f32 %v13114_v23, %v13114_v23  ;;  %v13124_v3 = vadd.f32 %v9521_v36, %v5547_v48  ;;  %v15228_v48 = vld [vmem:[#allocation28_spill] sm:$0xff] }
 0x2d5   :  { %v9426_v40 = vpop.f32.mrf.mxu1  ;;  %v6354_v7 = vadd.f32 %v6353_v22, %v6352_v42  ;;  %v6550_v28 = vadd.f32 %v6549_v59, %v6548_v5  ;;  %v6553_v19 = vsel %vm148_vm1, %v6453_v21, 0.0 }
 0x2d6   :  { %15225 = vst [vmem:[#allocation50_spill] sm:$0xff] %v13124_v3  ;;  %v9524_v1 = vpop.f32.mrf.mxu0  ;;  %v6551_v61 = vsel %vm148_vm1, %v6452_v16, 0.0  ;;  %v13129_v27 = vadd.f32 %v6089_v33, %v5546_v45  ;;  %v5549_v9 = vadd.f32 %v9426_v40, %v15227_v34  ;;  %v6455_v5 = vmul.f32 %v13124_v3, %v13124_v3  ;;  %v15231_v40 = vld [vmem:[#allocation26_spill] sm:$0xff] }
 0x2d7   :  { %v5389_v14 = vpop.f32.mrf.mxu1  ;;  %v6552_v30 = vadd.f32 %v6551_v61, %v6550_v28  ;;  %v6356_v23 = vadd.f32 %v6355_v32, %v6354_v7  ;;  %v6359_v32 = vsel %vm148_vm1, %v13124_v3, 0.0 }
 0x2d8   :  { %15226 = vst [vmem:[#allocation51_spill] sm:$0xff] %v13129_v27  ;;  %v5548_v36 = vadd.f32 %v5389_v14, %v15228_v48  ;;  %v6099_v49 = vpop.f32.mrf.mxu0  ;;  %v6357_v42 = vsel %vm148_vm1, %v13129_v27, 0.0  ;;  %v6454_v45 = vmul.f32 %v13129_v27, %v13129_v27  ;;  %v13140_v33 = vadd.f32 %v9524_v1, %v5549_v9 }
 0x2d9   :  { %v9429_v59 = vpop.f32.mrf.mxu1  ;;  %v6358_v22 = vadd.f32 %v6357_v42, %v6356_v23  ;;  %v6554_v16 = vadd.f32 %v6553_v19, %v6552_v30 }
 0x2da   :  { %15229 = vst [vmem:[#allocation52_spill] sm:$0xff] %v13140_v33  ;;  %v13142_v21 = vadd.f32 %v6099_v49, %v5548_v36  ;;  %v5551_v7 = vadd.f32 %v9429_v59, %v15231_v40  ;;  %v9527_v28 = vpop.f32.mrf.mxu0  ;;  %v6555_v61 = vsel %vm148_vm1, %v6454_v45, 0.0  ;;  %v6557_v49 = vsel %vm148_vm1, %v6455_v5, 0.0  ;;  %v15233_v36 = vld [vmem:[#allocation27_spill] sm:$0xff]  ;;  %v15234_v40 = vld [vmem:[#allocation29_spill] sm:$0xff] }
 0x2db   :  { %v5399_v34 = vpop.f32.mrf.mxu1  ;;  %v6556_v14 = vadd.f32 %v6555_v61, %v6554_v16  ;;  %v6360_v48 = vadd.f32 %v6359_v32, %v6358_v22  ;;  %v6457_v9 = vmul.f32 %v13140_v33, %v13140_v33 }
 0x2dc   :  { %15230 = vst [vmem:[#allocation53_spill] sm:$0xff] %v13142_v21  ;;  %v6361_v1 = vsel %vm148_vm1, %v13142_v21, 0.0  ;;  %v6456_v23 = vmul.f32 %v13142_v21, %v13142_v21  ;;  %v6109_v30 = vpop.f32.mrf.mxu0  ;;  %v13155_v19 = vadd.f32 %v9527_v28, %v5551_v7  ;;  %v5550_v42 = vadd.f32 %v5399_v34, %v15233_v36 }
 0x2dd   :  { %v9432_v45 = vpop.f32.mrf.mxu1  ;;  %v6362_v59 = vadd.f32 %v6361_v1, %v6360_v48  ;;  %v6558_v16 = vadd.f32 %v6557_v49, %v6556_v14  ;;  %v6363_v21 = vsel %vm148_vm1, %v13140_v33, 0.0  ;;  %v15237_v48 = vld [vmem:[#allocation32_spill] sm:$0xff]  ;;  %v15240_v33 = vld [vmem:[#allocation31_spill] sm:$0xff] }
 0x2de   :  { %15232 = vst [vmem:[#allocation54_spill] sm:$0xff] %v13155_v19  ;;  %v6559_v22 = vsel %vm148_vm1, %v6456_v23, 0.0  ;;  %v5553_v32 = vadd.f32 %v9432_v45, %v15234_v40  ;;  %v9530_v61 = vpop.f32.mrf.mxu0  ;;  %v6459_v5 = vmul.f32 %v13155_v19, %v13155_v19  ;;  %v13164_v3 = vadd.f32 %v6109_v30, %v5550_v42 }
 0x2df   :  { %v5409_v7 = vpop.f32.mrf.mxu1  ;;  %v6560_v28 = vadd.f32 %v6559_v22, %v6558_v16  ;;  %v6364_v27 = vadd.f32 %v6363_v21, %v6362_v59  ;;  %v6561_v23 = vsel %vm148_vm1, %v6457_v9, 0.0  ;;  %v6367_v30 = vsel %vm148_vm1, %v13155_v19, 0.0  ;;  %v15239_v9 = vld [vmem:[#allocation30_spill] sm:$0xff] }
 0x2e0   :  { %15235 = vst [vmem:[#allocation55_spill] sm:$0xff] %v13164_v3  ;;  %v13166_v34 = vadd.f32 %v9530_v61, %v5553_v32  ;;  %v5552_v14 = vadd.f32 %v5409_v7, %v15237_v48  ;;  %v6119_v1 = vpop.f32.mrf.mxu0  ;;  %v6365_v49 = vsel %vm148_vm1, %v13164_v3, 0.0  ;;  %v6458_v36 = vmul.f32 %v13164_v3, %v13164_v3 }
 0x2e1   :  { %v9435_v45 = vpop.f32.mrf.mxu1  ;;  %v6565_v42 = vsel %vm148_vm1, %v6459_v5, 0.0  ;;  %v6366_v21 = vadd.f32 %v6365_v49, %v6364_v27  ;;  %v6562_v59 = vadd.f32 %v6561_v23, %v6560_v28  ;;  %v9563_v5 = vmov 0.0  }
 0x2e2   :  { %15236 = vst [vmem:[#allocation56_spill] sm:$0xff] %v13166_v34  ;;  %v9533_v16 = vpop.f32.mrf.mxu0  ;;  %v6563_v22 = vsel %vm148_vm1, %v6458_v36, 0.0  ;;  %v13178_v40 = vadd.f32 %v6119_v1, %v5552_v14  ;;  %v5555_v32 = vadd.f32 %v9435_v45, %v15239_v9  ;;  %v13183_v48 = vmul.f32 %v13166_v34, %v13166_v34  ;;  %6887 = vst.msk [vmem:[%s14811_s4] sm:$0xff] %vm148_vm1, %v9563_v5  ;;  %v15242_v36 = vld [vmem:[#allocation33_spill] sm:$0xff] }
 0x2e3   :  { %v5419_v61 = vpop.f32.mrf.mxu1  ;;  %v6564_v7 = vadd.f32 %v6563_v22, %v6562_v59  ;;  %v6368_v3 = vadd.f32 %v6367_v30, %v6366_v21  ;;  %6888 = vst.msk [vmem:[%s14811_s4 + $0x8] sm:$0xff] %vm148_vm1, %v9563_v5  ;;  %6891 = vst.msk [vmem:[%s14811_s4 + $0x1b0] sm:$0xff] %vm148_vm1, %v9563_v5 }
 0x2e4   :  { %15238 = vst [vmem:[#allocation57_spill] sm:$0xff] %v13178_v40  ;;  %v5554_v19 = vadd.f32 %v5419_v61, %v15240_v33  ;;  %v6129_v20 = vpop.f32.mrf.mxu0  ;;  %6892 = vst.msk [vmem:[%s14811_s4 + $0x1b8] sm:$0xff] %vm148_vm1, %v9563_v5  ;;  %v6369_v27 = vsel %vm148_vm1, %v13178_v40, 0.0  ;;  %v6460_v33 = vmul.f32 %v13178_v40, %v13178_v40  ;;  %v13230_v28 = vadd.f32 %v9533_v16, %v5555_v32 }
 0x2e5   :  { %8021 = vst.msk [vmem:[%s14811_s4 + $0x198] sm:$0xff] %vm148_vm1, %v9563_v5  ;;  %8022 = vst.msk [vmem:[%s14811_s4 + $0x1a0] sm:$0xff] %vm148_vm1, %v9563_v5  ;;  %v9438_v14 = vpop.f32.mrf.mxu1  ;;  %v6370_v1 = vadd.f32 %v6369_v27, %v6368_v3  ;;  %v6566_v23 = vadd.f32 %v6565_v42, %v6564_v7  ;;  %v6569_v9 = vsel %vm148_vm1, %v13183_v48, 0.0  ;;  %v15243_v7 = vld [vmem:[#allocation36_spill] sm:$0xff]  ;;  %v15244_v48 = vld [vmem:[#allocation34_spill] sm:$0xff] }
 0x2e6   :  { %8024 = vst.msk [vmem:[%s14811_s4 + $0x348] sm:$0xff] %vm148_vm1, %v9563_v5  ;;  %8025 = vst.msk [vmem:[%s14811_s4 + $0x350] sm:$0xff] %vm148_vm1, %v9563_v5  ;;  %v13232_v49 = vadd.f32 %v6129_v20, %v5554_v19  ;;  %v13235_v45 = vadd.f32 %v9438_v14, %v15242_v36  ;;  %v13237_v30 = vpop.f32.mrf.mxu0  ;;  %v6371_v20 = vsel %vm148_vm1, %v13166_v34, 0.0  ;;  %v6567_v3 = vsel %vm148_vm1, %v6460_v33, 0.0 }
 0x2e7   :  { %15241 = vst [vmem:[#allocation58_spill] sm:$0xff] %v13230_v28  ;;  %6890 = vst.msk [vmem:[%s14811_s4 + $0x10] sm:$0x3] %vm6889_vm2, %v9563_v5  ;;  %v13258_v19 = vpop.f32.mrf.mxu1  ;;  %v13260_v42 = vadd.f32 %v6567_v3, %v6566_v23  ;;  %v13262_v21 = vadd.f32 %v6371_v20, %v6370_v1  ;;  %v6463_v32 = vmul.f32 %v13230_v28, %v13230_v28  ;;  %v6375_v20 = vsel %vm148_vm1, %v13230_v28, 0.0 }
 0x2e8   :  { %6893 = vst.msk [vmem:[%s14811_s4 + $0x1c0] sm:$0x3] %vm6889_vm2, %v9563_v5  ;;  %8023 = vst.msk [vmem:[%s14811_s4 + $0x1a8] sm:$0x3] %vm6889_vm2, %v9563_v5  ;;  %v13266_v59 = vsel %vm148_vm1, %v13232_v49, 0.0  ;;  %v13270_v16 = vmul.f32 %v13232_v49, %v13232_v49  ;;  %v13272_v22 = vpop.f32.mrf.mxu0  ;;  %v13640_v61 = vadd.f32 %v13237_v30, %v13235_v45  ;;  %v5556_v27 = vadd.f32 %v13258_v19, %v15243_v7 }
 0x2e9   :  { %8026 = vst.msk [vmem:[%s14811_s4 + $0x358] sm:$0x3] %vm6889_vm2, %v9563_v5  ;;  %v9441_v33 = vpop.f32.mrf.mxu1  ;;  %v6374_v14 = vadd.f32 %v13266_v59, %v13262_v21  ;;  %v6570_v1 = vadd.f32 %v6569_v9, %v13260_v42  ;;  %v15245_v59 = vld [vmem:[#allocation35_spill] sm:$0xff] }
 0x2ea   :  { %6902 = vst.msk [vmem:[%s14811_s4] sm:$0x1] %vm6901_vm3, %v9563_v5  ;;  %6903 = vst.msk [vmem:[%s14811_s4 + $0x18] sm:$0x1] %vm6901_vm3, %v9563_v5  ;;  %v5559_v23 = vadd.f32 %v9441_v33, %v15244_v48  ;;  %v9539_v36 = vpop.f32.mrf.mxu0  ;;  %v13653_v45 = vadd.f32 %v13272_v22, %v5556_v27  ;;  %v6465_v19 = vmul.f32 %v13640_v61, %v13640_v61 }
 0x2eb   :  { %6904 = vst.msk [vmem:[%s14811_s4 + $0x30] sm:$0x1] %vm6901_vm3, %v9563_v5  ;;  %6905 = vst.msk [vmem:[%s14811_s4 + $0x48] sm:$0x1] %vm6901_vm3, %v9563_v5  ;;  %v5439_v30 = vpop.f32.mrf.mxu1  ;;  %v6376_v21 = vadd.f32 %v6375_v20, %v6374_v14  ;;  %v6379_v14 = vsel %vm148_vm1, %v13640_v61, 0.0 }
 0x2ec   :  { %6906 = vst.msk [vmem:[%s14811_s4 + $0x60] sm:$0x1] %vm6901_vm3, %v9563_v5  ;;  %6907 = vst.msk [vmem:[%s14811_s4 + $0x78] sm:$0x1] %vm6901_vm3, %v9563_v5  ;;  %v5558_v42 = vadd.f32 %v5439_v30, %v15245_v59  ;;  %v6149_v9 = vpop.f32.mrf.mxu0  ;;  %v6377_v7 = vsel %vm148_vm1, %v13653_v45, 0.0  ;;  %v6464_v33 = vmul.f32 %v13653_v45, %v13653_v45  ;;  %v13663_v48 = vadd.f32 %v9539_v36, %v5559_v23  ;;  %v15246_v23 = vld [vmem:[#allocation37_spill] sm:$0xff] }
 0x2ed   :  { %6908 = vst.msk [vmem:[%s14811_s4 + $0x90] sm:$0x1] %vm6901_vm3, %v9563_v5  ;;  %6909 = vst.msk [vmem:[%s14811_s4 + $0xa8] sm:$0x1] %vm6901_vm3, %v9563_v5  ;;  %v9444_v22 = vpop.f32.mrf.mxu1  ;;  %v6378_v27 = vadd.f32 %v6377_v7, %v6376_v21  ;;  %v6577_v28 = vsel %vm148_vm1, %v6465_v19, 0.0 }
 0x2ee   :  { %6910 = vst.msk [vmem:[%s14811_s4 + $0xc0] sm:$0x1] %vm6901_vm3, %v9563_v5  ;;  %6911 = vst.msk [vmem:[%s14811_s4 + $0xd8] sm:$0x1] %vm6901_vm3, %v9563_v5  ;;  %v6575_v20 = vsel %vm148_vm1, %v6464_v33, 0.0  ;;  %v13668_v30 = vadd.f32 %v6149_v9, %v5558_v42 }
 0x2ef   :  { %6912 = vst.msk [vmem:[%s14811_s4 + $0xf0] sm:$0x1] %vm6901_vm3, %v9563_v5  ;;  %6913 = vst.msk [vmem:[%s14811_s4 + $0x108] sm:$0x1] %vm6901_vm3, %v9563_v5  ;;  %v5449_v59 = vpop.f32.mrf.mxu1  ;;  %v6380_v40 = vadd.f32 %v6379_v14, %v6378_v27  ;;  %v6383_v27 = vsel %vm148_vm1, %v13663_v48, 0.0 }
 0x2f0   :  { %6914 = vst.msk [vmem:[%s14811_s4 + $0x120] sm:$0x1] %vm6901_vm3, %v9563_v5  ;;  %6915 = vst.msk [vmem:[%s14811_s4 + $0x138] sm:$0x1] %vm6901_vm3, %v9563_v5  ;;  %v5560_v36 = vadd.f32 %v5449_v59, %v15246_v23  ;;  %v6381_v21 = vsel %vm148_vm1, %v13668_v30, 0.0  ;;  %v6466_v42 = vmul.f32 %v13668_v30, %v13668_v30 }
 0x2f1   :  { %6916 = vst.msk [vmem:[%s14811_s4 + $0x150] sm:$0x1] %vm6901_vm3, %v9563_v5  ;;  %6917 = vst.msk [vmem:[%s14811_s4 + $0x168] sm:$0x1] %vm6901_vm3, %v9563_v5 }
 0x2f2   :  { %6918 = vst.msk [vmem:[%s14811_s4 + $0x180] sm:$0x1] %vm6901_vm3, %v9563_v5  ;;  %6919 = vst.msk [vmem:[%s14811_s4 + $0x198] sm:$0x1] %vm6901_vm3, %v9563_v5 }
 0x2f3   :  { %6920 = vst.msk [vmem:[%s14811_s4 + $0x1b0] sm:$0x1] %vm6901_vm3, %v9563_v5  ;;  %6921 = vst.msk [vmem:[%s14811_s4 + $0x1c8] sm:$0x1] %vm6901_vm3, %v9563_v5 }
 0x2f4   :  { %6922 = vst.msk [vmem:[%s14811_s4 + $0x1e0] sm:$0x1] %vm6901_vm3, %v9563_v5  ;;  %6923 = vst.msk [vmem:[%s14811_s4 + $0x1f8] sm:$0x1] %vm6901_vm3, %v9563_v5 }
 0x2f5   :  { %6924 = vst.msk [vmem:[%s14811_s4 + $0x210] sm:$0x1] %vm6901_vm3, %v9563_v5  ;;  %6925 = vst.msk [vmem:[%s14811_s4 + $0x228] sm:$0x1] %vm6901_vm3, %v9563_v5 }
 0x2f6   :  { %6926 = vst.msk [vmem:[%s14811_s4 + $0x240] sm:$0x1] %vm6901_vm3, %v9563_v5  ;;  %6927 = vst.msk [vmem:[%s14811_s4 + $0x258] sm:$0x1] %vm6901_vm3, %v9563_v5 }
 0x2f7   :  { %6928 = vst.msk [vmem:[%s14811_s4 + $0x270] sm:$0x1] %vm6901_vm3, %v9563_v5  ;;  %6929 = vst.msk [vmem:[%s14811_s4 + $0x288] sm:$0x1] %vm6901_vm3, %v9563_v5 }
 0x2f8   :  { %6930 = vst.msk [vmem:[%s14811_s4 + $0x2a0] sm:$0x1] %vm6901_vm3, %v9563_v5  ;;  %6931 = vst.msk [vmem:[%s14811_s4 + $0x2b8] sm:$0x1] %vm6901_vm3, %v9563_v5 }
 0x2f9   :  { %6932 = vst.msk [vmem:[%s14811_s4 + $0x2d0] sm:$0x1] %vm6901_vm3, %v9563_v5  ;;  %6933 = vst.msk [vmem:[%s14811_s4 + $0x2e8] sm:$0x1] %vm6901_vm3, %v9563_v5 }
 0x2fa   :  { %6934 = vst.msk [vmem:[%s14811_s4 + $0x300] sm:$0x1] %vm6901_vm3, %v9563_v5  ;;  %6935 = vst.msk [vmem:[%s14811_s4 + $0x318] sm:$0x1] %vm6901_vm3, %v9563_v5 }
 0x2fb   :  { %6936 = vst.msk [vmem:[%s14811_s4 + $0x330] sm:$0x1] %vm6901_vm3, %v9563_v5  ;;  %6937 = vst.msk [vmem:[%s14811_s4 + $0x348] sm:$0x1] %vm6901_vm3, %v9563_v5 }
 0x2fc   :  { %6938 = vst.msk [vmem:[%s14811_s4 + $0x11] sm:$0x1] %vm6901_vm3, %v9563_v5  ;;  %6939 = vst.msk [vmem:[%s14811_s4 + $0x29] sm:$0x1] %vm6901_vm3, %v9563_v5 }
 0x2fd   :  { %6940 = vst.msk [vmem:[%s14811_s4 + $0x41] sm:$0x1] %vm6901_vm3, %v9563_v5  ;;  %6941 = vst.msk [vmem:[%s14811_s4 + $0x59] sm:$0x1] %vm6901_vm3, %v9563_v5 }
 0x2fe   :  { %6942 = vst.msk [vmem:[%s14811_s4 + $0x71] sm:$0x1] %vm6901_vm3, %v9563_v5  ;;  %6943 = vst.msk [vmem:[%s14811_s4 + $0x89] sm:$0x1] %vm6901_vm3, %v9563_v5 }
 0x2ff   :  { %6944 = vst.msk [vmem:[%s14811_s4 + $0xa1] sm:$0x1] %vm6901_vm3, %v9563_v5  ;;  %6945 = vst.msk [vmem:[%s14811_s4 + $0xb9] sm:$0x1] %vm6901_vm3, %v9563_v5 }
 0x300   :  { %6946 = vst.msk [vmem:[%s14811_s4 + $0xd1] sm:$0x1] %vm6901_vm3, %v9563_v5  ;;  %6947 = vst.msk [vmem:[%s14811_s4 + $0xe9] sm:$0x1] %vm6901_vm3, %v9563_v5 }
 0x301   :  { %6948 = vst.msk [vmem:[%s14811_s4 + $0x101] sm:$0x1] %vm6901_vm3, %v9563_v5  ;;  %6949 = vst.msk [vmem:[%s14811_s4 + $0x119] sm:$0x1] %vm6901_vm3, %v9563_v5 }
 0x302   :  { %6950 = vst.msk [vmem:[%s14811_s4 + $0x131] sm:$0x1] %vm6901_vm3, %v9563_v5  ;;  %6951 = vst.msk [vmem:[%s14811_s4 + $0x149] sm:$0x1] %vm6901_vm3, %v9563_v5 }
 0x303   :  { %6952 = vst.msk [vmem:[%s14811_s4 + $0x161] sm:$0x1] %vm6901_vm3, %v9563_v5  ;;  %6953 = vst.msk [vmem:[%s14811_s4 + $0x179] sm:$0x1] %vm6901_vm3, %v9563_v5 }
 0x304   :  { %6954 = vst.msk [vmem:[%s14811_s4 + $0x191] sm:$0x1] %vm6901_vm3, %v9563_v5  ;;  %6955 = vst.msk [vmem:[%s14811_s4 + $0x1a9] sm:$0x1] %vm6901_vm3, %v9563_v5 }
 0x305   :  { %6956 = vst.msk [vmem:[%s14811_s4 + $0x1c1] sm:$0x1] %vm6901_vm3, %v9563_v5  ;;  %6957 = vst.msk [vmem:[%s14811_s4 + $0x1d9] sm:$0x1] %vm6901_vm3, %v9563_v5 }
 0x306   :  { %6958 = vst.msk [vmem:[%s14811_s4 + $0x1f1] sm:$0x1] %vm6901_vm3, %v9563_v5  ;;  %6959 = vst.msk [vmem:[%s14811_s4 + $0x209] sm:$0x1] %vm6901_vm3, %v9563_v5 }
 0x307   :  { %6960 = vst.msk [vmem:[%s14811_s4 + $0x221] sm:$0x1] %vm6901_vm3, %v9563_v5  ;;  %6961 = vst.msk [vmem:[%s14811_s4 + $0x239] sm:$0x1] %vm6901_vm3, %v9563_v5 }
 0x308   :  { %6962 = vst.msk [vmem:[%s14811_s4 + $0x251] sm:$0x1] %vm6901_vm3, %v9563_v5  ;;  %6963 = vst.msk [vmem:[%s14811_s4 + $0x269] sm:$0x1] %vm6901_vm3, %v9563_v5 }
 0x309   :  { %6964 = vst.msk [vmem:[%s14811_s4 + $0x281] sm:$0x1] %vm6901_vm3, %v9563_v5  ;;  %6965 = vst.msk [vmem:[%s14811_s4 + $0x299] sm:$0x1] %vm6901_vm3, %v9563_v5 }
 0x30a   :  { %6966 = vst.msk [vmem:[%s14811_s4 + $0x2b1] sm:$0x1] %vm6901_vm3, %v9563_v5  ;;  %6967 = vst.msk [vmem:[%s14811_s4 + $0x2c9] sm:$0x1] %vm6901_vm3, %v9563_v5 }
 0x30b   :  { %6968 = vst.msk [vmem:[%s14811_s4 + $0x2e1] sm:$0x1] %vm6901_vm3, %v9563_v5  ;;  %6969 = vst.msk [vmem:[%s14811_s4 + $0x2f9] sm:$0x1] %vm6901_vm3, %v9563_v5 }
 0x30c   :  { %6970 = vst.msk [vmem:[%s14811_s4 + $0x311] sm:$0x1] %vm6901_vm3, %v9563_v5  ;;  %6971 = vst.msk [vmem:[%s14811_s4 + $0x329] sm:$0x1] %vm6901_vm3, %v9563_v5 }
 0x30d   :  { %6972 = vst.msk [vmem:[%s14811_s4 + $0x341] sm:$0x1] %vm6901_vm3, %v9563_v5  ;;  %6973 = vst.msk [vmem:[%s14811_s4 + $0x359] sm:$0x1] %vm6901_vm3, %v9563_v5  ;;  %v6571_v5 = vsel %vm148_vm1, %v13270_v16, 0.0  ;;  %v6573_v16 = vsel %vm148_vm1, %v6463_v32, 0.0  ;;  %v5561_v32 = vadd.f32 %v9444_v22, %v12787_v29  ;;  %v9447_v29 = vpop.f32.mrf.mxu1 }
 0x30e   :  { %v6572_v3 = vadd.f32 %v6571_v5, %v6570_v1  ;;  %v9542_v5 = vpop.f32.mrf.mxu0  ;;  %v5563_v33 = vadd.f32 %v9447_v29, %v12793_v25 }
 0x30f   :  { %v13679_v9 = vadd.f32 %v9542_v5, %v5561_v32  ;;  %v5459_v14 = vpop.f32.mrf.mxu1 }
 0x310   :  { %v6574_v1 = vadd.f32 %v6573_v16, %v6572_v3  ;;  %v6159_v50 = vpop.f32.mrf.mxu0  ;;  %v6467_v3 = vmul.f32 %v13663_v48, %v13663_v48  ;;  %v6382_v16 = vadd.f32 %v6381_v21, %v6380_v40  ;;  %v5562_v32 = vadd.f32 %v5459_v14, %v12796_v35 }
 0x311   :  { %15247 = vst [vmem:[#allocation59_spill] sm:$0xff] %v13679_v9  ;;  %v13681_v19 = vadd.f32 %v6159_v50, %v5560_v36  ;;  %v6469_v25 = vmul.f32 %v13679_v9, %v13679_v9  ;;  %v9450_v23 = vpop.f32.mrf.mxu1 }
 0x312   :  { %v6576_v34 = vadd.f32 %v6575_v20, %v6574_v1  ;;  %v9545_v22 = vpop.f32.mrf.mxu0  ;;  %v6579_v1 = vsel %vm148_vm1, %v6466_v42, 0.0  ;;  %v6384_v59 = vadd.f32 %v6383_v27, %v6382_v16  ;;  %v6581_v50 = vsel %vm148_vm1, %v6467_v3, 0.0 }
 0x313   :  { %v6385_v5 = vsel %vm148_vm1, %v13681_v19, 0.0  ;;  %v6468_v40 = vmul.f32 %v13681_v19, %v13681_v19  ;;  %v5565_v29 = vadd.f32 %v9450_v23, %v12799_v62  ;;  %v5469_v3 = vpop.f32.mrf.mxu1 }
 0x314   :  { %v6578_v7 = vadd.f32 %v6577_v28, %v6576_v34  ;;  %v6169_v34 = vpop.f32.mrf.mxu0  ;;  %v13694_v28 = vadd.f32 %v9545_v22, %v5563_v33  ;;  %v6386_v36 = vadd.f32 %v6385_v5, %v6384_v59  ;;  %v5564_v35 = vadd.f32 %v5469_v3, %v12802_v57 }
 0x315   :  { %v6583_v42 = vsel %vm148_vm1, %v6468_v40, 0.0  ;;  %v13701_v27 = vadd.f32 %v6169_v34, %v5562_v32  ;;  %v9453_v40 = vpop.f32.mrf.mxu1 }
 0x316   :  { %v6580_v20 = vadd.f32 %v6579_v1, %v6578_v7  ;;  %15248 = vst [vmem:[#allocation60_spill] sm:$0xff] %v13694_v28  ;;  %v9548_v16 = vpop.f32.mrf.mxu0  ;;  %v6387_v7 = vsel %vm148_vm1, %v13679_v9, 0.0  ;;  %v6471_v33 = vmul.f32 %v13694_v28, %v13694_v28  ;;  %v6391_v23 = vsel %vm148_vm1, %v13694_v28, 0.0 }
 0x317   :  { %15249 = vst [vmem:[#allocation61_spill] sm:$0xff] %v13701_v27  ;;  %v6388_v22 = vadd.f32 %v6387_v7, %v6386_v36  ;;  %v6389_v62 = vsel %vm148_vm1, %v13701_v27, 0.0  ;;  %v6470_v59 = vmul.f32 %v13701_v27, %v13701_v27  ;;  %v13711_v5 = vadd.f32 %v9548_v16, %v5565_v29 }
 0x318   :  { %v6582_v21 = vadd.f32 %v6581_v50, %v6580_v20  ;;  %v6179_v14 = vpop.f32.mrf.mxu0  ;;  %v6585_v20 = vsel %vm148_vm1, %v6469_v25, 0.0  ;;  %v5567_v25 = vadd.f32 %v9453_v40, %v12805_v0 }
 0x319   :  { %15250 = vst [vmem:[#allocation62_spill] sm:$0xff] %v13711_v5  ;;  %v6390_v34 = vadd.f32 %v6389_v62, %v6388_v22  ;;  %v6587_v57 = vsel %vm148_vm1, %v6470_v59, 0.0  ;;  %v13716_v36 = vadd.f32 %v6179_v14, %v5564_v35  ;;  %v6395_v40 = vsel %vm148_vm1, %v13711_v5, 0.0 }
 0x31a   :  { %v6584_v1 = vadd.f32 %v6583_v42, %v6582_v21  ;;  %v9551_v32 = vpop.f32.mrf.mxu0  ;;  %v5479_v21 = vpop.f32.mrf.mxu1  ;;  %v6589_v42 = vsel %vm148_vm1, %v6471_v33, 0.0 }
 0x31b   :  { %15251 = vst [vmem:[#allocation63_spill] sm:$0xff] %v13716_v36  ;;  %v6392_v3 = vadd.f32 %v6391_v23, %v6390_v34  ;;  %v5566_v29 = vadd.f32 %v5479_v21, %v12808_v60  ;;  %v6393_v22 = vsel %vm148_vm1, %v13716_v36, 0.0  ;;  %v6472_v35 = vmul.f32 %v13716_v36, %v13716_v36 }
 0x31c   :  { %v6586_v50 = vadd.f32 %v6585_v20, %v6584_v1  ;;  %v6189_v16 = vpop.f32.mrf.mxu0  ;;  %v6473_v1 = vmul.f32 %v13711_v5, %v13711_v5  ;;  %v13727_v14 = vadd.f32 %v9551_v32, %v5567_v25  ;;  %v9456_v0 = vpop.f32.mrf.mxu1 }
 0x31d   :  { %v6394_v20 = vadd.f32 %v6393_v22, %v6392_v3  ;;  %v13729_v33 = vadd.f32 %v6189_v16, %v5566_v29  ;;  %v5569_v59 = vadd.f32 %v9456_v0, %v12811_v24  ;;  %v6591_v34 = vsel %vm148_vm1, %v6472_v35, 0.0  ;;  %v15255_v3 = vld [vmem:[#allocation40_spill] sm:$0xff] }
 0x31e   :  { %v6588_v7 = vadd.f32 %v6587_v57, %v6586_v50  ;;  %15252 = vst [vmem:[#allocation64_spill] sm:$0xff] %v13727_v14  ;;  %v9554_v60 = vpop.f32.mrf.mxu0  ;;  %v6475_v50 = vmul.f32 %v13727_v14, %v13727_v14  ;;  %v5489_v23 = vpop.f32.mrf.mxu1  ;;  %v6593_v24 = vsel %vm148_vm1, %v6473_v1, 0.0 }
 0x31f   :  { %15253 = vst [vmem:[#allocation65_spill] sm:$0xff] %v13729_v33  ;;  %v6396_v32 = vadd.f32 %v6395_v40, %v6394_v20  ;;  %v6397_v25 = vsel %vm148_vm1, %v13729_v33, 0.0  ;;  %v6474_v21 = vmul.f32 %v13729_v33, %v13729_v33  ;;  %v5568_v29 = vadd.f32 %v5489_v23, %v15255_v3 }
 0x320   :  { %v6590_v62 = vadd.f32 %v6589_v42, %v6588_v7  ;;  %v6199_v42 = vpop.f32.mrf.mxu0  ;;  %v13742_v7 = vadd.f32 %v9554_v60, %v5569_v59  ;;  %v9459_v16 = vpop.f32.mrf.mxu1  ;;  %v6597_v1 = vsel %vm148_vm1, %v6475_v50, 0.0 }
 0x321   :  { %v6398_v22 = vadd.f32 %v6397_v25, %v6396_v32  ;;  %v6595_v0 = vsel %vm148_vm1, %v6474_v21, 0.0  ;;  %v13749_v52 = vadd.f32 %v6199_v42, %v5568_v29 }
 0x322   :  { %v6592_v57 = vadd.f32 %v6591_v34, %v6590_v62  ;;  %15254 = vst [vmem:[#allocation66_spill] sm:$0xff] %v13742_v7  ;;  %v15256_v62 = vld [vmem:[#allocation38_spill] sm:$0xff]  ;;  %v9557_v40 = vpop.f32.mrf.mxu0  ;;  %v6399_v34 = vsel %vm148_vm1, %v13727_v14, 0.0  ;;  %v5499_v13 = vpop.f32.mrf.mxu1  ;;  %v6403_v50 = vsel %vm148_vm1, %v13742_v7, 0.0 }
 0x323   :  { %v5571_v20 = vadd.f32 %v9459_v16, %v15256_v62  ;;  %15257 = vst [vmem:[#allocation67_spill] sm:$0xff] %v13749_v52  ;;  %v6400_v60 = vadd.f32 %v6399_v34, %v6398_v22  ;;  %v5570_v23 = vadd.f32 %v5499_v13, %v15258_v6  ;;  %v6401_v32 = vsel %vm148_vm1, %v13749_v52, 0.0 }
 0x324   :  { %v6594_v35 = vadd.f32 %v6593_v24, %v6592_v57  ;;  %v6477_v57 = vmul.f32 %v13742_v7, %v13742_v7  ;;  %v6476_v25 = vmul.f32 %v13749_v52, %v13749_v52  ;;  %v6209_v3 = vpop.f32.mrf.mxu0 }
 0x325   :  { %v13759_v21 = vadd.f32 %v9557_v40, %v5571_v20  ;;  %v6402_v42 = vadd.f32 %v6401_v32, %v6400_v60  ;;  %v13764_v6 = vadd.f32 %v6209_v3, %v5570_v23 }
 0x326   :  { %v6596_v59 = vadd.f32 %v6595_v0, %v6594_v35  ;;  %v6599_v29 = vsel %vm148_vm1, %v6476_v25, 0.0  ;;  %v6601_v22 = vsel %vm148_vm1, %v6477_v57, 0.0 }
 0x327   :  { %15259 = vst [vmem:[#allocation68_spill] sm:$0xff] %v13759_v21  ;;  %15260 = vst [vmem:[#allocation69_spill] sm:$0xff] %v13764_v6  ;;  %v6404_v16 = vadd.f32 %v6403_v50, %v6402_v42  ;;  %v6479_v35 = vmul.f32 %v13759_v21, %v13759_v21  ;;  %v6405_v0 = vsel %vm148_vm1, %v13764_v6, 0.0  ;;  %v6478_v62 = vmul.f32 %v13764_v6, %v13764_v6 }
 0x328   :  { %v6598_v24 = vadd.f32 %v6597_v1, %v6596_v59  ;;  %v6407_v34 = vsel %vm148_vm1, %v13759_v21, 0.0 }
 0x329   :  { %v6406_v20 = vadd.f32 %v6405_v0, %v6404_v16  ;;  %v6603_v1 = vsel %vm148_vm1, %v6478_v62, 0.0  ;;  %v6605_v23 = vsel %vm148_vm1, %v6479_v35, 0.0  ;;  %v6684_v62 = vlaneseq }
 0x32a   :  { %v6600_v13 = vadd.f32 %v6599_v29, %v6598_v24 }
 0x32b   :  { %v6408_v59 = vadd.f32 %v6407_v34, %v6406_v20  ;;  %v13781_v34 = vshrl.u32 %v6684_v62, 7 }
 0x32c   :  { %v6602_v40 = vadd.f32 %v6601_v22, %v6600_v13 }
 0x32d   :  { %v6409_v57 = vrot.slane %v6408_v59, 4 }
 0x32e   :  { %v6604_v60 = vadd.f32 %v6603_v1, %v6602_v40 }
 0x32f   :  { %v6410_v25 = vadd.f32 %v6409_v57, %v6408_v59  ;;  %v15261_v59 = vld [vmem:[#allocation48_spill] sm:$0xff] }
 0x330   :  { %v6606_v32 = vadd.f32 %v6605_v23, %v6604_v60  ;;  %v15262_v23 = vld [vmem:[#allocation41_spill] sm:$0xff]  ;;  %v15272_v57 = vld [vmem:[#allocation4_spill] sm:$0xff] }
 0x331   :  { %v6411_v24 = vrot.slane %v6410_v25, 2  ;;  %v15271_v60 = vld [vmem:[#allocation45_spill] sm:$0xff] }
 0x332   :  { %v6607_v42 = vrot.slane %v6606_v32, 4 }
 0x333   :  { %v6412_v50 = vadd.f32 %v6411_v24, %v6410_v25 }
 0x334   :  { %v6608_v3 = vadd.f32 %v6607_v42, %v6606_v32  ;;  %v15263_v32 = vld [vmem:[#allocation42_spill] sm:$0xff] }
 0x335   :  { %v6413_v63 = vrot.slane %v6412_v50, 1 }
 0x336   :  { %v6609_v29 = vrot.slane %v6608_v3, 2 }
 0x337   :  { %v6414_v13 = vadd.f32 %v6413_v63, %v6412_v50  ;;  %v15270_v63 = vld [vmem:[#allocation2_spill] sm:$0xff] }
 0x338   :  { %v6610_v16 = vadd.f32 %v6609_v29, %v6608_v3 }
 0x339   :  { %v13777_v0 = vmul.f32 0.001953125, %v6414_v13  ;;  %v6618_v13 = vld [vmem:[%s14812_s2] sm:$0x1] }
 0x33a   :  { %v6611_v22 = vrot.slane %v6610_v16, 1 }
 0x33b   :  { %v6614_v35 = vmul.f32 %v13777_v0, %v13777_v0  ;;  %v6643_v62 = vsub.f32 %v12996_v4, %v13777_v0  ;;  %v15266_v4 = vld [vmem:[#allocation43_spill] sm:$0xff]  ;;  %v6655_v21 = vsub.f32 %v15272_v57, %v13777_v0 }
 0x33c   :  { %v6612_v55 = vadd.f32 %v6611_v22, %v6610_v16  ;;  %v6642_v22 = vsub.f32 %v12998_v15, %v13777_v0  ;;  %v15264_v16 = vld [vmem:[#allocation47_spill] sm:$0xff]  ;;  %v15265_v15 = vld [vmem:[#allocation49_spill] sm:$0xff]  ;;  %v6649_v24 = vsub.f32 %v15266_v4, %v13777_v0  ;;  %v15273_v4 = vld [vmem:[#allocation6_spill] sm:$0xff] }
 0x33d   :  { %v6647_v29 = vsub.f32 %v15264_v16, %v13777_v0  ;;  %v6648_v50 = vsub.f32 %v15265_v15, %v13777_v0  ;;  %v6653_v16 = vsub.f32 %v15270_v63, %v13777_v0  ;;  %v6654_v15 = vsub.f32 %v15271_v60, %v13777_v0  ;;  %v15277_v63 = vld [vmem:[#allocation53_spill] sm:$0xff]  ;;  %v15278_v60 = vld [vmem:[#allocation52_spill] sm:$0xff]  ;;  %v15279_v57 = vld [vmem:[#allocation55_spill] sm:$0xff] }
 0x33e   :  { %v6613_v20 = vmul.f32 0.001953125, %v6612_v55  ;;  %v6656_v6 = vsub.f32 %v15273_v4, %v13777_v0  ;;  %v6661_v14 = vsub.f32 %v15278_v60, %v13777_v0  ;;  %v6662_v33 = vsub.f32 %v15279_v57, %v13777_v0 }
 0x33f   :  { %v15280_v4 = vsub.s32 0, %v13781_v34  ;;  %v15285_v60 = vsub.f32 %v15261_v59, %v13777_v0  ;;  %v15286_v34 = vsub.f32 %v15262_v23, %v13777_v0 }
 0x340   :  { %v6615_v40 = vsub.f32 %v6613_v20, %v6614_v35  ;;  %v6644_v20 = vsub.f32 %v13018_v51, %v13777_v0  ;;  %v15267_v51 = vld [vmem:[#allocation5_spill] sm:$0xff]  ;;  %v15268_v35 = vld [vmem:[#allocation44_spill] sm:$0xff] }
 0x341   :  { %v6650_v42 = vsub.f32 %v15267_v51, %v13777_v0  ;;  %v6651_v55 = vsub.f32 %v15268_v35, %v13777_v0  ;;  %v15274_v51 = vld [vmem:[#allocation46_spill] sm:$0xff]  ;;  %v15275_v35 = vld [vmem:[#allocation51_spill] sm:$0xff] }
 0x342   :  { %v6616_v1 = vadd.f32 1e-05, %v6615_v40  ;;  %v6645_v40 = vsub.f32 %v13011_v56, %v13777_v0  ;;  %v15269_v56 = vld [vmem:[#allocation3_spill] sm:$0xff]  ;;  %v6657_v7 = vsub.f32 %v15274_v51, %v13777_v0  ;;  %v6658_v52 = vsub.f32 %v15275_v35, %v13777_v0  ;;  %v15281_v51 = vld [vmem:[#allocation54_spill] sm:$0xff]  ;;  %v15282_v35 = vld [vmem:[#allocation57_spill] sm:$0xff] }
 0x343   :  { %v6652_v25 = vsub.f32 %v15269_v56, %v13777_v0  ;;  %v6660_v56 = vsub.f32 %v15277_v63, %v13777_v0  ;;  %v6663_v36 = vsub.f32 %v15281_v51, %v13777_v0  ;;  %v6664_v28 = vsub.f32 %v15282_v35, %v13777_v0  ;;  %v15284_v63 = vld [vmem:[#allocation58_spill] sm:$0xff] }
 0x344   :  { %9561 = vrsqrt.f32 %v6616_v1  ;;  %v6646_v1 = vsub.f32 %v13033_v2, %v13777_v0  ;;  %v6667_v9 = vsub.f32 %v15284_v63, %v13777_v0  ;;  %v15288_v35 = vsub.f32 %v12831_v58, %v13777_v0 }
 0x345   :  { %v15290_v63 = vsub.f32 %v12852_v8, %v13777_v0 }
 0x351   :  { %v9562_v3 = vpop.eup %9561 }
 0x352   :  { %v6619_v2 = vmul.f32 %v9562_v3, %v6618_v13  ;;  %v15276_v3 = vld [vmem:[#allocation50_spill] sm:$0xff] }
 0x353   :  { %v6659_v13 = vsub.f32 %v15276_v3, %v13777_v0  ;;  %v15283_v3 = vld [vmem:[#allocation56_spill] sm:$0xff] }
 0x354   :  { %v13909_v5 = vrot.slane %v6619_v2, %v15280_v4  ;;  %v6665_v27 = vsub.f32 %v15283_v3, %v13777_v0  ;;  %v15287_v4 = vsub.f32 %v15263_v32, %v13777_v0  ;;  %v15289_v3 = vsub.f32 %v12854_v12, %v13777_v0 }
 0x356   :  { %v13923_v57 = vmul.f32 %v13909_v5, %v15285_v60  ;;  %v13929_v2 = vmul.f32 %v13909_v5, %v15286_v34  ;;  %v13935_v51 = vmul.f32 %v13909_v5, %v15287_v4  ;;  %v13941_v59 = vmul.f32 %v13909_v5, %v15288_v35 }
 0x357   :  { %v13947_v23 = vmul.f32 %v13909_v5, %v15289_v3  ;;  %v13953_v32 = vmul.f32 %v13909_v5, %v15290_v63  ;;  %v15291_v60 = vsub.f32 %v12874_v38, %v13777_v0  ;;  %v15292_v34 = vsub.f32 %v12867_v54, %v13777_v0 }
 0x358   :  { %v15293_v4 = vsub.f32 %v12889_v18, %v13777_v0  ;;  %v15294_v35 = vsub.f32 %v12884_v41, %v13777_v0  ;;  %v15295_v3 = vsub.f32 %v12902_v47, %v13777_v0  ;;  %v15296_v63 = vsub.f32 %v12900_v11, %v13777_v0 }
 0x359   :  { %v13959_v58 = vmul.f32 %v13909_v5, %v15291_v60  ;;  %v13965_v12 = vmul.f32 %v13909_v5, %v15292_v34  ;;  %v15297_v60 = vsub.f32 %v12922_v17, %v13777_v0  ;;  %v15298_v34 = vsub.f32 %v12915_v39, %v13777_v0 }
 0x35a   :  { %v13971_v8 = vmul.f32 %v13909_v5, %v15293_v4  ;;  %v13977_v38 = vmul.f32 %v13909_v5, %v15294_v35  ;;  %v13983_v54 = vmul.f32 %v13909_v5, %v15295_v3  ;;  %v13989_v18 = vmul.f32 %v13909_v5, %v15296_v63 }
 0x35b   :  { %v13995_v41 = vmul.f32 %v13909_v5, %v15297_v60  ;;  %v14001_v47 = vmul.f32 %v13909_v5, %v15298_v34  ;;  %v15299_v4 = vsub.f32 %v12937_v10, %v13777_v0  ;;  %v15300_v35 = vsub.f32 %v12932_v46, %v13777_v0 }
 0x35c   :  { %v15301_v3 = vsub.f32 %v12950_v26, %v13777_v0  ;;  %v15302_v63 = vsub.f32 %v12948_v37, %v13777_v0  ;;  %v15303_v60 = vsub.f32 %v12970_v31, %v13777_v0  ;;  %v15304_v34 = vsub.f32 %v12963_v43, %v13777_v0 }
 0x35d   :  { %v14007_v11 = vmul.f32 %v13909_v5, %v15299_v4  ;;  %v14013_v17 = vmul.f32 %v13909_v5, %v15300_v35  ;;  %v15305_v4 = vsub.f32 %v12985_v44, %v13777_v0  ;;  %v15306_v35 = vsub.f32 %v12980_v53, %v13777_v0 }
 0x35e   :  { %v14019_v39 = vmul.f32 %v13909_v5, %v15301_v3  ;;  %v14025_v10 = vmul.f32 %v13909_v5, %v15302_v63  ;;  %v14031_v46 = vmul.f32 %v13909_v5, %v15303_v60  ;;  %v14037_v26 = vmul.f32 %v13909_v5, %v15304_v34 }
 0x35f   :  { %v14043_v37 = vmul.f32 %v13909_v5, %v15305_v4  ;;  %v14049_v31 = vmul.f32 %v13909_v5, %v15306_v35  ;;  %v14052_v3 = vmul.f32 %v13909_v5, %v6642_v22  ;;  %v14055_v43 = vmul.f32 %v13909_v5, %v6643_v62 }
 0x360   :  { %v14058_v63 = vmul.f32 %v13909_v5, %v6644_v20  ;;  %v14061_v44 = vmul.f32 %v13909_v5, %v6645_v40  ;;  %v14064_v60 = vmul.f32 %v13909_v5, %v6646_v1  ;;  %v14067_v53 = vmul.f32 %v13909_v5, %v6647_v29 }
 0x361   :  { %v14070_v34 = vmul.f32 %v13909_v5, %v6648_v50  ;;  %v14073_v22 = vmul.f32 %v13909_v5, %v6649_v24  ;;  %v14076_v62 = vmul.f32 %v13909_v5, %v6650_v42  ;;  %v14079_v20 = vmul.f32 %v13909_v5, %v6651_v55 }
 0x362   :  { %v14082_v40 = vmul.f32 %v13909_v5, %v6652_v25  ;;  %v14085_v1 = vmul.f32 %v13909_v5, %v6653_v16  ;;  %v14088_v29 = vmul.f32 %v13909_v5, %v6654_v15  ;;  %v14091_v50 = vmul.f32 %v13909_v5, %v6655_v21 }
 0x363   :  { %v14094_v24 = vmul.f32 %v13909_v5, %v6656_v6  ;;  %v14097_v42 = vmul.f32 %v13909_v5, %v6657_v7  ;;  %v14100_v55 = vmul.f32 %v13909_v5, %v6658_v52  ;;  %v14103_v25 = vmul.f32 %v13909_v5, %v6659_v13 }
 0x364   :  { %v14106_v16 = vmul.f32 %v13909_v5, %v6660_v56  ;;  %v14109_v15 = vmul.f32 %v13909_v5, %v6661_v14  ;;  %v14112_v21 = vmul.f32 %v13909_v5, %v6662_v33  ;;  %v14115_v6 = vmul.f32 %v13909_v5, %v6663_v36 }
 0x365   :  { %v14118_v7 = vmul.f32 %v13909_v5, %v6664_v28  ;;  %v14121_v52 = vmul.f32 %v13909_v5, %v6665_v27  ;;  %v15307_v13 = vsub.f32 %v13232_v49, %v13777_v0  ;;  %v14130_v14 = vmul.f32 %v13909_v5, %v6667_v9 }
 0x366   :  { %v15308_v33 = vsub.f32 %v13653_v45, %v13777_v0  ;;  %v15309_v28 = vsub.f32 %v13640_v61, %v13777_v0  ;;  %v15310_v49 = vsub.f32 %v13668_v30, %v13777_v0  ;;  %v15312_v9 = vsub.f32 %v13663_v48, %v13777_v0 }
 0x367   :  { %v14127_v56 = vmul.f32 %v13909_v5, %v15307_v13  ;;  %v15314_v35 = vsub.f32 %v13681_v19, %v13777_v0  ;;  %v15316_v13 = vld [vmem:[#allocation59_spill] sm:$0xff] }
 0x368   :  { %v14136_v36 = vmul.f32 %v13909_v5, %v15308_v33  ;;  %v14142_v27 = vmul.f32 %v13909_v5, %v15309_v28  ;;  %v14148_v4 = vmul.f32 %v13909_v5, %v15310_v49  ;;  %v14154_v45 = vmul.f32 %v13909_v5, %v15312_v9  ;;  %v15319_v28 = vld [vmem:[#allocation61_spill] sm:$0xff]  ;;  %v15322_v9 = vld [vmem:[#allocation60_spill] sm:$0xff] }
 0x369   :  { %v14160_v61 = vmul.f32 %v13909_v5, %v15314_v35  ;;  %v15317_v33 = vsub.f32 %v15316_v13, %v13777_v0  ;;  %v15320_v49 = vsub.f32 %v15319_v28, %v13777_v0  ;;  %v14183_v35 = vld [vmem:[%s14813_s3] ss:$0 sm:$0xff]  ;;  %v15325_v13 = vld [vmem:[#allocation63_spill] sm:$0xff] }
 0x36a   :  { %15311 = vst [vmem:[#allocation70_spill] sm:$0xff] %v14148_v4  ;;  %15313 = vst [vmem:[#allocation71_spill] sm:$0xff] %v14154_v45  ;;  %v15323_v45 = vsub.f32 %v15322_v9, %v13777_v0  ;;  %v15328_v28 = vld [vmem:[#allocation62_spill] sm:$0xff]  ;;  %v15331_v9 = vld [vmem:[#allocation65_spill] sm:$0xff] }
 0x36b   :  { %15315 = vst [vmem:[#allocation72_spill] sm:$0xff] %v14160_v61  ;;  %v14166_v30 = vmul.f32 %v13909_v5, %v15317_v33  ;;  %v14172_v48 = vmul.f32 %v13909_v5, %v15320_v49  ;;  %v15326_v33 = vsub.f32 %v15325_v13, %v13777_v0  ;;  %v15329_v49 = vsub.f32 %v15328_v28, %v13777_v0  ;;  %v15334_v61 = vld [vmem:[#allocation64_spill] sm:$0xff] }
 0x36c   :  { %v14178_v19 = vmul.f32 %v13909_v5, %v15323_v45  ;;  %v15332_v45 = vsub.f32 %v15331_v9, %v13777_v0  ;;  %v15335_v4 = vsub.f32 %v15334_v61, %v13777_v0 }
 0x36d   :  { %15318 = vst [vmem:[#allocation7_spill] sm:$0xff] %v14166_v30  ;;  %15321 = vst [vmem:[#allocation8_spill] sm:$0xff] %v14172_v48  ;;  %v14189_v30 = vmul.f32 %v13909_v5, %v15326_v33  ;;  %v14195_v48 = vmul.f32 %v13909_v5, %v15329_v49  ;;  %v15337_v33 = vld [vmem:[#allocation67_spill] sm:$0xff]  ;;  %v15339_v49 = vld [vmem:[#allocation66_spill] sm:$0xff] }
 0x36e   :  { %15324 = vst [vmem:[#allocation9_spill] sm:$0xff] %v14178_v19  ;;  %v14201_v19 = vmul.f32 %v13909_v5, %v15332_v45  ;;  %v14207_v13 = vmul.f32 %v13909_v5, %v15335_v4  ;;  %v15341_v45 = vld [vmem:[#allocation69_spill] sm:$0xff]  ;;  %v15343_v4 = vld [vmem:[#allocation68_spill] sm:$0xff] }
 0x36f   :  { %15327 = vst [vmem:[#allocation10_spill] sm:$0xff] %v14189_v30  ;;  %15330 = vst [vmem:[#allocation11_spill] sm:$0xff] %v14195_v48  ;;  %v15338_v30 = vsub.f32 %v15337_v33, %v13777_v0  ;;  %v15340_v48 = vsub.f32 %v15339_v49, %v13777_v0  ;;  %v14243_v49 = vadd.f32 %v14183_v35, %v13935_v51 }
 0x370   :  { %15333 = vst [vmem:[#allocation12_spill] sm:$0xff] %v14201_v19  ;;  %15336 = vst [vmem:[#allocation13_spill] sm:$0xff] %v14207_v13  ;;  %v15342_v19 = vsub.f32 %v15341_v45, %v13777_v0  ;;  %v15344_v13 = vsub.f32 %v15343_v4, %v13777_v0  ;;  %v14255_v0 = vadd.f32 %v14183_v35, %v13953_v32 }
 0x371   :  { %v14213_v28 = vmul.f32 %v13909_v5, %v15338_v30  ;;  %v14219_v9 = vmul.f32 %v13909_v5, %v15340_v48  ;;  %v14235_v30 = vadd.f32 %v14183_v35, %v13923_v57  ;;  %v14239_v48 = vadd.f32 %v14183_v35, %v13929_v2 }
 0x372   :  { %v14225_v61 = vmul.f32 %v13909_v5, %v15342_v19  ;;  %v14231_v33 = vmul.f32 %v13909_v5, %v15344_v13  ;;  %v14247_v19 = vadd.f32 %v14183_v35, %v13941_v59  ;;  %v14251_v5 = vadd.f32 %v14183_v35, %v13947_v23  ;;  %v15349_v13 = vld [vmem:[#allocation71_spill] sm:$0xff]  ;;  %v15351_v45 = vld [vmem:[#allocation72_spill] sm:$0xff] }
 0x373   :  { %v14259_v57 = vadd.f32 %v14183_v35, %v13959_v58  ;;  %v14263_v2 = vadd.f32 %v14183_v35, %v13965_v12  ;;  %v14267_v51 = vadd.f32 %v14183_v35, %v13971_v8  ;;  %v14271_v59 = vadd.f32 %v14183_v35, %v13977_v38 }
 0x374   :  { %v14275_v23 = vadd.f32 %v14183_v35, %v13983_v54  ;;  %v14279_v32 = vadd.f32 %v14183_v35, %v13989_v18  ;;  %v14283_v58 = vadd.f32 %v14183_v35, %v13995_v41  ;;  %v14287_v12 = vadd.f32 %v14183_v35, %v14001_v47  ;;  %v15353_v4 = vld [vmem:[#allocation7_spill] sm:$0xff] }
 0x375   :  { %v14291_v8 = vadd.f32 %v14183_v35, %v14007_v11  ;;  %v14295_v38 = vadd.f32 %v14183_v35, %v14013_v17  ;;  %v14299_v54 = vadd.f32 %v14183_v35, %v14019_v39  ;;  %v14303_v18 = vadd.f32 %v14183_v35, %v14025_v10 }
 0x376   :  { %v14307_v41 = vadd.f32 %v14183_v35, %v14031_v46  ;;  %v14311_v47 = vadd.f32 %v14183_v35, %v14037_v26  ;;  %v14315_v11 = vadd.f32 %v14183_v35, %v14043_v37  ;;  %v14319_v17 = vadd.f32 %v14183_v35, %v14049_v31 }
 0x377   :  { %v14323_v39 = vadd.f32 %v14183_v35, %v14052_v3  ;;  %v14327_v10 = vadd.f32 %v14183_v35, %v14055_v43  ;;  %v14331_v46 = vadd.f32 %v14183_v35, %v14058_v63  ;;  %v14335_v26 = vadd.f32 %v14183_v35, %v14061_v44 }
 0x378   :  { %v14339_v37 = vadd.f32 %v14183_v35, %v14064_v60  ;;  %v14343_v31 = vadd.f32 %v14183_v35, %v14067_v53  ;;  %v14347_v3 = vadd.f32 %v14183_v35, %v14070_v34  ;;  %v14351_v43 = vadd.f32 %v14183_v35, %v14073_v22 }
 0x379   :  { %v14355_v63 = vadd.f32 %v14183_v35, %v14076_v62  ;;  %v14359_v44 = vadd.f32 %v14183_v35, %v14079_v20  ;;  %v14363_v60 = vadd.f32 %v14183_v35, %v14082_v40  ;;  %v14367_v53 = vadd.f32 %v14183_v35, %v14085_v1 }
 0x37a   :  { %v14371_v34 = vadd.f32 %v14183_v35, %v14088_v29  ;;  %v14375_v22 = vadd.f32 %v14183_v35, %v14091_v50  ;;  %v14379_v62 = vadd.f32 %v14183_v35, %v14094_v24  ;;  %v14383_v20 = vadd.f32 %v14183_v35, %v14097_v42 }
 0x37b   :  { %v14387_v40 = vadd.f32 %v14183_v35, %v14100_v55  ;;  %v14391_v1 = vadd.f32 %v14183_v35, %v14103_v25  ;;  %v14395_v29 = vadd.f32 %v14183_v35, %v14106_v16  ;;  %v14399_v50 = vadd.f32 %v14183_v35, %v14109_v15 }
 0x37c   :  { %v14403_v24 = vadd.f32 %v14183_v35, %v14112_v21  ;;  %v14407_v42 = vadd.f32 %v14183_v35, %v14115_v6  ;;  %v14411_v55 = vadd.f32 %v14183_v35, %v14118_v7  ;;  %v14415_v25 = vadd.f32 %v14183_v35, %v14121_v52  ;;  %v15347_v7 = vld [vmem:[#allocation70_spill] sm:$0xff] }
 0x37d   :  { %v14419_v16 = vadd.f32 %v14183_v35, %v14127_v56  ;;  %v14423_v15 = vadd.f32 %v14183_v35, %v14130_v14  ;;  %v14427_v21 = vadd.f32 %v14183_v35, %v14136_v36  ;;  %v14431_v6 = vadd.f32 %v14183_v35, %v14142_v27 }
 0x37e   :  { %v14435_v52 = vadd.f32 %v14183_v35, %v15347_v7  ;;  %v14439_v56 = vadd.f32 %v14183_v35, %v15349_v13  ;;  %v14443_v14 = vadd.f32 %v14183_v35, %v15351_v45  ;;  %v14447_v36 = vadd.f32 %v14183_v35, %v15353_v4 }
 0x37f   :  { %15345 = vst [vmem:[#allocation14_spill] sm:$0xff] %v14427_v21  ;;  %15346 = vst [vmem:[#allocation15_spill] sm:$0xff] %v14431_v6  ;;  %v15355_v21 = vld [vmem:[#allocation8_spill] sm:$0xff]  ;;  %v15356_v6 = vld [vmem:[#allocation9_spill] sm:$0xff] }
 0x380   :  { %15348 = vst [vmem:[#allocation16_spill] sm:$0xff] %v14435_v52  ;;  %15350 = vst [vmem:[#allocation17_spill] sm:$0xff] %v14439_v56  ;;  %v14451_v27 = vadd.f32 %v14183_v35, %v15355_v21  ;;  %v14455_v7 = vadd.f32 %v14183_v35, %v15356_v6  ;;  %v15357_v52 = vld [vmem:[#allocation10_spill] sm:$0xff]  ;;  %v15358_v56 = vld [vmem:[#allocation11_spill] sm:$0xff]  ;;  %v14475_v6 = vadd.f32 %v14183_v35, %v14213_v28  ;;  %v6826_v28 = vmax.f32 %v14247_v19, 0.0 }
 0x381   :  { %15352 = vst [vmem:[#allocation20_spill] sm:$0xff] %v14443_v14  ;;  %15354 = vst [vmem:[#allocation18_spill] sm:$0xff] %v14447_v36  ;;  %v14459_v13 = vadd.f32 %v14183_v35, %v15357_v52  ;;  %v14463_v45 = vadd.f32 %v14183_v35, %v15358_v56  ;;  %v15359_v14 = vld [vmem:[#allocation12_spill] sm:$0xff]  ;;  %v15361_v36 = vld [vmem:[#allocation13_spill] sm:$0xff]  ;;  %v14479_v52 = vadd.f32 %v14183_v35, %v14219_v9  ;;  %v6828_v9 = vmax.f32 %v14255_v0, 0.0 }
 0x382   :  { %v14467_v4 = vadd.f32 %v14183_v35, %v15359_v14  ;;  %v14471_v21 = vadd.f32 %v14183_v35, %v15361_v36  ;;  %15363 = vst [vmem:[#allocation24_spill] sm:$0xff] %v14475_v6  ;;  %v14483_v56 = vadd.f32 %v14183_v35, %v14225_v61  ;;  %v14487_v14 = vadd.f32 %v14183_v35, %v14231_v33 }
 0x383   :  { %15364 = vst [vmem:[#allocation22_spill] sm:$0xff] %v14479_v52  ;;  %v6824_v36 = vmax.f32 %v14239_v48, 0.0  ;;  %v6827_v6 = vmax.f32 %v14251_v5, 0.0  ;;  %v6829_v52 = vmax.f32 %v14259_v57, 0.0  ;;  %v6830_v61 = vmax.f32 %v14263_v2, 0.0  ;;  %8030 = vst.msk [vmem:[%s14811_s4 + $0x39] sm:$0xff] %vm148_vm1, %v6826_v28 }
 0x384   :  { %15360 = vst [vmem:[#allocation19_spill] sm:$0xff] %v14467_v4  ;;  %15362 = vst [vmem:[#allocation21_spill] sm:$0xff] %v14471_v21  ;;  %v6823_v4 = vmax.f32 %v14235_v30, 0.0  ;;  %v6825_v21 = vmax.f32 %v14243_v49, 0.0  ;;  %v6832_v35 = vmax.f32 %v14271_v59, 0.0  ;;  %v6833_v33 = vmax.f32 %v14275_v23, 0.0 }
 0x385   :  { %15365 = vst [vmem:[#allocation23_spill] sm:$0xff] %v14483_v56  ;;  %v6831_v56 = vmax.f32 %v14267_v51, 0.0  ;;  %v6834_v30 = vmax.f32 %v14279_v32, 0.0  ;;  %8028 = vst.msk [vmem:[%s14811_s4 + $0x21] sm:$0xff] %vm148_vm1, %v6824_v36  ;;  %v6835_v48 = vmax.f32 %v14283_v58, 0.0  ;;  %v6836_v49 = vmax.f32 %v14287_v12, 0.0 }
 0x386   :  { %8027 = vst.msk [vmem:[%s14811_s4 + $0x19] sm:$0xff] %vm148_vm1, %v6823_v4  ;;  %8029 = vst.msk [vmem:[%s14811_s4 + $0x31] sm:$0xff] %vm148_vm1, %v6825_v21  ;;  %v6837_v19 = vmax.f32 %v14291_v8, 0.0  ;;  %v6838_v5 = vmax.f32 %v14295_v38, 0.0  ;;  %v6839_v0 = vmax.f32 %v14299_v54, 0.0  ;;  %v6840_v57 = vmax.f32 %v14303_v18, 0.0 }
 0x387   :  { %8031 = vst.msk [vmem:[%s14811_s4 + $0x49] sm:$0xff] %vm148_vm1, %v6827_v6  ;;  %8032 = vst.msk [vmem:[%s14811_s4 + $0x51] sm:$0xff] %vm148_vm1, %v6828_v9  ;;  %v6841_v2 = vmax.f32 %v14307_v41, 0.0  ;;  %v6842_v51 = vmax.f32 %v14311_v47, 0.0  ;;  %v6843_v59 = vmax.f32 %v14315_v11, 0.0  ;;  %v6844_v23 = vmax.f32 %v14319_v17, 0.0 }
 0x388   :  { %8033 = vst.msk [vmem:[%s14811_s4 + $0x61] sm:$0xff] %vm148_vm1, %v6829_v52  ;;  %8034 = vst.msk [vmem:[%s14811_s4 + $0x69] sm:$0xff] %vm148_vm1, %v6830_v61  ;;  %v6845_v32 = vmax.f32 %v14323_v39, 0.0  ;;  %v6846_v58 = vmax.f32 %v14327_v10, 0.0  ;;  %v6847_v12 = vmax.f32 %v14331_v46, 0.0  ;;  %v6848_v8 = vmax.f32 %v14335_v26, 0.0 }
 0x389   :  { %8035 = vst.msk [vmem:[%s14811_s4 + $0x79] sm:$0xff] %vm148_vm1, %v6831_v56  ;;  %8036 = vst.msk [vmem:[%s14811_s4 + $0x81] sm:$0xff] %vm148_vm1, %v6832_v35  ;;  %v6849_v38 = vmax.f32 %v14339_v37, 0.0  ;;  %v6850_v54 = vmax.f32 %v14343_v31, 0.0  ;;  %v6851_v18 = vmax.f32 %v14347_v3, 0.0  ;;  %v6852_v41 = vmax.f32 %v14351_v43, 0.0 }
 0x38a   :  { %8037 = vst.msk [vmem:[%s14811_s4 + $0x91] sm:$0xff] %vm148_vm1, %v6833_v33  ;;  %8038 = vst.msk [vmem:[%s14811_s4 + $0x99] sm:$0xff] %vm148_vm1, %v6834_v30  ;;  %v6853_v47 = vmax.f32 %v14355_v63, 0.0  ;;  %v6854_v11 = vmax.f32 %v14359_v44, 0.0  ;;  %v6855_v17 = vmax.f32 %v14363_v60, 0.0  ;;  %v6856_v39 = vmax.f32 %v14367_v53, 0.0 }
 0x38b   :  { %8039 = vst.msk [vmem:[%s14811_s4 + $0xa9] sm:$0xff] %vm148_vm1, %v6835_v48  ;;  %8040 = vst.msk [vmem:[%s14811_s4 + $0xb1] sm:$0xff] %vm148_vm1, %v6836_v49  ;;  %v6857_v10 = vmax.f32 %v14371_v34, 0.0  ;;  %v6858_v46 = vmax.f32 %v14375_v22, 0.0  ;;  %v6859_v26 = vmax.f32 %v14379_v62, 0.0  ;;  %v6860_v37 = vmax.f32 %v14383_v20, 0.0 }
 0x38c   :  { %8041 = vst.msk [vmem:[%s14811_s4 + $0xc1] sm:$0xff] %vm148_vm1, %v6837_v19  ;;  %8042 = vst.msk [vmem:[%s14811_s4 + $0xc9] sm:$0xff] %vm148_vm1, %v6838_v5  ;;  %v6861_v31 = vmax.f32 %v14387_v40, 0.0  ;;  %v6862_v3 = vmax.f32 %v14391_v1, 0.0  ;;  %v6863_v43 = vmax.f32 %v14395_v29, 0.0  ;;  %v6864_v63 = vmax.f32 %v14399_v50, 0.0 }
 0x38d   :  { %8043 = vst.msk [vmem:[%s14811_s4 + $0xd9] sm:$0xff] %vm148_vm1, %v6839_v0  ;;  %8044 = vst.msk [vmem:[%s14811_s4 + $0xe1] sm:$0xff] %vm148_vm1, %v6840_v57  ;;  %v6865_v44 = vmax.f32 %v14403_v24, 0.0  ;;  %v6866_v60 = vmax.f32 %v14407_v42, 0.0  ;;  %v6867_v53 = vmax.f32 %v14411_v55, 0.0  ;;  %v6868_v34 = vmax.f32 %v14415_v25, 0.0 }
 0x38e   :  { %8045 = vst.msk [vmem:[%s14811_s4 + $0xf1] sm:$0xff] %vm148_vm1, %v6841_v2  ;;  %8046 = vst.msk [vmem:[%s14811_s4 + $0xf9] sm:$0xff] %vm148_vm1, %v6842_v51  ;;  %v6869_v22 = vmax.f32 %v14419_v16, 0.0  ;;  %v6870_v62 = vmax.f32 %v14423_v15, 0.0  ;;  %v15366_v20 = vld [vmem:[#allocation14_spill] sm:$0xff]  ;;  %v15367_v1 = vld [vmem:[#allocation15_spill] sm:$0xff] }
 0x38f   :  { %8047 = vst.msk [vmem:[%s14811_s4 + $0x109] sm:$0xff] %vm148_vm1, %v6843_v59  ;;  %8048 = vst.msk [vmem:[%s14811_s4 + $0x111] sm:$0xff] %vm148_vm1, %v6844_v23  ;;  %v6871_v40 = vmax.f32 %v15366_v20, 0.0  ;;  %v6872_v29 = vmax.f32 %v15367_v1, 0.0  ;;  %v15368_v50 = vld [vmem:[#allocation16_spill] sm:$0xff]  ;;  %v15369_v42 = vld [vmem:[#allocation17_spill] sm:$0xff] }
 0x390   :  { %8049 = vst.msk [vmem:[%s14811_s4 + $0x121] sm:$0xff] %vm148_vm1, %v6845_v32  ;;  %8050 = vst.msk [vmem:[%s14811_s4 + $0x129] sm:$0xff] %vm148_vm1, %v6846_v58  ;;  %v6873_v24 = vmax.f32 %v15368_v50, 0.0  ;;  %v6874_v55 = vmax.f32 %v15369_v42, 0.0  ;;  %v15370_v25 = vld [vmem:[#allocation20_spill] sm:$0xff]  ;;  %v15371_v15 = vld [vmem:[#allocation18_spill] sm:$0xff] }
 0x391   :  { %8051 = vst.msk [vmem:[%s14811_s4 + $0x139] sm:$0xff] %vm148_vm1, %v6847_v12  ;;  %8052 = vst.msk [vmem:[%s14811_s4 + $0x141] sm:$0xff] %vm148_vm1, %v6848_v8  ;;  %v6875_v16 = vmax.f32 %v15370_v25, 0.0  ;;  %v6876_v4 = vmax.f32 %v15371_v15, 0.0  ;;  %v6877_v21 = vmax.f32 %v14451_v27, 0.0  ;;  %v6878_v6 = vmax.f32 %v14455_v7, 0.0 }
 0x392   :  { %8053 = vst.msk [vmem:[%s14811_s4 + $0x151] sm:$0xff] %vm148_vm1, %v6849_v38  ;;  %8054 = vst.msk [vmem:[%s14811_s4 + $0x159] sm:$0xff] %vm148_vm1, %v6850_v54  ;;  %v6879_v27 = vmax.f32 %v14459_v13, 0.0  ;;  %v6880_v7 = vmax.f32 %v14463_v45, 0.0  ;;  %v15372_v52 = vld [vmem:[#allocation19_spill] sm:$0xff]  ;;  %v15373_v36 = vld [vmem:[#allocation21_spill] sm:$0xff] }
 0x393   :  { %8055 = vst.msk [vmem:[%s14811_s4 + $0x169] sm:$0xff] %vm148_vm1, %v6851_v18  ;;  %8056 = vst.msk [vmem:[%s14811_s4 + $0x171] sm:$0xff] %vm148_vm1, %v6852_v41  ;;  %v6881_v56 = vmax.f32 %v15372_v52, 0.0  ;;  %v6882_v28 = vmax.f32 %v15373_v36, 0.0  ;;  %v15374_v13 = vld [vmem:[#allocation24_spill] sm:$0xff]  ;;  %v15375_v9 = vld [vmem:[#allocation22_spill] sm:$0xff] }
 0x394   :  { %8057 = vst.msk [vmem:[%s14811_s4 + $0x181] sm:$0xff] %vm148_vm1, %v6853_v47  ;;  %8058 = vst.msk [vmem:[%s14811_s4 + $0x189] sm:$0xff] %vm148_vm1, %v6854_v11  ;;  %v6883_v45 = vmax.f32 %v15374_v13, 0.0  ;;  %v6884_v61 = vmax.f32 %v15375_v9, 0.0  ;;  %v15376_v35 = vld [vmem:[#allocation23_spill] sm:$0xff]  ;;  %v6886_v30 = vmax.f32 %v14487_v14, 0.0 }
 0x395   :  { %8059 = vst.msk [vmem:[%s14811_s4 + $0x1c9] sm:$0xff] %vm148_vm1, %v6855_v17  ;;  %8060 = vst.msk [vmem:[%s14811_s4 + $0x1d1] sm:$0xff] %vm148_vm1, %v6856_v39  ;;  %v6885_v33 = vmax.f32 %v15376_v35, 0.0 }
 0x396   :  { %8061 = vst.msk [vmem:[%s14811_s4 + $0x1e1] sm:$0xff] %vm148_vm1, %v6857_v10  ;;  %8062 = vst.msk [vmem:[%s14811_s4 + $0x1e9] sm:$0xff] %vm148_vm1, %v6858_v46 }
 0x397   :  { %8063 = vst.msk [vmem:[%s14811_s4 + $0x1f9] sm:$0xff] %vm148_vm1, %v6859_v26  ;;  %8064 = vst.msk [vmem:[%s14811_s4 + $0x201] sm:$0xff] %vm148_vm1, %v6860_v37 }
 0x398   :  { %8065 = vst.msk [vmem:[%s14811_s4 + $0x211] sm:$0xff] %vm148_vm1, %v6861_v31  ;;  %8066 = vst.msk [vmem:[%s14811_s4 + $0x219] sm:$0xff] %vm148_vm1, %v6862_v3 }
 0x399   :  { %8067 = vst.msk [vmem:[%s14811_s4 + $0x229] sm:$0xff] %vm148_vm1, %v6863_v43  ;;  %8068 = vst.msk [vmem:[%s14811_s4 + $0x231] sm:$0xff] %vm148_vm1, %v6864_v63 }
 0x39a   :  { %8069 = vst.msk [vmem:[%s14811_s4 + $0x241] sm:$0xff] %vm148_vm1, %v6865_v44  ;;  %8070 = vst.msk [vmem:[%s14811_s4 + $0x249] sm:$0xff] %vm148_vm1, %v6866_v60 }
 0x39b   :  { %8071 = vst.msk [vmem:[%s14811_s4 + $0x259] sm:$0xff] %vm148_vm1, %v6867_v53  ;;  %8072 = vst.msk [vmem:[%s14811_s4 + $0x261] sm:$0xff] %vm148_vm1, %v6868_v34 }
 0x39c   :  { %8073 = vst.msk [vmem:[%s14811_s4 + $0x271] sm:$0xff] %vm148_vm1, %v6869_v22  ;;  %8074 = vst.msk [vmem:[%s14811_s4 + $0x279] sm:$0xff] %vm148_vm1, %v6870_v62 }
 0x39d   :  { %8075 = vst.msk [vmem:[%s14811_s4 + $0x289] sm:$0xff] %vm148_vm1, %v6871_v40  ;;  %8076 = vst.msk [vmem:[%s14811_s4 + $0x291] sm:$0xff] %vm148_vm1, %v6872_v29 }
 0x39e   :  { %8077 = vst.msk [vmem:[%s14811_s4 + $0x2a1] sm:$0xff] %vm148_vm1, %v6873_v24  ;;  %8078 = vst.msk [vmem:[%s14811_s4 + $0x2a9] sm:$0xff] %vm148_vm1, %v6874_v55 }
 0x39f   :  { %8079 = vst.msk [vmem:[%s14811_s4 + $0x2b9] sm:$0xff] %vm148_vm1, %v6875_v16  ;;  %8080 = vst.msk [vmem:[%s14811_s4 + $0x2c1] sm:$0xff] %vm148_vm1, %v6876_v4 }
 0x3a0   :  { %8081 = vst.msk [vmem:[%s14811_s4 + $0x2d1] sm:$0xff] %vm148_vm1, %v6877_v21  ;;  %8082 = vst.msk [vmem:[%s14811_s4 + $0x2d9] sm:$0xff] %vm148_vm1, %v6878_v6 }
 0x3a1   :  { %8083 = vst.msk [vmem:[%s14811_s4 + $0x2e9] sm:$0xff] %vm148_vm1, %v6879_v27  ;;  %8084 = vst.msk [vmem:[%s14811_s4 + $0x2f1] sm:$0xff] %vm148_vm1, %v6880_v7 }
 0x3a2   :  { %8085 = vst.msk [vmem:[%s14811_s4 + $0x301] sm:$0xff] %vm148_vm1, %v6881_v56  ;;  %8086 = vst.msk [vmem:[%s14811_s4 + $0x309] sm:$0xff] %vm148_vm1, %v6882_v28 }
 0x3a3   :  { %8087 = vst.msk [vmem:[%s14811_s4 + $0x319] sm:$0xff] %vm148_vm1, %v6883_v45  ;;  %8088 = vst.msk [vmem:[%s14811_s4 + $0x321] sm:$0xff] %vm148_vm1, %v6884_v61 }
 0x3a4   :  { %8089 = vst.msk [vmem:[%s14811_s4 + $0x331] sm:$0xff] %vm148_vm1, %v6885_v33  ;;  %8090 = vst.msk [vmem:[%s14811_s4 + $0x339] sm:$0xff] %vm148_vm1, %v6886_v30 }

</bundles_post_ra>
